<compile_context>
chip_gen: v7x
topology: tpu7x:2x2x1
jax: 0.10.0
libtpu: 0.0.40
codegen_flags: <defaults>
</compile_context>

<pallas_src>
import jax
import jax.numpy as jnp
from jax import lax
from jax.experimental import pallas as pl
from jax.experimental.pallas import tpu as pltpu


def lstm_kernel(x_ref, wihc_ref, bc_ref, whh_ref, h0_ref, c0_ref,
                out_ref, hn_ref, cn_ref,
                gx_sc):
    # x_ref:    (T, D)          float32
    # wihc_ref: (D, 8Hp)        float32   fwd gates in cols [0:4Hp], bwd gates in cols [4Hp:8Hp]
    # bc_ref:   (1, 8Hp)        float32   combined b_ih + b_hh, both directions
    # whh_ref:  (2, Hp, 4Hp)    float32   per-direction W_hh^T (gate-padded)
    # h0_ref:   (2, 1, Hp)      c0_ref: (2, 1, Hp)
    # out_ref:  (T, 2Hp)        hn_ref/cn_ref: (2, 1, Hp)
    # gx_sc:    (T, 8Hp) VMEM scratch (input-gate pre-activations for both directions)
    T = x_ref.shape[0]
    Hp = h0_ref.shape[-1]
    G = 4 * Hp

    # One MXU call: input projection for both directions and all timesteps at once.
    gx_sc[...] = jnp.dot(x_ref[...], wihc_ref[...],
                         preferred_element_type=jnp.float32) + bc_ref[...]

    whh_f = whh_ref[0]          # (Hp, 4Hp)
    whh_b = whh_ref[1]          # (Hp, 4Hp)

    def cell(gates, c):
        # gates: (1, 4Hp), gate order [i, f, g, o]; each slice is a 128-lane-aligned block.
        i = jax.nn.sigmoid(gates[:, 0 * Hp:1 * Hp])
        f = jax.nn.sigmoid(gates[:, 1 * Hp:2 * Hp])
        g = jnp.tanh(gates[:, 2 * Hp:3 * Hp])
        o = jax.nn.sigmoid(gates[:, 3 * Hp:4 * Hp])
        c_new = f * c + i * g
        h_new = o * jnp.tanh(c_new)
        return h_new, c_new

    def step(t, carry):
        h_f, c_f, h_b, c_b = carry
        tb = (T - 1) - t

        gx_f = gx_sc[pl.ds(t, 1), 0:G]          # (1, 4Hp) fwd pre-activations at t
        gx_b = gx_sc[pl.ds(tb, 1), G:2 * G]     # (1, 4Hp) bwd pre-activations at T-1-t

        # Two independent small matmuls -> their latencies overlap each other's gate math.
        g_f = gx_f + jnp.dot(h_f, whh_f, preferred_element_type=jnp.float32)
        g_b = gx_b + jnp.dot(h_b, whh_b, preferred_element_type=jnp.float32)

        h_f, c_f = cell(g_f, c_f)
        h_b, c_b = cell(g_b, c_b)

        # Lane-dense, 128-aligned row stores into the final (T, 2Hp) layout.
        out_ref[pl.ds(t, 1), 0:Hp] = h_f
        out_ref[pl.ds(tb, 1), Hp:2 * Hp] = h_b
        return h_f, c_f, h_b, c_b

    h_f, c_f, h_b, c_b = lax.fori_loop(
        0, T, step,
        (h0_ref[0], c0_ref[0], h0_ref[1], c0_ref[1]),
        unroll=True)

    hn_ref[0] = h_f
    cn_ref[0] = c_f
    hn_ref[1] = h_b
    cn_ref[1] = c_b


def _round_up(n, m):
    return -(-n // m) * m


def _pad_params(params, D, H, Hp):
    """Zero-pad gate blocks / hidden dim to Hp lanes; pack both directions' input weights."""
    wih, whh, b, h0, c0 = params
    pad_g = Hp - H

    # wih: (2, D, 4H) -> per-gate pad -> (2, D, 4Hp) -> concat dirs -> (D, 8Hp)
    wih_p = jnp.pad(wih.reshape(2, D, 4, H), ((0, 0), (0, 0), (0, 0), (0, pad_g)))
    wih_p = wih_p.reshape(2, D, 4 * Hp)
    wihc = jnp.concatenate([wih_p[0], wih_p[1]], axis=-1)              # (D, 8Hp)

    # whh: (2, H, 4H) -> per-gate pad + pad input-hidden rows -> (2, Hp, 4Hp)
    whh_p = jnp.pad(whh.reshape(2, H, 4, H), ((0, 0), (0, 0), (0, 0), (0, pad_g)))
    whh_p = whh_p.reshape(2, H, 4 * Hp)
    whh_p = jnp.pad(whh_p, ((0, 0), (0, pad_g), (0, 0)))               # (2, Hp, 4Hp)

    # b: (2, 1, 4H) -> (2, 1, 4Hp) -> concat dirs -> (1, 8Hp)
    b_p = jnp.pad(b.reshape(2, 1, 4, H), ((0, 0), (0, 0), (0, 0), (0, pad_g)))
    b_p = b_p.reshape(2, 1, 4 * Hp)
    bc = jnp.concatenate([b_p[0], b_p[1]], axis=-1)                    # (1, 8Hp)

    h0_p = jnp.pad(h0, ((0, 0), (0, 0), (0, pad_g)))                   # (2, 1, Hp)
    c0_p = jnp.pad(c0, ((0, 0), (0, 0), (0, pad_g)))
    return wihc, bc, whh_p, h0_p, c0_p


def lstm_encoder_forward(x, params):
    """x: (T, 1, D) float32. Returns (output (T,1,2H), (h_n (2,1,H), c_n (2,1,H)))."""
    wih, whh, b, h0, c0 = params
    T, B, D = x.shape
    assert B == 1, "module's fixed h0/c0 imply batch=1"
    H = h0.shape[-1]
    Hp = _round_up(H, 128)

    wihc, bc, whh_p, h0_p, c0_p = _pad_params(params, D, H, Hp)
    x2 = x.reshape(T, D)

    # TODO(synk): for long T, stream x / gx / out in T-chunks (pltpu.emit_pipeline) so the
    # resident footprint stays O(chunk) and fits v7x's 64 MiB VMEM.
    out, hn, cn = pl.pallas_call(
        lstm_kernel,
        out_shape=(
            jax.ShapeDtypeStruct((T, 2 * Hp), jnp.float32),
            jax.ShapeDtypeStruct((2, 1, Hp), jnp.float32),
            jax.ShapeDtypeStruct((2, 1, Hp), jnp.float32),
        ),
        in_specs=[pl.BlockSpec(memory_space=pltpu.MemorySpace.VMEM)] * 6,
        out_specs=(
            pl.BlockSpec(memory_space=pltpu.MemorySpace.VMEM),
            pl.BlockSpec(memory_space=pltpu.MemorySpace.VMEM),
            pl.BlockSpec(memory_space=pltpu.MemorySpace.VMEM),
        ),
        scratch_shapes=[
            pltpu.VMEM((T, 8 * Hp), jnp.float32),   # both directions' input pre-activations
        ],
    )(x2, wihc, bc, whh_p, h0_p, c0_p)

    # Strip lane padding: fwd features at [:, :H], bwd features at [:, Hp:Hp+H].
    output = jnp.concatenate([out[:, :H], out[:, Hp:Hp + H]], axis=-1).reshape(T, 1, 2 * H)
    return output, (hn[:, :, :H], cn[:, :, :H])


def lstm_reference(x, params):
    """Pure-JAX reference matching PyTorch bidirectional LSTM semantics."""
    wih, whh, b, h0, c0 = params
    T, B, D = x.shape
    H = h0.shape[-1]
    outs, hns, cns = [], [], []
    for d in range(2):
        h, c = h0[d], c0[d]  # (1, H)
        hs = [None] * T
        time_order = range(T) if d == 0 else range(T - 1, -1, -1)
        for t in time_order:
            g = x[t] @ wih[d] + b[d] + h @ whh[d]
            i = jax.nn.sigmoid(g[:, 0 * H:1 * H])
            f = jax.nn.sigmoid(g[:, 1 * H:2 * H])
            gg = jnp.tanh(g[:, 2 * H:3 * H])
            o = jax.nn.sigmoid(g[:, 3 * H:4 * H])
            c = f * c + i * gg
            h = o * jnp.tanh(c)
            hs[t] = h
        outs.append(jnp.stack(hs, axis=0))        # (T, 1, H)
        hns.append(h)
        cns.append(c)
    return jnp.concatenate(outs, axis=-1), (jnp.stack(hns), jnp.stack(cns))


def make_params(key, input_size, hidden_size):
    """Deterministic synthetic LSTM parameters (PyTorch-style uniform init)."""
    H, D = hidden_size, input_size
    ks = jax.random.split(key, 10)
    s = 1.0 / jnp.sqrt(jnp.float32(H))

    def u(k, shape):
        return jax.random.uniform(k, shape, jnp.float32, minval=-s, maxval=s)

    # PyTorch shapes: W_ih (4H, D), W_hh (4H, H), b_ih (4H,), b_hh (4H,) per direction.
    wih = jnp.stack([u(ks[0], (4 * H, D)).T, u(ks[1], (4 * H, D)).T])        # (2, D, 4H)
    whh = jnp.stack([u(ks[2], (4 * H, H)).T, u(ks[3], (4 * H, H)).T])        # (2, H, 4H)
    b = jnp.stack([(u(ks[4], (4 * H,)) + u(ks[5], (4 * H,)))[None, :],
                   (u(ks[6], (4 * H,)) + u(ks[7], (4 * H,)))[None, :]])      # (2, 1, 4H)
    h0 = jax.random.normal(ks[8], (2, 1, H), jnp.float32)                    # num_layers*num_dir=2
    c0 = jax.random.normal(ks[9], (2, 1, H), jnp.float32)
    return wih, whh, b, h0, c0


if __name__ == "__main__":
    INPUT_SIZE, HIDDEN_SIZE, SEQ_LEN, BATCH = 16, 32, 8, 1

    key = jax.random.PRNGKey(0)
    kx, kp = jax.random.split(key)
    x = jax.random.normal(kx, (SEQ_LEN, BATCH, INPUT_SIZE), jnp.float32)
    params = make_params(kp, INPUT_SIZE, HIDDEN_SIZE)

    output, (hn, cn) = lstm_encoder_forward(x, params)
    jax.block_until_ready((output, hn, cn))

    ref_out, (ref_hn, ref_cn) = lstm_reference(x, params)
    assert output.shape == (SEQ_LEN, BATCH, 2 * HIDDEN_SIZE)
    assert hn.shape == (2, BATCH, HIDDEN_SIZE) and cn.shape == (2, BATCH, HIDDEN_SIZE)
    assert jnp.allclose(output, ref_out, atol=1e-4, rtol=1e-4)
    assert jnp.allclose(hn, ref_hn, atol=1e-4, rtol=1e-4)
    assert jnp.allclose(cn, ref_cn, atol=1e-4, rtol=1e-4)

    print("KERNEL_OK")
</pallas_src>

<mosaic_0001>
module attributes {stable_mosaic.version = 11 : i64} {
  func.func @lstm_kernel(%arg0: memref<8x16xf32, #tpu.memory_space<vmem>>, %arg1: memref<16x1024xf32, #tpu.memory_space<vmem>>, %arg2: memref<1x1024xf32, #tpu.memory_space<vmem>>, %arg3: memref<2x128x512xf32, #tpu.memory_space<vmem>>, %arg4: memref<2x1x128xf32, #tpu.memory_space<vmem>>, %arg5: memref<2x1x128xf32, #tpu.memory_space<vmem>>, %arg6: memref<8x256xf32, #tpu.memory_space<vmem>>, %arg7: memref<2x1x128xf32, #tpu.memory_space<vmem>>, %arg8: memref<2x1x128xf32, #tpu.memory_space<vmem>>, %arg9: memref<8x1024xf32, #tpu.memory_space<vmem>>) attributes {dimension_semantics = [], scalar_prefetch = 0 : i64, scratch_operands = 1 : i64, tpu.core_type = #tpu.core_type<tc>} {
    %c0 = arith.constant 0 : index
    %c0_0 = arith.constant 0 : index
    %0 = vector.load %arg0[%c0, %c0_0] : memref<8x16xf32, #tpu.memory_space<vmem>>, vector<8x16xf32>
    %c0_1 = arith.constant 0 : index
    %c0_2 = arith.constant 0 : index
    %1 = vector.load %arg1[%c0_1, %c0_2] : memref<16x1024xf32, #tpu.memory_space<vmem>>, vector<16x1024xf32>
    %cst = arith.constant dense<0.000000e+00> : vector<8x1024xf32>
    %2 = tpu.matmul %0, %1, %cst {dimension_numbers = #tpu.dot_dimension_numbers<[1], [0], [0], [1], [0, 0, 1, 1], [], []>} : vector<8x16xf32>, vector<16x1024xf32>, vector<8x1024xf32> -> vector<8x1024xf32>
    %c0_3 = arith.constant 0 : index
    %c0_4 = arith.constant 0 : index
    %3 = vector.load %arg2[%c0_3, %c0_4] : memref<1x1024xf32, #tpu.memory_space<vmem>>, vector<1x1024xf32>
    %4 = vector.broadcast %3 : vector<1x1024xf32> to vector<8x1024xf32>
    %5 = arith.addf %2, %4 : vector<8x1024xf32>
    %c0_5 = arith.constant 0 : index
    %c0_6 = arith.constant 0 : index
    %6 = vector.load %arg9[%c0_5, %c0_6] : memref<8x1024xf32, #tpu.memory_space<vmem>>, vector<8x1024xf32>
    tpu.vector_store %arg9[%c0_5, %c0_6], %5 {strides = array<i32>} : memref<8x1024xf32, #tpu.memory_space<vmem>>, vector<8x1024xf32>,
    %c0_7 = arith.constant 0 : index
    %c0_8 = arith.constant 0 : index
    %c0_9 = arith.constant 0 : index
    %7 = vector.load %arg3[%c0_7, %c0_8, %c0_9] : memref<2x128x512xf32, #tpu.memory_space<vmem>>, vector<1x128x512xf32>
    %8 = vector.shape_cast %7 : vector<1x128x512xf32> to vector<128x512xf32>
    %c1 = arith.constant 1 : index
    %c0_10 = arith.constant 0 : index
    %c0_11 = arith.constant 0 : index
    %9 = vector.load %arg3[%c1, %c0_10, %c0_11] : memref<2x128x512xf32, #tpu.memory_space<vmem>>, vector<1x128x512xf32>
    %10 = vector.shape_cast %9 : vector<1x128x512xf32> to vector<128x512xf32>
    %c0_12 = arith.constant 0 : index
    %c0_13 = arith.constant 0 : index
    %c0_14 = arith.constant 0 : index
    %11 = vector.load %arg4[%c0_12, %c0_13, %c0_14] : memref<2x1x128xf32, #tpu.memory_space<vmem>>, vector<1x1x128xf32>
    %12 = vector.shape_cast %11 : vector<1x1x128xf32> to vector<1x128xf32>
    %c0_15 = arith.constant 0 : index
    %c0_16 = arith.constant 0 : index
    %c0_17 = arith.constant 0 : index
    %13 = vector.load %arg5[%c0_15, %c0_16, %c0_17] : memref<2x1x128xf32, #tpu.memory_space<vmem>>, vector<1x1x128xf32>
    %14 = vector.shape_cast %13 : vector<1x1x128xf32> to vector<1x128xf32>
    %c1_18 = arith.constant 1 : index
    %c0_19 = arith.constant 0 : index
    %c0_20 = arith.constant 0 : index
    %15 = vector.load %arg4[%c1_18, %c0_19, %c0_20] : memref<2x1x128xf32, #tpu.memory_space<vmem>>, vector<1x1x128xf32>
    %16 = vector.shape_cast %15 : vector<1x1x128xf32> to vector<1x128xf32>
    %c1_21 = arith.constant 1 : index
    %c0_22 = arith.constant 0 : index
    %c0_23 = arith.constant 0 : index
    %17 = vector.load %arg5[%c1_21, %c0_22, %c0_23] : memref<2x1x128xf32, #tpu.memory_space<vmem>>, vector<1x1x128xf32>
    %18 = vector.shape_cast %17 : vector<1x1x128xf32> to vector<1x128xf32>
    %c0_i32 = arith.constant 0 : i32
    %c7_i32 = arith.constant 7 : i32
    %19 = arith.subi %c7_i32, %c0_i32 : i32
    %20 = arith.index_cast %c0_i32 : i32 to index
    %c0_24 = arith.constant 0 : index
    %21 = vector.load %arg9[%20, %c0_24] : memref<8x1024xf32, #tpu.memory_space<vmem>>, vector<1x512xf32>
    %22 = arith.index_cast %19 : i32 to index
    %c512 = arith.constant 512 : index
    %23 = vector.load %arg9[%22, %c512] : memref<8x1024xf32, #tpu.memory_space<vmem>>, vector<1x512xf32>
    %cst_25 = arith.constant dense<0.000000e+00> : vector<1x512xf32>
    %24 = tpu.matmul %12, %8, %cst_25 {dimension_numbers = #tpu.dot_dimension_numbers<[1], [0], [0], [1], [0, 0, 1, 1], [], []>} : vector<1x128xf32>, vector<128x512xf32>, vector<1x512xf32> -> vector<1x512xf32>
    %25 = arith.addf %21, %24 : vector<1x512xf32>
    %cst_26 = arith.constant dense<0.000000e+00> : vector<1x512xf32>
    %26 = tpu.matmul %16, %10, %cst_26 {dimension_numbers = #tpu.dot_dimension_numbers<[1], [0], [0], [1], [0, 0, 1, 1], [], []>} : vector<1x128xf32>, vector<128x512xf32>, vector<1x512xf32> -> vector<1x512xf32>
    %27 = arith.addf %23, %26 : vector<1x512xf32>
    %28 = vector.extract_strided_slice %25 {offsets = [0, 0], sizes = [1, 128], strides = [1, 1]} : vector<1x512xf32> to vector<1x128xf32>
    %29 = arith.negf %28 : vector<1x128xf32>
    %30 = math.exp %29 : vector<1x128xf32>
    %cst_27 = arith.constant 1.000000e+00 : f32
    %31 = vector.broadcast %cst_27 : f32 to vector<1x128xf32>
    %32 = arith.addf %31, %30 : vector<1x128xf32>
    %33 = arith.divf %31, %32 : vector<1x128xf32>
    %34 = vector.extract_strided_slice %25 {offsets = [0, 128], sizes = [1, 128], strides = [1, 1]} : vector<1x512xf32> to vector<1x128xf32>
    %35 = arith.negf %34 : vector<1x128xf32>
    %36 = math.exp %35 : vector<1x128xf32>
    %cst_28 = arith.constant 1.000000e+00 : f32
    %37 = vector.broadcast %cst_28 : f32 to vector<1x128xf32>
    %38 = arith.addf %37, %36 : vector<1x128xf32>
    %39 = arith.divf %37, %38 : vector<1x128xf32>
    %40 = vector.extract_strided_slice %25 {offsets = [0, 256], sizes = [1, 128], strides = [1, 1]} : vector<1x512xf32> to vector<1x128xf32>
    %41 = math.tanh %40 : vector<1x128xf32>
    %42 = vector.extract_strided_slice %25 {offsets = [0, 384], sizes = [1, 128], strides = [1, 1]} : vector<1x512xf32> to vector<1x128xf32>
    %43 = arith.negf %42 : vector<1x128xf32>
    %44 = math.exp %43 : vector<1x128xf32>
    %cst_29 = arith.constant 1.000000e+00 : f32
    %45 = vector.broadcast %cst_29 : f32 to vector<1x128xf32>
    %46 = arith.addf %45, %44 : vector<1x128xf32>
    %47 = arith.divf %45, %46 : vector<1x128xf32>
    %48 = arith.mulf %39, %14 : vector<1x128xf32>
    %49 = arith.mulf %33, %41 : vector<1x128xf32>
    %50 = arith.addf %48, %49 : vector<1x128xf32>
    %51 = math.tanh %50 : vector<1x128xf32>
    %52 = arith.mulf %47, %51 : vector<1x128xf32>
    %53 = vector.extract_strided_slice %27 {offsets = [0, 0], sizes = [1, 128], strides = [1, 1]} : vector<1x512xf32> to vector<1x128xf32>
    %54 = arith.negf %53 : vector<1x128xf32>
    %55 = math.exp %54 : vector<1x128xf32>
    %cst_30 = arith.constant 1.000000e+00 : f32
    %56 = vector.broadcast %cst_30 : f32 to vector<1x128xf32>
    %57 = arith.addf %56, %55 : vector<1x128xf32>
    %58 = arith.divf %56, %57 : vector<1x128xf32>
    %59 = vector.extract_strided_slice %27 {offsets = [0, 128], sizes = [1, 128], strides = [1, 1]} : vector<1x512xf32> to vector<1x128xf32>
    %60 = arith.negf %59 : vector<1x128xf32>
    %61 = math.exp %60 : vector<1x128xf32>
    %cst_31 = arith.constant 1.000000e+00 : f32
    %62 = vector.broadcast %cst_31 : f32 to vector<1x128xf32>
    %63 = arith.addf %62, %61 : vector<1x128xf32>
    %64 = arith.divf %62, %63 : vector<1x128xf32>
    %65 = vector.extract_strided_slice %27 {offsets = [0, 256], sizes = [1, 128], strides = [1, 1]} : vector<1x512xf32> to vector<1x128xf32>
    %66 = math.tanh %65 : vector<1x128xf32>
    %67 = vector.extract_strided_slice %27 {offsets = [0, 384], sizes = [1, 128], strides = [1, 1]} : vector<1x512xf32> to vector<1x128xf32>
    %68 = arith.negf %67 : vector<1x128xf32>
    %69 = math.exp %68 : vector<1x128xf32>
    %cst_32 = arith.constant 1.000000e+00 : f32
    %70 = vector.broadcast %cst_32 : f32 to vector<1x128xf32>
    %71 = arith.addf %70, %69 : vector<1x128xf32>
    %72 = arith.divf %70, %71 : vector<1x128xf32>
    %73 = arith.mulf %64, %18 : vector<1x128xf32>
    %74 = arith.mulf %58, %66 : vector<1x128xf32>
    %75 = arith.addf %73, %74 : vector<1x128xf32>
    %76 = math.tanh %75 : vector<1x128xf32>
    %77 = arith.mulf %72, %76 : vector<1x128xf32>
    %78 = arith.index_cast %c0_i32 : i32 to index
    %c0_33 = arith.constant 0 : index
    %79 = vector.load %arg6[%78, %c0_33] : memref<8x256xf32, #tpu.memory_space<vmem>>, vector<1x128xf32>
    tpu.vector_store %arg6[%78, %c0_33], %52 {strides = array<i32>} : memref<8x256xf32, #tpu.memory_space<vmem>>, vector<1x128xf32>,
    %80 = arith.index_cast %19 : i32 to index
    %c128 = arith.constant 128 : index
    %81 = vector.load %arg6[%80, %c128] : memref<8x256xf32, #tpu.memory_space<vmem>>, vector<1x128xf32>
    tpu.vector_store %arg6[%80, %c128], %77 {strides = array<i32>} : memref<8x256xf32, #tpu.memory_space<vmem>>, vector<1x128xf32>,
    %c1_i32 = arith.constant 1 : i32
    %c7_i32_34 = arith.constant 7 : i32
    %82 = arith.subi %c7_i32_34, %c1_i32 : i32
    %83 = arith.index_cast %c1_i32 : i32 to index
    %c0_35 = arith.constant 0 : index
    %84 = vector.load %arg9[%83, %c0_35] : memref<8x1024xf32, #tpu.memory_space<vmem>>, vector<1x512xf32>
    %85 = arith.index_cast %82 : i32 to index
    %c512_36 = arith.constant 512 : index
    %86 = vector.load %arg9[%85, %c512_36] : memref<8x1024xf32, #tpu.memory_space<vmem>>, vector<1x512xf32>
    %cst_37 = arith.constant dense<0.000000e+00> : vector<1x512xf32>
    %87 = tpu.matmul %52, %8, %cst_37 {dimension_numbers = #tpu.dot_dimension_numbers<[1], [0], [0], [1], [0, 0, 1, 1], [], []>} : vector<1x128xf32>, vector<128x512xf32>, vector<1x512xf32> -> vector<1x512xf32>
    %88 = arith.addf %84, %87 : vector<1x512xf32>
    %cst_38 = arith.constant dense<0.000000e+00> : vector<1x512xf32>
    %89 = tpu.matmul %77, %10, %cst_38 {dimension_numbers = #tpu.dot_dimension_numbers<[1], [0], [0], [1], [0, 0, 1, 1], [], []>} : vector<1x128xf32>, vector<128x512xf32>, vector<1x512xf32> -> vector<1x512xf32>
    %90 = arith.addf %86, %89 : vector<1x512xf32>
    %91 = vector.extract_strided_slice %88 {offsets = [0, 0], sizes = [1, 128], strides = [1, 1]} : vector<1x512xf32> to vector<1x128xf32>
    %92 = arith.negf %91 : vector<1x128xf32>
    %93 = math.exp %92 : vector<1x128xf32>
    %cst_39 = arith.constant 1.000000e+00 : f32
    %94 = vector.broadcast %cst_39 : f32 to vector<1x128xf32>
    %95 = arith.addf %94, %93 : vector<1x128xf32>
    %96 = arith.divf %94, %95 : vector<1x128xf32>
    %97 = vector.extract_strided_slice %88 {offsets = [0, 128], sizes = [1, 128], strides = [1, 1]} : vector<1x512xf32> to vector<1x128xf32>
    %98 = arith.negf %97 : vector<1x128xf32>
    %99 = math.exp %98 : vector<1x128xf32>
    %cst_40 = arith.constant 1.000000e+00 : f32
    %100 = vector.broadcast %cst_40 : f32 to vector<1x128xf32>
    %101 = arith.addf %100, %99 : vector<1x128xf32>
    %102 = arith.divf %100, %101 : vector<1x128xf32>
    %103 = vector.extract_strided_slice %88 {offsets = [0, 256], sizes = [1, 128], strides = [1, 1]} : vector<1x512xf32> to vector<1x128xf32>
    %104 = math.tanh %103 : vector<1x128xf32>
    %105 = vector.extract_strided_slice %88 {offsets = [0, 384], sizes = [1, 128], strides = [1, 1]} : vector<1x512xf32> to vector<1x128xf32>
    %106 = arith.negf %105 : vector<1x128xf32>
    %107 = math.exp %106 : vector<1x128xf32>
    %cst_41 = arith.constant 1.000000e+00 : f32
    %108 = vector.broadcast %cst_41 : f32 to vector<1x128xf32>
    %109 = arith.addf %108, %107 : vector<1x128xf32>
    %110 = arith.divf %108, %109 : vector<1x128xf32>
    %111 = arith.mulf %102, %50 : vector<1x128xf32>
    %112 = arith.mulf %96, %104 : vector<1x128xf32>
    %113 = arith.addf %111, %112 : vector<1x128xf32>
    %114 = math.tanh %113 : vector<1x128xf32>
    %115 = arith.mulf %110, %114 : vector<1x128xf32>
    %116 = vector.extract_strided_slice %90 {offsets = [0, 0], sizes = [1, 128], strides = [1, 1]} : vector<1x512xf32> to vector<1x128xf32>
    %117 = arith.negf %116 : vector<1x128xf32>
    %118 = math.exp %117 : vector<1x128xf32>
    %cst_42 = arith.constant 1.000000e+00 : f32
    %119 = vector.broadcast %cst_42 : f32 to vector<1x128xf32>
    %120 = arith.addf %119, %118 : vector<1x128xf32>
    %121 = arith.divf %119, %120 : vector<1x128xf32>
    %122 = vector.extract_strided_slice %90 {offsets = [0, 128], sizes = [1, 128], strides = [1, 1]} : vector<1x512xf32> to vector<1x128xf32>
    %123 = arith.negf %122 : vector<1x128xf32>
    %124 = math.exp %123 : vector<1x128xf32>
    %cst_43 = arith.constant 1.000000e+00 : f32
    %125 = vector.broadcast %cst_43 : f32 to vector<1x128xf32>
    %126 = arith.addf %125, %124 : vector<1x128xf32>
    %127 = arith.divf %125, %126 : vector<1x128xf32>
    %128 = vector.extract_strided_slice %90 {offsets = [0, 256], sizes = [1, 128], strides = [1, 1]} : vector<1x512xf32> to vector<1x128xf32>
    %129 = math.tanh %128 : vector<1x128xf32>
    %130 = vector.extract_strided_slice %90 {offsets = [0, 384], sizes = [1, 128], strides = [1, 1]} : vector<1x512xf32> to vector<1x128xf32>
    %131 = arith.negf %130 : vector<1x128xf32>
    %132 = math.exp %131 : vector<1x128xf32>
    %cst_44 = arith.constant 1.000000e+00 : f32
    %133 = vector.broadcast %cst_44 : f32 to vector<1x128xf32>
    %134 = arith.addf %133, %132 : vector<1x128xf32>
    %135 = arith.divf %133, %134 : vector<1x128xf32>
    %136 = arith.mulf %127, %75 : vector<1x128xf32>
    %137 = arith.mulf %121, %129 : vector<1x128xf32>
    %138 = arith.addf %136, %137 : vector<1x128xf32>
    %139 = math.tanh %138 : vector<1x128xf32>
    %140 = arith.mulf %135, %139 : vector<1x128xf32>
    %141 = arith.index_cast %c1_i32 : i32 to index
    %c0_45 = arith.constant 0 : index
    %142 = vector.load %arg6[%141, %c0_45] : memref<8x256xf32, #tpu.memory_space<vmem>>, vector<1x128xf32>
    tpu.vector_store %arg6[%141, %c0_45], %115 {strides = array<i32>} : memref<8x256xf32, #tpu.memory_space<vmem>>, vector<1x128xf32>,
    %143 = arith.index_cast %82 : i32 to index
    %c128_46 = arith.constant 128 : index
    %144 = vector.load %arg6[%143, %c128_46] : memref<8x256xf32, #tpu.memory_space<vmem>>, vector<1x128xf32>
    tpu.vector_store %arg6[%143, %c128_46], %140 {strides = array<i32>} : memref<8x256xf32, #tpu.memory_space<vmem>>, vector<1x128xf32>,
    %c2_i32 = arith.constant 2 : i32
    %c7_i32_47 = arith.constant 7 : i32
    %145 = arith.subi %c7_i32_47, %c2_i32 : i32
    %146 = arith.index_cast %c2_i32 : i32 to index
    %c0_48 = arith.constant 0 : index
    %147 = vector.load %arg9[%146, %c0_48] : memref<8x1024xf32, #tpu.memory_space<vmem>>, vector<1x512xf32>
    %148 = arith.index_cast %145 : i32 to index
    %c512_49 = arith.constant 512 : index
    %149 = vector.load %arg9[%148, %c512_49] : memref<8x1024xf32, #tpu.memory_space<vmem>>, vector<1x512xf32>
    %cst_50 = arith.constant dense<0.000000e+00> : vector<1x512xf32>
    %150 = tpu.matmul %115, %8, %cst_50 {dimension_numbers = #tpu.dot_dimension_numbers<[1], [0], [0], [1], [0, 0, 1, 1], [], []>} : vector<1x128xf32>, vector<128x512xf32>, vector<1x512xf32> -> vector<1x512xf32>
    %151 = arith.addf %147, %150 : vector<1x512xf32>
    %cst_51 = arith.constant dense<0.000000e+00> : vector<1x512xf32>
    %152 = tpu.matmul %140, %10, %cst_51 {dimension_numbers = #tpu.dot_dimension_numbers<[1], [0], [0], [1], [0, 0, 1, 1], [], []>} : vector<1x128xf32>, vector<128x512xf32>, vector<1x512xf32> -> vector<1x512xf32>
    %153 = arith.addf %149, %152 : vector<1x512xf32>
    %154 = vector.extract_strided_slice %151 {offsets = [0, 0], sizes = [1, 128], strides = [1, 1]} : vector<1x512xf32> to vector<1x128xf32>
    %155 = arith.negf %154 : vector<1x128xf32>
    %156 = math.exp %155 : vector<1x128xf32>
    %cst_52 = arith.constant 1.000000e+00 : f32
    %157 = vector.broadcast %cst_52 : f32 to vector<1x128xf32>
    %158 = arith.addf %157, %156 : vector<1x128xf32>
    %159 = arith.divf %157, %158 : vector<1x128xf32>
    %160 = vector.extract_strided_slice %151 {offsets = [0, 128], sizes = [1, 128], strides = [1, 1]} : vector<1x512xf32> to vector<1x128xf32>
    %161 = arith.negf %160 : vector<1x128xf32>
    %162 = math.exp %161 : vector<1x128xf32>
    %cst_53 = arith.constant 1.000000e+00 : f32
    %163 = vector.broadcast %cst_53 : f32 to vector<1x128xf32>
    %164 = arith.addf %163, %162 : vector<1x128xf32>
    %165 = arith.divf %163, %164 : vector<1x128xf32>
    %166 = vector.extract_strided_slice %151 {offsets = [0, 256], sizes = [1, 128], strides = [1, 1]} : vector<1x512xf32> to vector<1x128xf32>
    %167 = math.tanh %166 : vector<1x128xf32>
    %168 = vector.extract_strided_slice %151 {offsets = [0, 384], sizes = [1, 128], strides = [1, 1]} : vector<1x512xf32> to vector<1x128xf32>
    %169 = arith.negf %168 : vector<1x128xf32>
    %170 = math.exp %169 : vector<1x128xf32>
    %cst_54 = arith.constant 1.000000e+00 : f32
    %171 = vector.broadcast %cst_54 : f32 to vector<1x128xf32>
    %172 = arith.addf %171, %170 : vector<1x128xf32>
    %173 = arith.divf %171, %172 : vector<1x128xf32>
    %174 = arith.mulf %165, %113 : vector<1x128xf32>
    %175 = arith.mulf %159, %167 : vector<1x128xf32>
    %176 = arith.addf %174, %175 : vector<1x128xf32>
    %177 = math.tanh %176 : vector<1x128xf32>
    %178 = arith.mulf %173, %177 : vector<1x128xf32>
    %179 = vector.extract_strided_slice %153 {offsets = [0, 0], sizes = [1, 128], strides = [1, 1]} : vector<1x512xf32> to vector<1x128xf32>
    %180 = arith.negf %179 : vector<1x128xf32>
    %181 = math.exp %180 : vector<1x128xf32>
    %cst_55 = arith.constant 1.000000e+00 : f32
    %182 = vector.broadcast %cst_55 : f32 to vector<1x128xf32>
    %183 = arith.addf %182, %181 : vector<1x128xf32>
    %184 = arith.divf %182, %183 : vector<1x128xf32>
    %185 = vector.extract_strided_slice %153 {offsets = [0, 128], sizes = [1, 128], strides = [1, 1]} : vector<1x512xf32> to vector<1x128xf32>
    %186 = arith.negf %185 : vector<1x128xf32>
    %187 = math.exp %186 : vector<1x128xf32>
    %cst_56 = arith.constant 1.000000e+00 : f32
    %188 = vector.broadcast %cst_56 : f32 to vector<1x128xf32>
    %189 = arith.addf %188, %187 : vector<1x128xf32>
    %190 = arith.divf %188, %189 : vector<1x128xf32>
    %191 = vector.extract_strided_slice %153 {offsets = [0, 256], sizes = [1, 128], strides = [1, 1]} : vector<1x512xf32> to vector<1x128xf32>
    %192 = math.tanh %191 : vector<1x128xf32>
    %193 = vector.extract_strided_slice %153 {offsets = [0, 384], sizes = [1, 128], strides = [1, 1]} : vector<1x512xf32> to vector<1x128xf32>
    %194 = arith.negf %193 : vector<1x128xf32>
    %195 = math.exp %194 : vector<1x128xf32>
    %cst_57 = arith.constant 1.000000e+00 : f32
    %196 = vector.broadcast %cst_57 : f32 to vector<1x128xf32>
    %197 = arith.addf %196, %195 : vector<1x128xf32>
    %198 = arith.divf %196, %197 : vector<1x128xf32>
    %199 = arith.mulf %190, %138 : vector<1x128xf32>
    %200 = arith.mulf %184, %192 : vector<1x128xf32>
    %201 = arith.addf %199, %200 : vector<1x128xf32>
    %202 = math.tanh %201 : vector<1x128xf32>
    %203 = arith.mulf %198, %202 : vector<1x128xf32>
    %204 = arith.index_cast %c2_i32 : i32 to index
    %c0_58 = arith.constant 0 : index
    %205 = vector.load %arg6[%204, %c0_58] : memref<8x256xf32, #tpu.memory_space<vmem>>, vector<1x128xf32>
    tpu.vector_store %arg6[%204, %c0_58], %178 {strides = array<i32>} : memref<8x256xf32, #tpu.memory_space<vmem>>, vector<1x128xf32>,
    %206 = arith.index_cast %145 : i32 to index
    %c128_59 = arith.constant 128 : index
    %207 = vector.load %arg6[%206, %c128_59] : memref<8x256xf32, #tpu.memory_space<vmem>>, vector<1x128xf32>
    tpu.vector_store %arg6[%206, %c128_59], %203 {strides = array<i32>} : memref<8x256xf32, #tpu.memory_space<vmem>>, vector<1x128xf32>,
    %c3_i32 = arith.constant 3 : i32
    %c7_i32_60 = arith.constant 7 : i32
    %208 = arith.subi %c7_i32_60, %c3_i32 : i32
    %209 = arith.index_cast %c3_i32 : i32 to index
    %c0_61 = arith.constant 0 : index
    %210 = vector.load %arg9[%209, %c0_61] : memref<8x1024xf32, #tpu.memory_space<vmem>>, vector<1x512xf32>
    %211 = arith.index_cast %208 : i32 to index
    %c512_62 = arith.constant 512 : index
    %212 = vector.load %arg9[%211, %c512_62] : memref<8x1024xf32, #tpu.memory_space<vmem>>, vector<1x512xf32>
    %cst_63 = arith.constant dense<0.000000e+00> : vector<1x512xf32>
    %213 = tpu.matmul %178, %8, %cst_63 {dimension_numbers = #tpu.dot_dimension_numbers<[1], [0], [0], [1], [0, 0, 1, 1], [], []>} : vector<1x128xf32>, vector<128x512xf32>, vector<1x512xf32> -> vector<1x512xf32>
    %214 = arith.addf %210, %213 : vector<1x512xf32>
    %cst_64 = arith.constant dense<0.000000e+00> : vector<1x512xf32>
    %215 = tpu.matmul %203, %10, %cst_64 {dimension_numbers = #tpu.dot_dimension_numbers<[1], [0], [0], [1], [0, 0, 1, 1], [], []>} : vector<1x128xf32>, vector<128x512xf32>, vector<1x512xf32> -> vector<1x512xf32>
    %216 = arith.addf %212, %215 : vector<1x512xf32>
    %217 = vector.extract_strided_slice %214 {offsets = [0, 0], sizes = [1, 128], strides = [1, 1]} : vector<1x512xf32> to vector<1x128xf32>
    %218 = arith.negf %217 : vector<1x128xf32>
    %219 = math.exp %218 : vector<1x128xf32>
    %cst_65 = arith.constant 1.000000e+00 : f32
    %220 = vector.broadcast %cst_65 : f32 to vector<1x128xf32>
    %221 = arith.addf %220, %219 : vector<1x128xf32>
    %222 = arith.divf %220, %221 : vector<1x128xf32>
    %223 = vector.extract_strided_slice %214 {offsets = [0, 128], sizes = [1, 128], strides = [1, 1]} : vector<1x512xf32> to vector<1x128xf32>
    %224 = arith.negf %223 : vector<1x128xf32>
    %225 = math.exp %224 : vector<1x128xf32>
    %cst_66 = arith.constant 1.000000e+00 : f32
    %226 = vector.broadcast %cst_66 : f32 to vector<1x128xf32>
    %227 = arith.addf %226, %225 : vector<1x128xf32>
    %228 = arith.divf %226, %227 : vector<1x128xf32>
    %229 = vector.extract_strided_slice %214 {offsets = [0, 256], sizes = [1, 128], strides = [1, 1]} : vector<1x512xf32> to vector<1x128xf32>
    %230 = math.tanh %229 : vector<1x128xf32>
    %231 = vector.extract_strided_slice %214 {offsets = [0, 384], sizes = [1, 128], strides = [1, 1]} : vector<1x512xf32> to vector<1x128xf32>
    %232 = arith.negf %231 : vector<1x128xf32>
    %233 = math.exp %232 : vector<1x128xf32>
    %cst_67 = arith.constant 1.000000e+00 : f32
    %234 = vector.broadcast %cst_67 : f32 to vector<1x128xf32>
    %235 = arith.addf %234, %233 : vector<1x128xf32>
    %236 = arith.divf %234, %235 : vector<1x128xf32>
    %237 = arith.mulf %228, %176 : vector<1x128xf32>
    %238 = arith.mulf %222, %230 : vector<1x128xf32>
    %239 = arith.addf %237, %238 : vector<1x128xf32>
    %240 = math.tanh %239 : vector<1x128xf32>
    %241 = arith.mulf %236, %240 : vector<1x128xf32>
    %242 = vector.extract_strided_slice %216 {offsets = [0, 0], sizes = [1, 128], strides = [1, 1]} : vector<1x512xf32> to vector<1x128xf32>
    %243 = arith.negf %242 : vector<1x128xf32>
    %244 = math.exp %243 : vector<1x128xf32>
    %cst_68 = arith.constant 1.000000e+00 : f32
    %245 = vector.broadcast %cst_68 : f32 to vector<1x128xf32>
    %246 = arith.addf %245, %244 : vector<1x128xf32>
    %247 = arith.divf %245, %246 : vector<1x128xf32>
    %248 = vector.extract_strided_slice %216 {offsets = [0, 128], sizes = [1, 128], strides = [1, 1]} : vector<1x512xf32> to vector<1x128xf32>
    %249 = arith.negf %248 : vector<1x128xf32>
    %250 = math.exp %249 : vector<1x128xf32>
    %cst_69 = arith.constant 1.000000e+00 : f32
    %251 = vector.broadcast %cst_69 : f32 to vector<1x128xf32>
    %252 = arith.addf %251, %250 : vector<1x128xf32>
    %253 = arith.divf %251, %252 : vector<1x128xf32>
    %254 = vector.extract_strided_slice %216 {offsets = [0, 256], sizes = [1, 128], strides = [1, 1]} : vector<1x512xf32> to vector<1x128xf32>
    %255 = math.tanh %254 : vector<1x128xf32>
    %256 = vector.extract_strided_slice %216 {offsets = [0, 384], sizes = [1, 128], strides = [1, 1]} : vector<1x512xf32> to vector<1x128xf32>
    %257 = arith.negf %256 : vector<1x128xf32>
    %258 = math.exp %257 : vector<1x128xf32>
    %cst_70 = arith.constant 1.000000e+00 : f32
    %259 = vector.broadcast %cst_70 : f32 to vector<1x128xf32>
    %260 = arith.addf %259, %258 : vector<1x128xf32>
    %261 = arith.divf %259, %260 : vector<1x128xf32>
    %262 = arith.mulf %253, %201 : vector<1x128xf32>
    %263 = arith.mulf %247, %255 : vector<1x128xf32>
    %264 = arith.addf %262, %263 : vector<1x128xf32>
    %265 = math.tanh %264 : vector<1x128xf32>
    %266 = arith.mulf %261, %265 : vector<1x128xf32>
    %267 = arith.index_cast %c3_i32 : i32 to index
    %c0_71 = arith.constant 0 : index
    %268 = vector.load %arg6[%267, %c0_71] : memref<8x256xf32, #tpu.memory_space<vmem>>, vector<1x128xf32>
    tpu.vector_store %arg6[%267, %c0_71], %241 {strides = array<i32>} : memref<8x256xf32, #tpu.memory_space<vmem>>, vector<1x128xf32>,
    %269 = arith.index_cast %208 : i32 to index
    %c128_72 = arith.constant 128 : index
    %270 = vector.load %arg6[%269, %c128_72] : memref<8x256xf32, #tpu.memory_space<vmem>>, vector<1x128xf32>
    tpu.vector_store %arg6[%269, %c128_72], %266 {strides = array<i32>} : memref<8x256xf32, #tpu.memory_space<vmem>>, vector<1x128xf32>,
    %c4_i32 = arith.constant 4 : i32
    %c7_i32_73 = arith.constant 7 : i32
    %271 = arith.subi %c7_i32_73, %c4_i32 : i32
    %272 = arith.index_cast %c4_i32 : i32 to index
    %c0_74 = arith.constant 0 : index
    %273 = vector.load %arg9[%272, %c0_74] : memref<8x1024xf32, #tpu.memory_space<vmem>>, vector<1x512xf32>
    %274 = arith.index_cast %271 : i32 to index
    %c512_75 = arith.constant 512 : index
    %275 = vector.load %arg9[%274, %c512_75] : memref<8x1024xf32, #tpu.memory_space<vmem>>, vector<1x512xf32>
    %cst_76 = arith.constant dense<0.000000e+00> : vector<1x512xf32>
    %276 = tpu.matmul %241, %8, %cst_76 {dimension_numbers = #tpu.dot_dimension_numbers<[1], [0], [0], [1], [0, 0, 1, 1], [], []>} : vector<1x128xf32>, vector<128x512xf32>, vector<1x512xf32> -> vector<1x512xf32>
    %277 = arith.addf %273, %276 : vector<1x512xf32>
    %cst_77 = arith.constant dense<0.000000e+00> : vector<1x512xf32>
    %278 = tpu.matmul %266, %10, %cst_77 {dimension_numbers = #tpu.dot_dimension_numbers<[1], [0], [0], [1], [0, 0, 1, 1], [], []>} : vector<1x128xf32>, vector<128x512xf32>, vector<1x512xf32> -> vector<1x512xf32>
    %279 = arith.addf %275, %278 : vector<1x512xf32>
    %280 = vector.extract_strided_slice %277 {offsets = [0, 0], sizes = [1, 128], strides = [1, 1]} : vector<1x512xf32> to vector<1x128xf32>
    %281 = arith.negf %280 : vector<1x128xf32>
    %282 = math.exp %281 : vector<1x128xf32>
    %cst_78 = arith.constant 1.000000e+00 : f32
    %283 = vector.broadcast %cst_78 : f32 to vector<1x128xf32>
    %284 = arith.addf %283, %282 : vector<1x128xf32>
    %285 = arith.divf %283, %284 : vector<1x128xf32>
    %286 = vector.extract_strided_slice %277 {offsets = [0, 128], sizes = [1, 128], strides = [1, 1]} : vector<1x512xf32> to vector<1x128xf32>
    %287 = arith.negf %286 : vector<1x128xf32>
    %288 = math.exp %287 : vector<1x128xf32>
    %cst_79 = arith.constant 1.000000e+00 : f32
    %289 = vector.broadcast %cst_79 : f32 to vector<1x128xf32>
    %290 = arith.addf %289, %288 : vector<1x128xf32>
    %291 = arith.divf %289, %290 : vector<1x128xf32>
    %292 = vector.extract_strided_slice %277 {offsets = [0, 256], sizes = [1, 128], strides = [1, 1]} : vector<1x512xf32> to vector<1x128xf32>
    %293 = math.tanh %292 : vector<1x128xf32>
    %294 = vector.extract_strided_slice %277 {offsets = [0, 384], sizes = [1, 128], strides = [1, 1]} : vector<1x512xf32> to vector<1x128xf32>
    %295 = arith.negf %294 : vector<1x128xf32>
    %296 = math.exp %295 : vector<1x128xf32>
    %cst_80 = arith.constant 1.000000e+00 : f32
    %297 = vector.broadcast %cst_80 : f32 to vector<1x128xf32>
    %298 = arith.addf %297, %296 : vector<1x128xf32>
    %299 = arith.divf %297, %298 : vector<1x128xf32>
    %300 = arith.mulf %291, %239 : vector<1x128xf32>
    %301 = arith.mulf %285, %293 : vector<1x128xf32>
    %302 = arith.addf %300, %301 : vector<1x128xf32>
    %303 = math.tanh %302 : vector<1x128xf32>
    %304 = arith.mulf %299, %303 : vector<1x128xf32>
    %305 = vector.extract_strided_slice %279 {offsets = [0, 0], sizes = [1, 128], strides = [1, 1]} : vector<1x512xf32> to vector<1x128xf32>
    %306 = arith.negf %305 : vector<1x128xf32>
    %307 = math.exp %306 : vector<1x128xf32>
    %cst_81 = arith.constant 1.000000e+00 : f32
    %308 = vector.broadcast %cst_81 : f32 to vector<1x128xf32>
    %309 = arith.addf %308, %307 : vector<1x128xf32>
    %310 = arith.divf %308, %309 : vector<1x128xf32>
    %311 = vector.extract_strided_slice %279 {offsets = [0, 128], sizes = [1, 128], strides = [1, 1]} : vector<1x512xf32> to vector<1x128xf32>
    %312 = arith.negf %311 : vector<1x128xf32>
    %313 = math.exp %312 : vector<1x128xf32>
    %cst_82 = arith.constant 1.000000e+00 : f32
    %314 = vector.broadcast %cst_82 : f32 to vector<1x128xf32>
    %315 = arith.addf %314, %313 : vector<1x128xf32>
    %316 = arith.divf %314, %315 : vector<1x128xf32>
    %317 = vector.extract_strided_slice %279 {offsets = [0, 256], sizes = [1, 128], strides = [1, 1]} : vector<1x512xf32> to vector<1x128xf32>
    %318 = math.tanh %317 : vector<1x128xf32>
    %319 = vector.extract_strided_slice %279 {offsets = [0, 384], sizes = [1, 128], strides = [1, 1]} : vector<1x512xf32> to vector<1x128xf32>
    %320 = arith.negf %319 : vector<1x128xf32>
    %321 = math.exp %320 : vector<1x128xf32>
    %cst_83 = arith.constant 1.000000e+00 : f32
    %322 = vector.broadcast %cst_83 : f32 to vector<1x128xf32>
    %323 = arith.addf %322, %321 : vector<1x128xf32>
    %324 = arith.divf %322, %323 : vector<1x128xf32>
    %325 = arith.mulf %316, %264 : vector<1x128xf32>
    %326 = arith.mulf %310, %318 : vector<1x128xf32>
    %327 = arith.addf %325, %326 : vector<1x128xf32>
    %328 = math.tanh %327 : vector<1x128xf32>
    %329 = arith.mulf %324, %328 : vector<1x128xf32>
    %330 = arith.index_cast %c4_i32 : i32 to index
    %c0_84 = arith.constant 0 : index
    %331 = vector.load %arg6[%330, %c0_84] : memref<8x256xf32, #tpu.memory_space<vmem>>, vector<1x128xf32>
    tpu.vector_store %arg6[%330, %c0_84], %304 {strides = array<i32>} : memref<8x256xf32, #tpu.memory_space<vmem>>, vector<1x128xf32>,
    %332 = arith.index_cast %271 : i32 to index
    %c128_85 = arith.constant 128 : index
    %333 = vector.load %arg6[%332, %c128_85] : memref<8x256xf32, #tpu.memory_space<vmem>>, vector<1x128xf32>
    tpu.vector_store %arg6[%332, %c128_85], %329 {strides = array<i32>} : memref<8x256xf32, #tpu.memory_space<vmem>>, vector<1x128xf32>,
    %c5_i32 = arith.constant 5 : i32
    %c7_i32_86 = arith.constant 7 : i32
    %334 = arith.subi %c7_i32_86, %c5_i32 : i32
    %335 = arith.index_cast %c5_i32 : i32 to index
    %c0_87 = arith.constant 0 : index
    %336 = vector.load %arg9[%335, %c0_87] : memref<8x1024xf32, #tpu.memory_space<vmem>>, vector<1x512xf32>
    %337 = arith.index_cast %334 : i32 to index
    %c512_88 = arith.constant 512 : index
    %338 = vector.load %arg9[%337, %c512_88] : memref<8x1024xf32, #tpu.memory_space<vmem>>, vector<1x512xf32>
    %cst_89 = arith.constant dense<0.000000e+00> : vector<1x512xf32>
    %339 = tpu.matmul %304, %8, %cst_89 {dimension_numbers = #tpu.dot_dimension_numbers<[1], [0], [0], [1], [0, 0, 1, 1], [], []>} : vector<1x128xf32>, vector<128x512xf32>, vector<1x512xf32> -> vector<1x512xf32>
    %340 = arith.addf %336, %339 : vector<1x512xf32>
    %cst_90 = arith.constant dense<0.000000e+00> : vector<1x512xf32>
    %341 = tpu.matmul %329, %10, %cst_90 {dimension_numbers = #tpu.dot_dimension_numbers<[1], [0], [0], [1], [0, 0, 1, 1], [], []>} : vector<1x128xf32>, vector<128x512xf32>, vector<1x512xf32> -> vector<1x512xf32>
    %342 = arith.addf %338, %341 : vector<1x512xf32>
    %343 = vector.extract_strided_slice %340 {offsets = [0, 0], sizes = [1, 128], strides = [1, 1]} : vector<1x512xf32> to vector<1x128xf32>
    %344 = arith.negf %343 : vector<1x128xf32>
    %345 = math.exp %344 : vector<1x128xf32>
    %cst_91 = arith.constant 1.000000e+00 : f32
    %346 = vector.broadcast %cst_91 : f32 to vector<1x128xf32>
    %347 = arith.addf %346, %345 : vector<1x128xf32>
    %348 = arith.divf %346, %347 : vector<1x128xf32>
    %349 = vector.extract_strided_slice %340 {offsets = [0, 128], sizes = [1, 128], strides = [1, 1]} : vector<1x512xf32> to vector<1x128xf32>
    %350 = arith.negf %349 : vector<1x128xf32>
    %351 = math.exp %350 : vector<1x128xf32>
    %cst_92 = arith.constant 1.000000e+00 : f32
    %352 = vector.broadcast %cst_92 : f32 to vector<1x128xf32>
    %353 = arith.addf %352, %351 : vector<1x128xf32>
    %354 = arith.divf %352, %353 : vector<1x128xf32>
    %355 = vector.extract_strided_slice %340 {offsets = [0, 256], sizes = [1, 128], strides = [1, 1]} : vector<1x512xf32> to vector<1x128xf32>
    %356 = math.tanh %355 : vector<1x128xf32>
    %357 = vector.extract_strided_slice %340 {offsets = [0, 384], sizes = [1, 128], strides = [1, 1]} : vector<1x512xf32> to vector<1x128xf32>
    %358 = arith.negf %357 : vector<1x128xf32>
    %359 = math.exp %358 : vector<1x128xf32>
    %cst_93 = arith.constant 1.000000e+00 : f32
    %360 = vector.broadcast %cst_93 : f32 to vector<1x128xf32>
    %361 = arith.addf %360, %359 : vector<1x128xf32>
    %362 = arith.divf %360, %361 : vector<1x128xf32>
    %363 = arith.mulf %354, %302 : vector<1x128xf32>
    %364 = arith.mulf %348, %356 : vector<1x128xf32>
    %365 = arith.addf %363, %364 : vector<1x128xf32>
    %366 = math.tanh %365 : vector<1x128xf32>
    %367 = arith.mulf %362, %366 : vector<1x128xf32>
    %368 = vector.extract_strided_slice %342 {offsets = [0, 0], sizes = [1, 128], strides = [1, 1]} : vector<1x512xf32> to vector<1x128xf32>
    %369 = arith.negf %368 : vector<1x128xf32>
    %370 = math.exp %369 : vector<1x128xf32>
    %cst_94 = arith.constant 1.000000e+00 : f32
    %371 = vector.broadcast %cst_94 : f32 to vector<1x128xf32>
    %372 = arith.addf %371, %370 : vector<1x128xf32>
    %373 = arith.divf %371, %372 : vector<1x128xf32>
    %374 = vector.extract_strided_slice %342 {offsets = [0, 128], sizes = [1, 128], strides = [1, 1]} : vector<1x512xf32> to vector<1x128xf32>
    %375 = arith.negf %374 : vector<1x128xf32>
    %376 = math.exp %375 : vector<1x128xf32>
    %cst_95 = arith.constant 1.000000e+00 : f32
    %377 = vector.broadcast %cst_95 : f32 to vector<1x128xf32>
    %378 = arith.addf %377, %376 : vector<1x128xf32>
    %379 = arith.divf %377, %378 : vector<1x128xf32>
    %380 = vector.extract_strided_slice %342 {offsets = [0, 256], sizes = [1, 128], strides = [1, 1]} : vector<1x512xf32> to vector<1x128xf32>
    %381 = math.tanh %380 : vector<1x128xf32>
    %382 = vector.extract_strided_slice %342 {offsets = [0, 384], sizes = [1, 128], strides = [1, 1]} : vector<1x512xf32> to vector<1x128xf32>
    %383 = arith.negf %382 : vector<1x128xf32>
    %384 = math.exp %383 : vector<1x128xf32>
    %cst_96 = arith.constant 1.000000e+00 : f32
    %385 = vector.broadcast %cst_96 : f32 to vector<1x128xf32>
    %386 = arith.addf %385, %384 : vector<1x128xf32>
    %387 = arith.divf %385, %386 : vector<1x128xf32>
    %388 = arith.mulf %379, %327 : vector<1x128xf32>
    %389 = arith.mulf %373, %381 : vector<1x128xf32>
    %390 = arith.addf %388, %389 : vector<1x128xf32>
    %391 = math.tanh %390 : vector<1x128xf32>
    %392 = arith.mulf %387, %391 : vector<1x128xf32>
    %393 = arith.index_cast %c5_i32 : i32 to index
    %c0_97 = arith.constant 0 : index
    %394 = vector.load %arg6[%393, %c0_97] : memref<8x256xf32, #tpu.memory_space<vmem>>, vector<1x128xf32>
    tpu.vector_store %arg6[%393, %c0_97], %367 {strides = array<i32>} : memref<8x256xf32, #tpu.memory_space<vmem>>, vector<1x128xf32>,
    %395 = arith.index_cast %334 : i32 to index
    %c128_98 = arith.constant 128 : index
    %396 = vector.load %arg6[%395, %c128_98] : memref<8x256xf32, #tpu.memory_space<vmem>>, vector<1x128xf32>
    tpu.vector_store %arg6[%395, %c128_98], %392 {strides = array<i32>} : memref<8x256xf32, #tpu.memory_space<vmem>>, vector<1x128xf32>,
    %c6_i32 = arith.constant 6 : i32
    %c7_i32_99 = arith.constant 7 : i32
    %397 = arith.subi %c7_i32_99, %c6_i32 : i32
    %398 = arith.index_cast %c6_i32 : i32 to index
    %c0_100 = arith.constant 0 : index
    %399 = vector.load %arg9[%398, %c0_100] : memref<8x1024xf32, #tpu.memory_space<vmem>>, vector<1x512xf32>
    %400 = arith.index_cast %397 : i32 to index
    %c512_101 = arith.constant 512 : index
    %401 = vector.load %arg9[%400, %c512_101] : memref<8x1024xf32, #tpu.memory_space<vmem>>, vector<1x512xf32>
    %cst_102 = arith.constant dense<0.000000e+00> : vector<1x512xf32>
    %402 = tpu.matmul %367, %8, %cst_102 {dimension_numbers = #tpu.dot_dimension_numbers<[1], [0], [0], [1], [0, 0, 1, 1], [], []>} : vector<1x128xf32>, vector<128x512xf32>, vector<1x512xf32> -> vector<1x512xf32>
    %403 = arith.addf %399, %402 : vector<1x512xf32>
    %cst_103 = arith.constant dense<0.000000e+00> : vector<1x512xf32>
    %404 = tpu.matmul %392, %10, %cst_103 {dimension_numbers = #tpu.dot_dimension_numbers<[1], [0], [0], [1], [0, 0, 1, 1], [], []>} : vector<1x128xf32>, vector<128x512xf32>, vector<1x512xf32> -> vector<1x512xf32>
    %405 = arith.addf %401, %404 : vector<1x512xf32>
    %406 = vector.extract_strided_slice %403 {offsets = [0, 0], sizes = [1, 128], strides = [1, 1]} : vector<1x512xf32> to vector<1x128xf32>
    %407 = arith.negf %406 : vector<1x128xf32>
    %408 = math.exp %407 : vector<1x128xf32>
    %cst_104 = arith.constant 1.000000e+00 : f32
    %409 = vector.broadcast %cst_104 : f32 to vector<1x128xf32>
    %410 = arith.addf %409, %408 : vector<1x128xf32>
    %411 = arith.divf %409, %410 : vector<1x128xf32>
    %412 = vector.extract_strided_slice %403 {offsets = [0, 128], sizes = [1, 128], strides = [1, 1]} : vector<1x512xf32> to vector<1x128xf32>
    %413 = arith.negf %412 : vector<1x128xf32>
    %414 = math.exp %413 : vector<1x128xf32>
    %cst_105 = arith.constant 1.000000e+00 : f32
    %415 = vector.broadcast %cst_105 : f32 to vector<1x128xf32>
    %416 = arith.addf %415, %414 : vector<1x128xf32>
    %417 = arith.divf %415, %416 : vector<1x128xf32>
    %418 = vector.extract_strided_slice %403 {offsets = [0, 256], sizes = [1, 128], strides = [1, 1]} : vector<1x512xf32> to vector<1x128xf32>
    %419 = math.tanh %418 : vector<1x128xf32>
    %420 = vector.extract_strided_slice %403 {offsets = [0, 384], sizes = [1, 128], strides = [1, 1]} : vector<1x512xf32> to vector<1x128xf32>
    %421 = arith.negf %420 : vector<1x128xf32>
    %422 = math.exp %421 : vector<1x128xf32>
    %cst_106 = arith.constant 1.000000e+00 : f32
    %423 = vector.broadcast %cst_106 : f32 to vector<1x128xf32>
    %424 = arith.addf %423, %422 : vector<1x128xf32>
    %425 = arith.divf %423, %424 : vector<1x128xf32>
    %426 = arith.mulf %417, %365 : vector<1x128xf32>
    %427 = arith.mulf %411, %419 : vector<1x128xf32>
    %428 = arith.addf %426, %427 : vector<1x128xf32>
    %429 = math.tanh %428 : vector<1x128xf32>
    %430 = arith.mulf %425, %429 : vector<1x128xf32>
    %431 = vector.extract_strided_slice %405 {offsets = [0, 0], sizes = [1, 128], strides = [1, 1]} : vector<1x512xf32> to vector<1x128xf32>
    %432 = arith.negf %431 : vector<1x128xf32>
    %433 = math.exp %432 : vector<1x128xf32>
    %cst_107 = arith.constant 1.000000e+00 : f32
    %434 = vector.broadcast %cst_107 : f32 to vector<1x128xf32>
    %435 = arith.addf %434, %433 : vector<1x128xf32>
    %436 = arith.divf %434, %435 : vector<1x128xf32>
    %437 = vector.extract_strided_slice %405 {offsets = [0, 128], sizes = [1, 128], strides = [1, 1]} : vector<1x512xf32> to vector<1x128xf32>
    %438 = arith.negf %437 : vector<1x128xf32>
    %439 = math.exp %438 : vector<1x128xf32>
    %cst_108 = arith.constant 1.000000e+00 : f32
    %440 = vector.broadcast %cst_108 : f32 to vector<1x128xf32>
    %441 = arith.addf %440, %439 : vector<1x128xf32>
    %442 = arith.divf %440, %441 : vector<1x128xf32>
    %443 = vector.extract_strided_slice %405 {offsets = [0, 256], sizes = [1, 128], strides = [1, 1]} : vector<1x512xf32> to vector<1x128xf32>
    %444 = math.tanh %443 : vector<1x128xf32>
    %445 = vector.extract_strided_slice %405 {offsets = [0, 384], sizes = [1, 128], strides = [1, 1]} : vector<1x512xf32> to vector<1x128xf32>
    %446 = arith.negf %445 : vector<1x128xf32>
    %447 = math.exp %446 : vector<1x128xf32>
    %cst_109 = arith.constant 1.000000e+00 : f32
    %448 = vector.broadcast %cst_109 : f32 to vector<1x128xf32>
    %449 = arith.addf %448, %447 : vector<1x128xf32>
    %450 = arith.divf %448, %449 : vector<1x128xf32>
    %451 = arith.mulf %442, %390 : vector<1x128xf32>
    %452 = arith.mulf %436, %444 : vector<1x128xf32>
    %453 = arith.addf %451, %452 : vector<1x128xf32>
    %454 = math.tanh %453 : vector<1x128xf32>
    %455 = arith.mulf %450, %454 : vector<1x128xf32>
    %456 = arith.index_cast %c6_i32 : i32 to index
    %c0_110 = arith.constant 0 : index
    %457 = vector.load %arg6[%456, %c0_110] : memref<8x256xf32, #tpu.memory_space<vmem>>, vector<1x128xf32>
    tpu.vector_store %arg6[%456, %c0_110], %430 {strides = array<i32>} : memref<8x256xf32, #tpu.memory_space<vmem>>, vector<1x128xf32>,
    %458 = arith.index_cast %397 : i32 to index
    %c128_111 = arith.constant 128 : index
    %459 = vector.load %arg6[%458, %c128_111] : memref<8x256xf32, #tpu.memory_space<vmem>>, vector<1x128xf32>
    tpu.vector_store %arg6[%458, %c128_111], %455 {strides = array<i32>} : memref<8x256xf32, #tpu.memory_space<vmem>>, vector<1x128xf32>,
    %c7_i32_112 = arith.constant 7 : i32
    %c7_i32_113 = arith.constant 7 : i32
    %460 = arith.subi %c7_i32_113, %c7_i32_112 : i32
    %461 = arith.index_cast %c7_i32_112 : i32 to index
    %c0_114 = arith.constant 0 : index
    %462 = vector.load %arg9[%461, %c0_114] : memref<8x1024xf32, #tpu.memory_space<vmem>>, vector<1x512xf32>
    %463 = arith.index_cast %460 : i32 to index
    %c512_115 = arith.constant 512 : index
    %464 = vector.load %arg9[%463, %c512_115] : memref<8x1024xf32, #tpu.memory_space<vmem>>, vector<1x512xf32>
    %cst_116 = arith.constant dense<0.000000e+00> : vector<1x512xf32>
    %465 = tpu.matmul %430, %8, %cst_116 {dimension_numbers = #tpu.dot_dimension_numbers<[1], [0], [0], [1], [0, 0, 1, 1], [], []>} : vector<1x128xf32>, vector<128x512xf32>, vector<1x512xf32> -> vector<1x512xf32>
    %466 = arith.addf %462, %465 : vector<1x512xf32>
    %cst_117 = arith.constant dense<0.000000e+00> : vector<1x512xf32>
    %467 = tpu.matmul %455, %10, %cst_117 {dimension_numbers = #tpu.dot_dimension_numbers<[1], [0], [0], [1], [0, 0, 1, 1], [], []>} : vector<1x128xf32>, vector<128x512xf32>, vector<1x512xf32> -> vector<1x512xf32>
    %468 = arith.addf %464, %467 : vector<1x512xf32>
    %469 = vector.extract_strided_slice %466 {offsets = [0, 0], sizes = [1, 128], strides = [1, 1]} : vector<1x512xf32> to vector<1x128xf32>
    %470 = arith.negf %469 : vector<1x128xf32>
    %471 = math.exp %470 : vector<1x128xf32>
    %cst_118 = arith.constant 1.000000e+00 : f32
    %472 = vector.broadcast %cst_118 : f32 to vector<1x128xf32>
    %473 = arith.addf %472, %471 : vector<1x128xf32>
    %474 = arith.divf %472, %473 : vector<1x128xf32>
    %475 = vector.extract_strided_slice %466 {offsets = [0, 128], sizes = [1, 128], strides = [1, 1]} : vector<1x512xf32> to vector<1x128xf32>
    %476 = arith.negf %475 : vector<1x128xf32>
    %477 = math.exp %476 : vector<1x128xf32>
    %cst_119 = arith.constant 1.000000e+00 : f32
    %478 = vector.broadcast %cst_119 : f32 to vector<1x128xf32>
    %479 = arith.addf %478, %477 : vector<1x128xf32>
    %480 = arith.divf %478, %479 : vector<1x128xf32>
    %481 = vector.extract_strided_slice %466 {offsets = [0, 256], sizes = [1, 128], strides = [1, 1]} : vector<1x512xf32> to vector<1x128xf32>
    %482 = math.tanh %481 : vector<1x128xf32>
    %483 = vector.extract_strided_slice %466 {offsets = [0, 384], sizes = [1, 128], strides = [1, 1]} : vector<1x512xf32> to vector<1x128xf32>
    %484 = arith.negf %483 : vector<1x128xf32>
    %485 = math.exp %484 : vector<1x128xf32>
    %cst_120 = arith.constant 1.000000e+00 : f32
    %486 = vector.broadcast %cst_120 : f32 to vector<1x128xf32>
    %487 = arith.addf %486, %485 : vector<1x128xf32>
    %488 = arith.divf %486, %487 : vector<1x128xf32>
    %489 = arith.mulf %480, %428 : vector<1x128xf32>
    %490 = arith.mulf %474, %482 : vector<1x128xf32>
    %491 = arith.addf %489, %490 : vector<1x128xf32>
    %492 = math.tanh %491 : vector<1x128xf32>
    %493 = arith.mulf %488, %492 : vector<1x128xf32>
    %494 = vector.extract_strided_slice %468 {offsets = [0, 0], sizes = [1, 128], strides = [1, 1]} : vector<1x512xf32> to vector<1x128xf32>
    %495 = arith.negf %494 : vector<1x128xf32>
    %496 = math.exp %495 : vector<1x128xf32>
    %cst_121 = arith.constant 1.000000e+00 : f32
    %497 = vector.broadcast %cst_121 : f32 to vector<1x128xf32>
    %498 = arith.addf %497, %496 : vector<1x128xf32>
    %499 = arith.divf %497, %498 : vector<1x128xf32>
    %500 = vector.extract_strided_slice %468 {offsets = [0, 128], sizes = [1, 128], strides = [1, 1]} : vector<1x512xf32> to vector<1x128xf32>
    %501 = arith.negf %500 : vector<1x128xf32>
    %502 = math.exp %501 : vector<1x128xf32>
    %cst_122 = arith.constant 1.000000e+00 : f32
    %503 = vector.broadcast %cst_122 : f32 to vector<1x128xf32>
    %504 = arith.addf %503, %502 : vector<1x128xf32>
    %505 = arith.divf %503, %504 : vector<1x128xf32>
    %506 = vector.extract_strided_slice %468 {offsets = [0, 256], sizes = [1, 128], strides = [1, 1]} : vector<1x512xf32> to vector<1x128xf32>
    %507 = math.tanh %506 : vector<1x128xf32>
    %508 = vector.extract_strided_slice %468 {offsets = [0, 384], sizes = [1, 128], strides = [1, 1]} : vector<1x512xf32> to vector<1x128xf32>
    %509 = arith.negf %508 : vector<1x128xf32>
    %510 = math.exp %509 : vector<1x128xf32>
    %cst_123 = arith.constant 1.000000e+00 : f32
    %511 = vector.broadcast %cst_123 : f32 to vector<1x128xf32>
    %512 = arith.addf %511, %510 : vector<1x128xf32>
    %513 = arith.divf %511, %512 : vector<1x128xf32>
    %514 = arith.mulf %505, %453 : vector<1x128xf32>
    %515 = arith.mulf %499, %507 : vector<1x128xf32>
    %516 = arith.addf %514, %515 : vector<1x128xf32>
    %517 = math.tanh %516 : vector<1x128xf32>
    %518 = arith.mulf %513, %517 : vector<1x128xf32>
    %519 = arith.index_cast %c7_i32_112 : i32 to index
    %c0_124 = arith.constant 0 : index
    %520 = vector.load %arg6[%519, %c0_124] : memref<8x256xf32, #tpu.memory_space<vmem>>, vector<1x128xf32>
    tpu.vector_store %arg6[%519, %c0_124], %493 {strides = array<i32>} : memref<8x256xf32, #tpu.memory_space<vmem>>, vector<1x128xf32>,
    %521 = arith.index_cast %460 : i32 to index
    %c128_125 = arith.constant 128 : index
    %522 = vector.load %arg6[%521, %c128_125] : memref<8x256xf32, #tpu.memory_space<vmem>>, vector<1x128xf32>
    tpu.vector_store %arg6[%521, %c128_125], %518 {strides = array<i32>} : memref<8x256xf32, #tpu.memory_space<vmem>>, vector<1x128xf32>,
    %c8_i32 = arith.constant 8 : i32
    %c0_126 = arith.constant 0 : index
    %c0_127 = arith.constant 0 : index
    %c0_128 = arith.constant 0 : index
    %523 = vector.load %arg7[%c0_126, %c0_127, %c0_128] : memref<2x1x128xf32, #tpu.memory_space<vmem>>, vector<1x1x128xf32>
    %524 = vector.shape_cast %523 : vector<1x1x128xf32> to vector<1x128xf32>
    %525 = vector.shape_cast %493 : vector<1x128xf32> to vector<1x1x128xf32>
    tpu.vector_store %arg7[%c0_126, %c0_127, %c0_128], %525 {strides = array<i32>} : memref<2x1x128xf32, #tpu.memory_space<vmem>>, vector<1x1x128xf32>,
    %c0_129 = arith.constant 0 : index
    %c0_130 = arith.constant 0 : index
    %c0_131 = arith.constant 0 : index
    %526 = vector.load %arg8[%c0_129, %c0_130, %c0_131] : memref<2x1x128xf32, #tpu.memory_space<vmem>>, vector<1x1x128xf32>
    %527 = vector.shape_cast %526 : vector<1x1x128xf32> to vector<1x128xf32>
    %528 = vector.shape_cast %491 : vector<1x128xf32> to vector<1x1x128xf32>
    tpu.vector_store %arg8[%c0_129, %c0_130, %c0_131], %528 {strides = array<i32>} : memref<2x1x128xf32, #tpu.memory_space<vmem>>, vector<1x1x128xf32>,
    %c1_132 = arith.constant 1 : index
    %c0_133 = arith.constant 0 : index
    %c0_134 = arith.constant 0 : index
    %529 = vector.load %arg7[%c1_132, %c0_133, %c0_134] : memref<2x1x128xf32, #tpu.memory_space<vmem>>, vector<1x1x128xf32>
    %530 = vector.shape_cast %529 : vector<1x1x128xf32> to vector<1x128xf32>
    %531 = vector.shape_cast %518 : vector<1x128xf32> to vector<1x1x128xf32>
    tpu.vector_store %arg7[%c1_132, %c0_133, %c0_134], %531 {strides = array<i32>} : memref<2x1x128xf32, #tpu.memory_space<vmem>>, vector<1x1x128xf32>,
    %c1_135 = arith.constant 1 : index
    %c0_136 = arith.constant 0 : index
    %c0_137 = arith.constant 0 : index
    %532 = vector.load %arg8[%c1_135, %c0_136, %c0_137] : memref<2x1x128xf32, #tpu.memory_space<vmem>>, vector<1x1x128xf32>
    %533 = vector.shape_cast %532 : vector<1x1x128xf32> to vector<1x128xf32>
    %534 = vector.shape_cast %516 : vector<1x128xf32> to vector<1x1x128xf32>
    tpu.vector_store %arg8[%c1_135, %c0_136, %c0_137], %534 {strides = array<i32>} : memref<2x1x128xf32, #tpu.memory_space<vmem>>, vector<1x1x128xf32>,
    return
  }
}

</mosaic_0001>

<bundles_post_ra>
// kernel: tpu_custom_call.1
= control target key start
LH: loop header
LB: loop body
LE: loop exit
PB: predicated region body
PF: predicated region fallthrough
CT: control target
= control target key end

     0   :  { %14 = vsyncpa [#allocation4], 0  ;;  %s6409_s0 = inlined_call_operand.hbm [shape: f32[8,16], index: 0, kind: input, shape index: {}]   ;;  %s6410_s1 = inlined_call_operand.hbm [shape: f32[16,1024], index: 1, kind: input, shape index: {}]   ;;  %s6411_s2 = inlined_call_operand.hbm [shape: f32[1,1024], index: 2, kind: input, shape index: {}]   ;;  %s6412_s3 = inlined_call_operand.hbm [shape: f32[2,128,512], index: 3, kind: input, shape index: {}]   ;;  %s6413_s4 = inlined_call_operand.vmem [shape: f32[2,1,128], index: 4, kind: input, shape index: {}]   ;;  %s6414_s5 = inlined_call_operand.vmem [shape: f32[2,1,128], index: 5, kind: input, shape index: {}]   ;;  %s6415_s6 = inlined_call_operand.hbm [shape: f32[8,256], index: 6, kind: output, shape index: {0}]   ;;  %s6416_s7 = inlined_call_operand.hbm [shape: f32[2,1,128], index: 7, kind: output, shape index: {1}]   ;;  %s6417_s8 = inlined_call_operand.hbm [shape: f32[2,1,128], index: 8, kind: output, shape index: {2}]  }
   0x1   :  { %15 = vsyncpa [#allocation7], 0 }
   0x2   :  { %16 = vsyncpa [#allocation10], 0 }
   0x3   :  { %17 = vsyncpa [#allocation5], 0 }
   0x4   :  { %18 = vsyncpa [#allocation13], 0  ;;  %s5447_s27 = smov [#allocation6]   ;;  %s5283_s9 = scalar_lea.hbm %s6410_s1, 2048 }
   0x5   :  { %s34_s28 = sshll.u32 %s5447_s27, 4  ;;  %p5284_p0 = scmp.ne.s32.totalorder %s6410_s1, %s5283_s9  ;;  %s35_s28 = int_to_ptr.vmem [resolvable:$true] %s34_s28 }
   0x6   :  { %p5287_p1 = scmp.lt.u32.totalorder %s5283_s9, %s6410_s1 }
   0x8   :  { %p5289_p2 = pnand %p5287_p1, %p5284_p0 }
   0xa   :  { %5292 = shalt.err (!%p5289_p2)
}
   0xb   :  { %s5293_s14 = scalar_lea.vmem %s35_s28, 2048  ;;  %p5298_p4 = scmp.lt.s32.totalorder %s35_s28, %s35_s28 }
   0xc   :  { %p5294_p3 = scmp.ne.s32.totalorder %s35_s28, %s5293_s14  ;;  %p5299_p5 = scmp.lt.s32.totalorder %s5293_s14, %s5293_s14 }
   0xe   :  { %p5300_p6 = por %p5299_p5, %p5298_p4 }
  0x10   :  { %p5301_p7 = pnand %p5300_p6, %p5294_p3 }
  0x12   :  { %5304 = shalt.err (!%p5301_p7)
}
  0x13   :  { %s5448_s15 = smov 1024   ;;  %s5449_s16 = smov 64  }
  0x14   :  { %40 = dma.hbm_to_vmem [thread:$0]  %s6410_s1, 2048, %s35_s28, [#allocation7], %s5448_s15, %s5448_s15, %s5449_s16  }
  0x15   :  { %s5450_s19 = smov [#allocation3]   ;;  %s5451_s21 = smov [#allocation8]  }
  0x16   :  { %s25_s20 = sshll.u32 %s5450_s19, 4  ;;  %s47_s22 = sshll.u32 %s5451_s21, 4  ;;  %s26_s20 = int_to_ptr.vmem [resolvable:$true] %s25_s20  ;;  %s48_s22 = int_to_ptr.vmem [resolvable:$true] %s47_s22 }
  0x17   :  { %s5305_s25 = scalar_lea.hbm %s6409_s0, 128 }
  0x18   :  { %p5306_p8 = scmp.ne.s32.totalorder %s6409_s0, %s5305_s25  ;;  %p5309_p9 = scmp.lt.u32.totalorder %s5305_s25, %s6409_s0 }
  0x1a   :  { %p5311_p10 = pnand %p5309_p9, %p5306_p8 }
  0x1c   :  { %5314 = shalt.err (!%p5311_p10)
}
  0x1d   :  { %s5315_s1 = scalar_lea.vmem %s26_s20, 128  ;;  %p5320_p12 = scmp.lt.s32.totalorder %s26_s20, %s26_s20 }
  0x1e   :  { %p5316_p11 = scmp.ne.s32.totalorder %s26_s20, %s5315_s1  ;;  %p5321_p13 = scmp.lt.s32.totalorder %s5315_s1, %s5315_s1 }
  0x20   :  { %p5322_p0 = por %p5321_p13, %p5320_p12 }
  0x22   :  { %p5323_p1 = pnand %p5322_p0, %p5316_p11 }
  0x24   :  { %5326 = shalt.err (!%p5323_p1)
}
  0x25   :  { %28 = dma.hbm_to_vmem [thread:$0]  %s6409_s0, 128, %s26_s20, [#allocation4]  }
  0x26   :  { %s5327_s12 = scalar_lea.hbm %s6411_s2, 128 }
  0x27   :  { %p5328_p2 = scmp.ne.s32.totalorder %s6411_s2, %s5327_s12  ;;  %p5331_p3 = scmp.lt.u32.totalorder %s5327_s12, %s6411_s2 }
  0x29   :  { %p5333_p4 = pnand %p5331_p3, %p5328_p2 }
  0x2b   :  { %5336 = shalt.err (!%p5333_p4)
}
  0x2c   :  { %s5337_s17 = scalar_lea.vmem %s48_s22, 128  ;;  %p5342_p6 = scmp.lt.s32.totalorder %s48_s22, %s48_s22 }
  0x2d   :  { %p5338_p5 = scmp.ne.s32.totalorder %s48_s22, %s5337_s17  ;;  %p5343_p7 = scmp.lt.s32.totalorder %s5337_s17, %s5337_s17 }
  0x2f   :  { %p5344_p8 = por %p5343_p7, %p5342_p6 }
  0x31   :  { %p5345_p9 = pnand %p5344_p8, %p5338_p5 }
  0x33   :  { %5348 = shalt.err (!%p5345_p9)
}
  0x34   :  { %50 = dma.hbm_to_vmem [thread:$0]  %s6411_s2, 128, %s48_s22, [#allocation7]  }
  0x35   :  { %s5452_s19 = smov [#allocation9]   ;;  %s5349_s24 = scalar_lea.hbm %s6412_s3, 16384 }
  0x36   :  { %s56_s20 = sshll.u32 %s5452_s19, 4  ;;  %p5350_p10 = scmp.ne.s32.totalorder %s6412_s3, %s5349_s24  ;;  %s57_s20 = int_to_ptr.vmem [resolvable:$true] %s56_s20 }
  0x37   :  { %p5353_p11 = scmp.lt.u32.totalorder %s5349_s24, %s6412_s3 }
  0x39   :  { %p5355_p12 = pnand %p5353_p11, %p5350_p10 }
  0x3b   :  { %5358 = shalt.err (!%p5355_p12)
}
  0x3c   :  { %s5359_s30 = scalar_lea.vmem %s57_s20, 16384  ;;  %p5364_p0 = scmp.lt.s32.totalorder %s57_s20, %s57_s20 }
  0x3d   :  { %p5360_p13 = scmp.ne.s32.totalorder %s57_s20, %s5359_s30  ;;  %p5365_p1 = scmp.lt.s32.totalorder %s5359_s30, %s5359_s30 }
  0x3f   :  { %p5366_p2 = por %p5365_p1, %p5364_p0 }
  0x41   :  { %p5367_p3 = pnand %p5366_p2, %p5360_p13 }
  0x43   :  { %5370 = shalt.err (!%p5367_p3)
}
  0x44   :  { %s5453_s2 = smov 512   ;;  %s5454_s22 = smov 32  }
  0x45   :  { %62 = dma.hbm_to_vmem [thread:$0]  %s6412_s3, 16384, %s57_s20, [#allocation10], %s5453_s2, %s5453_s2, %s5454_s22  }
  0x46   :  { %5437 = dma.done.wait [#allocation4], 128  }
  0x47   :  { %5438 = vsyncadd [#allocation4], 4294967168 }
  0x48   :  { %5439 = dma.done.wait [#allocation7], 2176  }
  0x49   :  { %5440 = vsyncadd [#allocation7], 4294965120 }
  0x4a   :  { %5441 = dma.done.wait [#allocation10], 16384  }
  0x4b   :  { %5442 = vsyncadd [#allocation10], 4294950912  ;;  %v6418_v0 = vmov 0.0   ;;  %v81_v1 = vld [vmem:[#allocation6 + $0x8] sm:$0xff]  ;;  %v83_v3 = vld [vmem:[#allocation6 + $0x18] sm:$0xff]  ;;  %vm138_vm0 = vcmask 130048  }
  0x4c   :  { %206 = vmatprep.mubr.f32.mxu0 %v6418_v0  ;;  %277 = vmatprep.mubr.f32.mxu1 %v6418_v0  ;;  %v89_v2 = vld [vmem:[#allocation6 + $0x48] sm:$0xff]  ;;  %v91_v5 = vld [vmem:[#allocation6 + $0x58] sm:$0xff]  ;;  %v80_v6 = vld [vmem:[#allocation6] sm:$0xff]  ;;  %s5458_s16 = smov [#allocation11]   ;;  %s5459_s0 = smov [#allocation14]  }
  0x4d   :  { %v3972_v4 = vpack.c.bf16 %v89_v2, %v81_v1  ;;  %v88_v7 = vld [vmem:[#allocation6 + $0x40] sm:$0xff]  ;;  %v3976_v8 = vpack.c.bf16 %v91_v5, %v83_v3  ;;  %v82_v10 = vld [vmem:[#allocation6 + $0x10] sm:$0xff]  ;;  %v79_v12 = vld [vmem:[#allocation3] sm:$0xff]  ;;  %s3876_s17 = sshll.u32 %s5458_s16, 4  ;;  %s3897_s18 = sshll.u32 %s5459_s0, 4  ;;  %s6353_s17 = int_to_ptr.vmem [resolvable:$true] %s3876_s17  ;;  %s6355_s18 = int_to_ptr.vmem [resolvable:$true] %s3897_s18 }
  0x4e   :  { %v3974_v9 = vpack.c.bf16 %v88_v7, %v80_v6  ;;  %v90_v11 = vld [vmem:[#allocation6 + $0x50] sm:$0xff]  ;;  %v85_v14 = vld [vmem:[#allocation6 + $0x28] sm:$0xff]  ;;  %v87_v16 = vld [vmem:[#allocation6 + $0x38] sm:$0xff] }
  0x4f   :  { %3973 = vmatprep.subr.bf16.mxu0 %v3972_v4  ;;  %v3978_v13 = vpack.c.bf16 %v90_v11, %v82_v10  ;;  %v93_v15 = vld [vmem:[#allocation6 + $0x68] sm:$0xff]  ;;  %3977 = vmatprep.subr.bf16.mxu1 %v3976_v8  ;;  %v95_v18 = vld [vmem:[#allocation6 + $0x78] sm:$0xff]  ;;  %v84_v19 = vld [vmem:[#allocation6 + $0x20] sm:$0xff] }
  0x50   :  { %3975 = vmatpush1.bf16.msra.mxu0 %v3974_v9  ;;  %v3980_v17 = vpack.c.bf16 %v93_v15, %v85_v14  ;;  %v92_v20 = vld [vmem:[#allocation6 + $0x60] sm:$0xff]  ;;  %v3984_v21 = vpack.c.bf16 %v95_v18, %v87_v16  ;;  %v86_v23 = vld [vmem:[#allocation6 + $0x30] sm:$0xff]  ;;  %v434_v32 = vld [vmem:[#allocation9] sm:$0xff] }
  0x51   :  { %3979 = vmatpush1.bf16.msra.mxu1 %v3978_v13  ;;  %v3982_v22 = vpack.c.bf16 %v92_v20, %v84_v19  ;;  %v94_v24 = vld [vmem:[#allocation6 + $0x70] sm:$0xff]  ;;  %v437_v28 = vld [vmem:[#allocation9 + $0x18] sm:$0xff]  ;;  %v438_v33 = vld [vmem:[#allocation9 + $0x20] sm:$0xff] }
  0x52   :  { %v435_v25 = vld [vmem:[#allocation9 + $0x8] sm:$0xff]  ;;  %3981 = vmatprep.subr.bf16.mxu0 %v3980_v17  ;;  %v3986_v26 = vpack.c.bf16 %v94_v24, %v86_v23  ;;  %v441_v29 = vld [vmem:[#allocation9 + $0x38] sm:$0xff]  ;;  %3985 = vmatprep.subr.bf16.mxu1 %v3984_v21  ;;  %v436_v34 = vld [vmem:[#allocation9 + $0x10] sm:$0xff]  ;;  %v5563_v35 = vpack.c.bf16 %v438_v33, %v434_v32 }
  0x53   :  { %v439_v27 = vld [vmem:[#allocation9 + $0x28] sm:$0xff]  ;;  %3918 = vmatmul.mubr.msk.f32.vlgmr.msra.gmra.mrb[0].mxu0 %vm138_vm0, %v79_v12  ;;  %v5560_v31 = vpack.c.bf16 %v441_v29, %v437_v28  ;;  %v440_v36 = vld [vmem:[#allocation9 + $0x30] sm:$0xff]  ;;  %v445_v41 = vld [vmem:[#allocation9 + $0x58] sm:$0xff] }
  0x54   :  { %v5558_v30 = vpack.c.bf16 %v439_v27, %v435_v25  ;;  %3919 = vmatmul.mubr.msk.f32.vlgmr.msra.gmra.mrb[0].mxu1 %vm138_vm0, %v79_v12  ;;  %3983 = vmatpush1.bf16.msra.mxu0 %v3982_v22  ;;  %v443_v37 = vld [vmem:[#allocation9 + $0x48] sm:$0xff]  ;;  %v5566_v39 = vpack.c.bf16 %v440_v36, %v436_v34  ;;  %v449_v42 = vld [vmem:[#allocation9 + $0x78] sm:$0xff]  ;;  %v442_v43 = vld [vmem:[#allocation9 + $0x40] sm:$0xff] }
  0x55   :  { %v447_v38 = vld [vmem:[#allocation9 + $0x68] sm:$0xff]  ;;  %3987 = vmatpush1.bf16.msra.mxu1 %v3986_v26  ;;  %348 = vmatprep.mubr.f32.mxu0 %v6418_v0  ;;  %v5572_v44 = vpack.c.bf16 %v449_v42, %v445_v41  ;;  %v446_v45 = vld [vmem:[#allocation9 + $0x60] sm:$0xff]  ;;  %v444_v46 = vld [vmem:[#allocation9 + $0x50] sm:$0xff] }
  0x56   :  { %v5568_v40 = vpack.c.bf16 %v447_v38, %v443_v37  ;;  %419 = vmatprep.mubr.f32.mxu1 %v6418_v0  ;;  %3989 = vmatprep.subr.bf16.mxu0 %v5558_v30  ;;  %v448_v47 = vld [vmem:[#allocation9 + $0x70] sm:$0xff]  ;;  %v451_v48 = vld [vmem:[#allocation9 + $0x88] sm:$0xff]  ;;  %v453_v50 = vld [vmem:[#allocation9 + $0x98] sm:$0xff]  ;;  %v5578_v51 = vpack.c.bf16 %v446_v45, %v442_v43 }
  0x57   :  { %3920 = vmatmul.mubr.msk.f32.vlgmr.msra.gmra.mrb[2].mxu0 %vm138_vm0, %v79_v12  ;;  %4021 = vmatprep.subr.bf16.mxu1 %v5560_v31  ;;  %v455_v49 = vld [vmem:[#allocation9 + $0xa8] sm:$0xff]  ;;  %v457_v52 = vld [vmem:[#allocation9 + $0xb8] sm:$0xff]  ;;  %v5582_v53 = vpack.c.bf16 %v448_v47, %v444_v46  ;;  %v450_v55 = vld [vmem:[#allocation9 + $0x80] sm:$0xff] }
  0x58   :  { %3921 = vmatmul.mubr.msk.f32.vlgmr.msra.gmra.mrb[2].mxu1 %vm138_vm0, %v79_v12  ;;  %3991 = vmatpush1.bf16.msra.mxu0 %v5563_v35  ;;  %v5584_v54 = vpack.c.bf16 %v455_v49, %v451_v48  ;;  %v454_v56 = vld [vmem:[#allocation9 + $0xa0] sm:$0xff]  ;;  %v452_v57 = vld [vmem:[#allocation9 + $0x90] sm:$0xff]  ;;  %v5587_v58 = vpack.c.bf16 %v457_v52, %v453_v50  ;;  %v459_v60 = vld [vmem:[#allocation9 + $0xc8] sm:$0xff] }
  0x59   :  { %4023 = vmatpush1.bf16.msra.mxu1 %v5566_v39  ;;  %3993 = vmatprep.subr.bf16.mxu0 %v5568_v40  ;;  %v456_v59 = vld [vmem:[#allocation9 + $0xb0] sm:$0xff]  ;;  %v463_v61 = vld [vmem:[#allocation9 + $0xe8] sm:$0xff]  ;;  %v461_v62 = vld [vmem:[#allocation9 + $0xd8] sm:$0xff]  ;;  %v5592_v1 = vpack.c.bf16 %v454_v56, %v450_v55 }
  0x5a   :  { %4025 = vmatprep.subr.bf16.mxu1 %v5572_v44  ;;  %636 = vmatprep.mubr.f32.mxu0 %v6418_v0  ;;  %v465_v63 = vld [vmem:[#allocation9 + $0xf8] sm:$0xff]  ;;  %v5596_v2 = vpack.c.bf16 %v456_v59, %v452_v57  ;;  %v5598_v3 = vpack.c.bf16 %v463_v61, %v459_v60  ;;  %v458_v4 = vld [vmem:[#allocation9 + $0xc0] sm:$0xff]  ;;  %v460_v6 = vld [vmem:[#allocation9 + $0xd0] sm:$0xff] }
  0x5b   :  { %707 = vmatprep.mubr.f32.mxu1 %v6418_v0  ;;  %6488 = vst [vmem:[#allocation20_spill] sm:$0xff] %v5592_v1  ;;  %v462_v5 = vld [vmem:[#allocation9 + $0xe0] sm:$0xff]  ;;  %v5601_v7 = vpack.c.bf16 %v465_v63, %v461_v62  ;;  %v464_v8 = vld [vmem:[#allocation9 + $0xf0] sm:$0xff]  ;;  %v467_v9 = vld [vmem:[#allocation9 + $0x108] sm:$0xff] }
  0x5c   :  { %3995 = vmatpush1.bf16.msra.mxu0 %v5578_v51  ;;  %6489 = vst [vmem:[#allocation21_spill] sm:$0xff] %v5596_v2  ;;  %6490 = vst [vmem:[#allocation22_spill] sm:$0xff] %v5598_v3  ;;  %v471_v10 = vld [vmem:[#allocation9 + $0x128] sm:$0xff]  ;;  %v469_v11 = vld [vmem:[#allocation9 + $0x118] sm:$0xff]  ;;  %v5604_v13 = vpack.c.bf16 %v462_v5, %v458_v4  ;;  %v5608_v14 = vpack.c.bf16 %v464_v8, %v460_v6 }
  0x5d   :  { %4027 = vmatpush1.bf16.msra.mxu1 %v5582_v53  ;;  %3997 = vmatprep.subr.bf16.mxu0 %v5584_v54  ;;  %6491 = vst [vmem:[#allocation23_spill] sm:$0xff] %v5601_v7  ;;  %v473_v12 = vld [vmem:[#allocation9 + $0x138] sm:$0xff]  ;;  %v5610_v15 = vpack.c.bf16 %v471_v10, %v467_v9  ;;  %v466_v16 = vld [vmem:[#allocation9 + $0x100] sm:$0xff]  ;;  %v468_v18 = vld [vmem:[#allocation9 + $0x110] sm:$0xff] }
  0x5e   :  { %4029 = vmatprep.subr.bf16.mxu1 %v5587_v58  ;;  %6492 = vst [vmem:[#allocation24_spill] sm:$0xff] %v5604_v13  ;;  %6493 = vst [vmem:[#allocation25_spill] sm:$0xff] %v5608_v14  ;;  %v470_v17 = vld [vmem:[#allocation9 + $0x120] sm:$0xff]  ;;  %v5613_v19 = vpack.c.bf16 %v473_v12, %v469_v11  ;;  %v472_v20 = vld [vmem:[#allocation9 + $0x130] sm:$0xff] }
  0x5f   :  { %6494 = vst [vmem:[#allocation26_spill] sm:$0xff] %v5610_v15  ;;  %v475_v21 = vld [vmem:[#allocation9 + $0x148] sm:$0xff]  ;;  %v477_v23 = vld [vmem:[#allocation9 + $0x158] sm:$0xff]  ;;  %v5616_v25 = vpack.c.bf16 %v470_v17, %v466_v16  ;;  %v5620_v26 = vpack.c.bf16 %v472_v20, %v468_v18  ;;  %v474_v28 = vld [vmem:[#allocation9 + $0x140] sm:$0xff] }
  0x60   :  { %3999 = vmatpush1.bf16.msra.mxu0 %v5592_v1  ;;  %6495 = vst [vmem:[#allocation27_spill] sm:$0xff] %v5613_v19  ;;  %v479_v22 = vld [vmem:[#allocation9 + $0x168] sm:$0xff]  ;;  %v481_v24 = vld [vmem:[#allocation9 + $0x178] sm:$0xff]  ;;  %v478_v29 = vld [vmem:[#allocation9 + $0x160] sm:$0xff] }
  0x61   :  { %4031 = vmatpush1.bf16.msra.mxu1 %v5596_v2  ;;  %4001 = vmatprep.subr.bf16.mxu0 %v5598_v3  ;;  %6496 = vst [vmem:[#allocation28_spill] sm:$0xff] %v5616_v25  ;;  %6497 = vst [vmem:[#allocation29_spill] sm:$0xff] %v5620_v26  ;;  %v5622_v27 = vpack.c.bf16 %v479_v22, %v475_v21  ;;  %v476_v32 = vld [vmem:[#allocation9 + $0x150] sm:$0xff]  ;;  %v5625_v33 = vpack.c.bf16 %v481_v24, %v477_v23  ;;  %v483_v36 = vld [vmem:[#allocation9 + $0x188] sm:$0xff] }
  0x62   :  { %4033 = vmatprep.subr.bf16.mxu1 %v5601_v7  ;;  %v480_v34 = vld [vmem:[#allocation9 + $0x170] sm:$0xff]  ;;  %v487_v37 = vld [vmem:[#allocation9 + $0x1a8] sm:$0xff]  ;;  %v485_v38 = vld [vmem:[#allocation9 + $0x198] sm:$0xff]  ;;  %v5628_v42 = vpack.c.bf16 %v478_v29, %v474_v28 }
  0x63   :  { %6498 = vst [vmem:[#allocation30_spill] sm:$0xff] %v5622_v27  ;;  %6499 = vst [vmem:[#allocation31_spill] sm:$0xff] %v5625_v33  ;;  %v489_v41 = vld [vmem:[#allocation9 + $0x1b8] sm:$0xff]  ;;  %v5632_v43 = vpack.c.bf16 %v480_v34, %v476_v32  ;;  %v5634_v45 = vpack.c.bf16 %v487_v37, %v483_v36  ;;  %v482_v46 = vld [vmem:[#allocation9 + $0x180] sm:$0xff] }
  0x64   :  { %4003 = vmatpush1.bf16.msra.mxu0 %v5604_v13  ;;  %6500 = vst [vmem:[#allocation32_spill] sm:$0xff] %v5628_v42  ;;  %v486_v47 = vld [vmem:[#allocation9 + $0x1a0] sm:$0xff]  ;;  %v484_v48 = vld [vmem:[#allocation9 + $0x190] sm:$0xff]  ;;  %v5637_v49 = vpack.c.bf16 %v489_v41, %v485_v38  ;;  %v491_v52 = vld [vmem:[#allocation9 + $0x1c8] sm:$0xff] }
  0x65   :  { %4035 = vmatpush1.bf16.msra.mxu1 %v5608_v14  ;;  %4005 = vmatprep.subr.bf16.mxu0 %v5610_v15  ;;  %6501 = vst [vmem:[#allocation33_spill] sm:$0xff] %v5632_v43  ;;  %6502 = vst [vmem:[#allocation34_spill] sm:$0xff] %v5634_v45  ;;  %v488_v50 = vld [vmem:[#allocation9 + $0x1b0] sm:$0xff]  ;;  %v495_v55 = vld [vmem:[#allocation9 + $0x1e8] sm:$0xff]  ;;  %v5640_v59 = vpack.c.bf16 %v486_v47, %v482_v46 }
  0x66   :  { %4037 = vmatprep.subr.bf16.mxu1 %v5613_v19  ;;  %6503 = vst [vmem:[#allocation35_spill] sm:$0xff] %v5637_v49  ;;  %v493_v56 = vld [vmem:[#allocation9 + $0x1d8] sm:$0xff]  ;;  %v5644_v60 = vpack.c.bf16 %v488_v50, %v484_v48  ;;  %v5646_v61 = vpack.c.bf16 %v495_v55, %v491_v52  ;;  %v490_v62 = vld [vmem:[#allocation9 + $0x1c0] sm:$0xff]  ;;  %v492_v4 = vld [vmem:[#allocation9 + $0x1d0] sm:$0xff] }
  0x67   :  { %v497_v57 = vld [vmem:[#allocation9 + $0x1f8] sm:$0xff]  ;;  %6504 = vst [vmem:[#allocation36_spill] sm:$0xff] %v5640_v59  ;;  %v494_v63 = vld [vmem:[#allocation9 + $0x1e0] sm:$0xff]  ;;  %v496_v6 = vld [vmem:[#allocation9 + $0x1f0] sm:$0xff] }
  0x68   :  { %4007 = vmatpush1.bf16.msra.mxu0 %v5616_v25  ;;  %6505 = vst [vmem:[#allocation37_spill] sm:$0xff] %v5644_v60  ;;  %6506 = vst [vmem:[#allocation38_spill] sm:$0xff] %v5646_v61  ;;  %v5649_v5 = vpack.c.bf16 %v497_v57, %v493_v56  ;;  %v500_v8 = vld [vmem:[#allocation9 + $0x208] sm:$0xff]  ;;  %v502_v10 = vld [vmem:[#allocation9 + $0x218] sm:$0xff]  ;;  %v5652_v12 = vpack.c.bf16 %v494_v63, %v490_v62  ;;  %v5656_v16 = vpack.c.bf16 %v496_v6, %v492_v4 }
  0x69   :  { %4039 = vmatpush1.bf16.msra.mxu1 %v5620_v26  ;;  %4009 = vmatprep.subr.bf16.mxu0 %v5622_v27  ;;  %v504_v9 = vld [vmem:[#allocation9 + $0x228] sm:$0xff]  ;;  %v506_v11 = vld [vmem:[#allocation9 + $0x238] sm:$0xff]  ;;  %v499_v18 = vld [vmem:[#allocation9 + $0x200] sm:$0xff] }
  0x6a   :  { %4041 = vmatprep.subr.bf16.mxu1 %v5625_v33  ;;  %6507 = vst [vmem:[#allocation39_spill] sm:$0xff] %v5649_v5  ;;  %6508 = vst [vmem:[#allocation40_spill] sm:$0xff] %v5652_v12  ;;  %v5658_v17 = vpack.c.bf16 %v504_v9, %v500_v8  ;;  %v503_v20 = vld [vmem:[#allocation9 + $0x220] sm:$0xff]  ;;  %v501_v21 = vld [vmem:[#allocation9 + $0x210] sm:$0xff]  ;;  %v5661_v22 = vpack.c.bf16 %v506_v11, %v502_v10 }
  0x6b   :  { %6509 = vst [vmem:[#allocation41_spill] sm:$0xff] %v5656_v16  ;;  %v505_v23 = vld [vmem:[#allocation9 + $0x230] sm:$0xff]  ;;  %v508_v24 = vld [vmem:[#allocation9 + $0x248] sm:$0xff]  ;;  %v510_v29 = vld [vmem:[#allocation9 + $0x258] sm:$0xff]  ;;  %v5667_v36 = vpack.c.bf16 %v503_v20, %v499_v18 }
  0x6c   :  { %4011 = vmatpush1.bf16.msra.mxu0 %v5628_v42  ;;  %6510 = vst [vmem:[#allocation42_spill] sm:$0xff] %v5658_v17  ;;  %6511 = vst [vmem:[#allocation43_spill] sm:$0xff] %v5661_v22  ;;  %v512_v28 = vld [vmem:[#allocation9 + $0x268] sm:$0xff]  ;;  %v514_v32 = vld [vmem:[#allocation9 + $0x278] sm:$0xff]  ;;  %v5671_v37 = vpack.c.bf16 %v505_v23, %v501_v21 }
  0x6d   :  { %4043 = vmatpush1.bf16.msra.mxu1 %v5632_v43  ;;  %4013 = vmatprep.subr.bf16.mxu0 %v5634_v45  ;;  %v563_v34 = vld [vmem:[%s6413_s4] sm:$0x1]  ;;  %v5673_v38 = vpack.c.bf16 %v512_v28, %v508_v24  ;;  %v507_v41 = vld [vmem:[#allocation9 + $0x240] sm:$0xff]  ;;  %v5676_v48 = vpack.c.bf16 %v514_v32, %v510_v29  ;;  %v516_v52 = vld [vmem:[#allocation9 + $0x288] sm:$0xff] }
  0x6e   :  { %4045 = vmatprep.subr.bf16.mxu1 %v5637_v49  ;;  %v511_v46 = vld [vmem:[#allocation9 + $0x260] sm:$0xff]  ;;  %v509_v47 = vld [vmem:[#allocation9 + $0x250] sm:$0xff]  ;;  %v520_v55 = vld [vmem:[#allocation9 + $0x2a8] sm:$0xff] }
  0x6f   :  { %v513_v50 = vld [vmem:[#allocation9 + $0x270] sm:$0xff]  ;;  %v518_v56 = vld [vmem:[#allocation9 + $0x298] sm:$0xff]  ;;  %v5679_v62 = vpack.c.bf16 %v511_v46, %v507_v41  ;;  %v5685_v4 = vpack.c.bf16 %v520_v55, %v516_v52  ;;  %v515_v6 = vld [vmem:[#allocation9 + $0x280] sm:$0xff] }
  0x70   :  { %4015 = vmatpush1.bf16.msra.mxu0 %v5640_v59  ;;  %v522_v57 = vld [vmem:[#allocation9 + $0x2b8] sm:$0xff]  ;;  %v5683_v63 = vpack.c.bf16 %v513_v50, %v509_v47  ;;  %v519_v8 = vld [vmem:[#allocation9 + $0x2a0] sm:$0xff]  ;;  %v517_v9 = vld [vmem:[#allocation9 + $0x290] sm:$0xff] }
  0x71   :  { %4047 = vmatpush1.bf16.msra.mxu1 %v5644_v60  ;;  %4017 = vmatprep.subr.bf16.mxu0 %v5646_v61  ;;  %v5688_v10 = vpack.c.bf16 %v522_v57, %v518_v56  ;;  %v521_v11 = vld [vmem:[#allocation9 + $0x2b0] sm:$0xff]  ;;  %v524_v18 = vld [vmem:[#allocation9 + $0x2c8] sm:$0xff]  ;;  %v526_v21 = vld [vmem:[#allocation9 + $0x2d8] sm:$0xff]  ;;  %v5693_v24 = vpack.c.bf16 %v519_v8, %v515_v6 }
  0x72   :  { %4049 = vmatprep.subr.bf16.mxu1 %v5649_v5  ;;  %v528_v20 = vld [vmem:[#allocation9 + $0x2e8] sm:$0xff]  ;;  %v530_v23 = vld [vmem:[#allocation9 + $0x2f8] sm:$0xff]  ;;  %v5697_v28 = vpack.c.bf16 %v521_v11, %v517_v9  ;;  %v523_v32 = vld [vmem:[#allocation9 + $0x2c0] sm:$0xff] }
  0x73   :  { %v5699_v29 = vpack.c.bf16 %v528_v20, %v524_v18  ;;  %v525_v41 = vld [vmem:[#allocation9 + $0x2d0] sm:$0xff]  ;;  %v5702_v46 = vpack.c.bf16 %v530_v23, %v526_v21  ;;  %v532_v50 = vld [vmem:[#allocation9 + $0x308] sm:$0xff]  ;;  %v534_v55 = vld [vmem:[#allocation9 + $0x318] sm:$0xff] }
  0x74   :  { %4019 = vmatpush1.bf16.msra.mxu0 %v5652_v12  ;;  %6512 = vst [vmem:[#allocation44_spill] sm:$0xff] %v5697_v28  ;;  %v529_v47 = vld [vmem:[#allocation9 + $0x2f0] sm:$0xff]  ;;  %v536_v52 = vld [vmem:[#allocation9 + $0x328] sm:$0xff]  ;;  %v538_v56 = vld [vmem:[#allocation9 + $0x338] sm:$0xff] }
  0x75   :  { %4051 = vmatpush1.bf16.msra.mxu1 %v5656_v16  ;;  %4053 = vmatprep.subr.bf16.mxu0 %v5658_v17  ;;  %6513 = vst [vmem:[#allocation45_spill] sm:$0xff] %v5699_v29  ;;  %6514 = vst [vmem:[#allocation46_spill] sm:$0xff] %v5702_v46  ;;  %v5709_v6 = vpack.c.bf16 %v529_v47, %v525_v41  ;;  %v5711_v8 = vpack.c.bf16 %v536_v52, %v532_v50  ;;  %v531_v9 = vld [vmem:[#allocation9 + $0x300] sm:$0xff]  ;;  %v533_v18 = vld [vmem:[#allocation9 + $0x310] sm:$0xff] }
  0x76   :  { %4085 = vmatprep.subr.bf16.mxu1 %v5661_v22  ;;  %v535_v11 = vld [vmem:[#allocation9 + $0x320] sm:$0xff]  ;;  %v5714_v20 = vpack.c.bf16 %v538_v56, %v534_v55  ;;  %v537_v21 = vld [vmem:[#allocation9 + $0x330] sm:$0xff]  ;;  %v540_v23 = vld [vmem:[#allocation9 + $0x348] sm:$0xff] }
  0x77   :  { %637 = vmatmul.mubr.f32.vlgmr.msra.gmra.mrb[4].mxu0 %v563_v34  ;;  %6516 = vst [vmem:[#allocation48_spill] sm:$0xff] %v5709_v6  ;;  %6517 = vst [vmem:[#allocation49_spill] sm:$0xff] %v5711_v8  ;;  %v5721_v41 = vpack.c.bf16 %v537_v21, %v533_v18  ;;  %v539_v50 = vld [vmem:[#allocation9 + $0x340] sm:$0xff]  ;;  %v541_v55 = vld [vmem:[#allocation9 + $0x350] sm:$0xff] }
  0x78   :  { %708 = vmatmul.mubr.f32.vlgmr.msra.gmra.mrb[4].mxu1 %v563_v34  ;;  %4055 = vmatpush1.bf16.msra.mxu0 %v5667_v36  ;;  %v527_v34 = vld [vmem:[#allocation9 + $0x2e0] sm:$0xff]  ;;  %6518 = vst [vmem:[#allocation50_spill] sm:$0xff] %v5714_v20 }
  0x79   :  { %4087 = vmatpush1.bf16.msra.mxu1 %v5671_v37  ;;  %4057 = vmatprep.subr.bf16.mxu0 %v5673_v38  ;;  %v5705_v57 = vpack.c.bf16 %v527_v34, %v523_v32  ;;  %v542_v32 = vld [vmem:[#allocation9 + $0x358] sm:$0xff]  ;;  %6520 = vst [vmem:[#allocation52_spill] sm:$0xff] %v5721_v41  ;;  %v543_v52 = vld [vmem:[#allocation9 + $0x360] sm:$0xff] }
  0x7a   :  { %4089 = vmatprep.subr.bf16.mxu1 %v5676_v48  ;;  %808 = vmatprep.mubr.f32.mxu0 %v6418_v0  ;;  %v546_v34 = vld [vmem:[#allocation9 + $0x378] sm:$0xff]  ;;  %v547_v21 = vld [vmem:[#allocation9 + $0x380] sm:$0xff] }
  0x7b   :  { %879 = vmatprep.mubr.f32.mxu1 %v6418_v0  ;;  %6515 = vst [vmem:[#allocation47_spill] sm:$0xff] %v5705_v57  ;;  %v544_v0 = vld [vmem:[#allocation9 + $0x368] sm:$0xff]  ;;  %v5726_v56 = vpack.c.bf16 %v546_v34, %v542_v32  ;;  %v549_v32 = vld [vmem:[#allocation9 + $0x390] sm:$0xff] }
  0x7c   :  { %4059 = vmatpush1.bf16.msra.mxu0 %v5679_v62  ;;  %v5723_v47 = vpack.c.bf16 %v544_v0, %v540_v23  ;;  %v551_v23 = vld [vmem:[#allocation9 + $0x3a0] sm:$0xff] }
  0x7d   :  { %4091 = vmatpush1.bf16.msra.mxu1 %v5683_v63  ;;  %4061 = vmatprep.subr.bf16.mxu0 %v5685_v4  ;;  %6521 = vst [vmem:[#allocation53_spill] sm:$0xff] %v5726_v56 }
  0x7e   :  { %4093 = vmatprep.subr.bf16.mxu1 %v5688_v10 }
  0x80   :  { %4063 = vmatpush1.bf16.msra.mxu0 %v5693_v24 }
  0x81   :  { %4095 = vmatpush1.bf16.msra.mxu1 %v5697_v28  ;;  %4065 = vmatprep.subr.bf16.mxu0 %v5699_v29  ;;  %v5717_v28 = vpack.c.bf16 %v535_v11, %v531_v9  ;;  %v548_v29 = vld [vmem:[#allocation9 + $0x388] sm:$0xff]  ;;  %v550_v9 = vld [vmem:[#allocation9 + $0x398] sm:$0xff] }
  0x82   :  { %4097 = vmatprep.subr.bf16.mxu1 %v5702_v46  ;;  %v545_v46 = vld [vmem:[#allocation9 + $0x370] sm:$0xff]  ;;  %v554_v11 = vld [vmem:[#allocation9 + $0x3b8] sm:$0xff] }
  0x83   :  { %6519 = vst [vmem:[#allocation51_spill] sm:$0xff] %v5717_v28  ;;  %v5733_v0 = vpack.c.bf16 %v545_v46, %v541_v55  ;;  %v5738_v34 = vpack.c.bf16 %v554_v11, %v550_v9  ;;  %v559_v55 = vld [vmem:[#allocation9 + $0x3e0] sm:$0xff]  ;;  %v557_v11 = vld [vmem:[#allocation9 + $0x3d0] sm:$0xff] }
  0x84   :  { %4067 = vmatpush1.bf16.msra.mxu0 %v5705_v57  ;;  %v552_v57 = vld [vmem:[#allocation9 + $0x3a8] sm:$0xff] }
  0x85   :  { %4099 = vmatpush1.bf16.msra.mxu1 %v5709_v6  ;;  %4069 = vmatprep.subr.bf16.mxu0 %v5711_v8  ;;  %v5729_v6 = vpack.c.bf16 %v543_v52, %v539_v50  ;;  %v5735_v18 = vpack.c.bf16 %v552_v57, %v548_v29  ;;  %v556_v8 = vld [vmem:[#allocation9 + $0x3c8] sm:$0xff]  ;;  %v558_v50 = vld [vmem:[#allocation9 + $0x3d8] sm:$0xff]  ;;  %v555_v57 = vld [vmem:[#allocation9 + $0x3c0] sm:$0xff] }
  0x86   :  { %4101 = vmatprep.subr.bf16.mxu1 %v5714_v20  ;;  %v553_v20 = vld [vmem:[#allocation9 + $0x3b0] sm:$0xff]  ;;  %v562_v52 = vld [vmem:[#allocation9 + $0x3f8] sm:$0xff] }
  0x87   :  { %v5745_v29 = vpack.c.bf16 %v553_v20, %v549_v32  ;;  %v5750_v9 = vpack.c.bf16 %v562_v52, %v558_v50  ;;  %v96_v50 = vld [vmem:[#allocation8] sm:$0xff] }
  0x88   :  { %4071 = vmatpush1.bf16.msra.mxu0 %v5717_v28  ;;  %v560_v28 = vld [vmem:[#allocation9 + $0x3e8] sm:$0xff] }
  0x89   :  { %4103 = vmatpush1.bf16.msra.mxu1 %v5721_v41  ;;  %4073 = vmatprep.subr.bf16.mxu0 %v5723_v47  ;;  %v5741_v41 = vpack.c.bf16 %v551_v23, %v547_v21  ;;  %v5747_v46 = vpack.c.bf16 %v560_v28, %v556_v8  ;;  %v5753_v21 = vpack.c.bf16 %v559_v55, %v555_v57  ;;  %v3922_v28 = vld [vmem:[%s6413_s4 + $0x1] sm:$0x1]  ;;  %v6522_v8 = vmov 0.0  }
  0x8a   :  { %4105 = vmatprep.subr.bf16.mxu1 %v5726_v56  ;;  %v561_v56 = vld [vmem:[#allocation9 + $0x3f0] sm:$0xff] }
  0x8b   :  { %v5757_v20 = vpack.c.bf16 %v561_v56, %v557_v11  ;;  %v98_v56 = vlaneseq }
  0x8c   :  { %4075 = vmatpush1.bf16.msra.mxu0 %v5729_v6 }
  0x8d   :  { %4107 = vmatpush1.bf16.msra.mxu1 %v5733_v0  ;;  %4077 = vmatprep.subr.bf16.mxu0 %v5735_v18  ;;  %v99_v23 = vshrl.u32 %v98_v56, 7 }
  0x8e   :  { %4109 = vmatprep.subr.bf16.mxu1 %v5738_v34 }
  0x8f   :  { %v100_v32 = vsub.s32 0, %v99_v23  ;;  %v108_v52 = vsub.s32 2, %v99_v23  ;;  %v104_v57 = vsub.s32 1, %v99_v23  ;;  %v112_v55 = vsub.s32 3, %v99_v23 }
  0x90   :  { %4079 = vmatpush1.bf16.msra.mxu0 %v5741_v41 }
  0x91   :  { %4111 = vmatpush1.bf16.msra.mxu1 %v5745_v29  ;;  %4081 = vmatprep.subr.bf16.mxu0 %v5747_v46  ;;  %v101_v11 = vrot.slane %v96_v50, %v100_v32 }
  0x92   :  { %4113 = vmatprep.subr.bf16.mxu1 %v5750_v9 }
  0x94   :  { %4083 = vmatpush1.bf16.msra.mxu0 %v5753_v21 }
  0x95   :  { %4115 = vmatpush1.bf16.msra.mxu1 %v5757_v20  ;;  %4117 = vmatprep.subr.bf16.mxu0 %v5558_v30 }
  0x96   :  { %4149 = vmatprep.subr.bf16.mxu1 %v5560_v31 }
  0x97   :  { %809 = vmatmul.mubr.f32.vlgmr.msra.gmra.mrb[6].mxu0 %v3922_v28 }
  0x98   :  { %880 = vmatmul.mubr.f32.vlgmr.msra.gmra.mrb[6].mxu1 %v3922_v28  ;;  %4119 = vmatpush1.bf16.msra.mxu0 %v5563_v35  ;;  %v116_v28 = vsub.s32 4, %v99_v23 }
  0x99   :  { %4151 = vmatpush1.bf16.msra.mxu1 %v5566_v39  ;;  %4121 = vmatprep.subr.bf16.mxu0 %v5568_v40 }
  0x9a   :  { %4153 = vmatprep.subr.bf16.mxu1 %v5572_v44  ;;  %1048 = vmatprep.mubr.f32.mxu0 %v6522_v8 }
  0x9b   :  { %1119 = vmatprep.mubr.f32.mxu1 %v6522_v8 }
  0x9c   :  { %4123 = vmatpush1.bf16.msra.mxu0 %v5578_v51 }
  0x9d   :  { %4155 = vmatpush1.bf16.msra.mxu1 %v5582_v53  ;;  %4125 = vmatprep.subr.bf16.mxu0 %v5584_v54 }
  0x9e   :  { %4157 = vmatprep.subr.bf16.mxu1 %v5587_v58 }
  0xa0   :  { %4127 = vmatpush1.bf16.msra.mxu0 %v5592_v1 }
  0xa1   :  { %4159 = vmatpush1.bf16.msra.mxu1 %v5596_v2  ;;  %4129 = vmatprep.subr.bf16.mxu0 %v5598_v3 }
  0xa2   :  { %4161 = vmatprep.subr.bf16.mxu1 %v5601_v7 }
  0xa4   :  { %4131 = vmatpush1.bf16.msra.mxu0 %v5604_v13 }
  0xa5   :  { %4163 = vmatpush1.bf16.msra.mxu1 %v5608_v14  ;;  %4133 = vmatprep.subr.bf16.mxu0 %v5610_v15 }
  0xa6   :  { %4165 = vmatprep.subr.bf16.mxu1 %v5613_v19 }
  0xa8   :  { %4135 = vmatpush1.bf16.msra.mxu0 %v5616_v25 }
  0xa9   :  { %4167 = vmatpush1.bf16.msra.mxu1 %v5620_v26  ;;  %4137 = vmatprep.subr.bf16.mxu0 %v5622_v27 }
  0xaa   :  { %4169 = vmatprep.subr.bf16.mxu1 %v5625_v33 }
  0xac   :  { %4139 = vmatpush1.bf16.msra.mxu0 %v5628_v42 }
  0xad   :  { %4171 = vmatpush1.bf16.msra.mxu1 %v5632_v43  ;;  %4141 = vmatprep.subr.bf16.mxu0 %v5634_v45 }
  0xae   :  { %4173 = vmatprep.subr.bf16.mxu1 %v5637_v49  ;;  %v128_v49 = vsub.s32 7, %v99_v23 }
  0xb0   :  { %4143 = vmatpush1.bf16.msra.mxu0 %v5640_v59  ;;  %v120_v59 = vsub.s32 5, %v99_v23  ;;  %v129_v32 = vrot.slane %v96_v50, %v128_v49 }
  0xb1   :  { %4175 = vmatpush1.bf16.msra.mxu1 %v5644_v60  ;;  %4145 = vmatprep.subr.bf16.mxu0 %v5646_v61  ;;  %v109_v61 = vrot.slane %v96_v50, %v108_v52  ;;  %v105_v60 = vrot.slane %v96_v50, %v104_v57 }
  0xb2   :  { %4177 = vmatprep.subr.bf16.mxu1 %v5649_v5  ;;  %v124_v5 = vsub.s32 6, %v99_v23  ;;  %v121_v26 = vrot.slane %v96_v50, %v120_v59 }
  0xb4   :  { %4147 = vmatpush1.bf16.msra.mxu0 %v5652_v12  ;;  %v113_v12 = vrot.slane %v96_v50, %v112_v55  ;;  %v125_v27 = vrot.slane %v96_v50, %v124_v5 }
  0xb5   :  { %4179 = vmatpush1.bf16.msra.mxu1 %v5656_v16  ;;  %4181 = vmatprep.subr.bf16.mxu0 %v5658_v17 }
  0xb6   :  { %4213 = vmatprep.subr.bf16.mxu1 %v5661_v22  ;;  %v117_v22 = vrot.slane %v96_v50, %v116_v28 }
 0x126   :  { %v208_v16 = vpop.f32.mrb[0].mxu0 }
 0x127   :  { %v209_v45 = vadd.f32 %v208_v16, %v101_v11  ;;  %v279_v17 = vpop.f32.mrb[0].mxu1  ;;  %v210_v43 = vpop.f32.mrb[1].mxu0 }
 0x128   :  { %v280_v42 = vadd.f32 %v279_v17, %v109_v61  ;;  %v211_v56 = vadd.f32 %v210_v43, %v105_v60  ;;  %v281_v33 = vpop.f32.mrb[1].mxu1  ;;  %v5456_v43 = vmov 1966171168  }
 0x129   :  { %426 = vst [vmem:[#allocation2] sm:$0xff] %v209_v45  ;;  %v282_v25 = vadd.f32 %v281_v33, %v113_v12  ;;  %v721_v59 = vunpack.c.l.s4 %v5456_v43 }
 0x12a   :  { %428 = vst [vmem:[#allocation2 + $0x10] sm:$0xff] %v280_v42  ;;  %427 = vst [vmem:[#allocation2 + $0x8] sm:$0xff] %v211_v56  ;;  %v350_v52 = vpop.f32.mrb[2].mxu0 }
 0x12b   :  { %429 = vst [vmem:[#allocation2 + $0x18] sm:$0xff] %v282_v25  ;;  %v351_v57 = vadd.f32 %v350_v52, %v117_v22  ;;  %v421_v55 = vpop.f32.mrb[2].mxu1  ;;  %v352_v19 = vpop.f32.mrb[3].mxu0  ;;  %v722_v45 = vunpack.c.0.s8 %v721_v59 }
 0x12c   :  { %v422_v15 = vadd.f32 %v421_v55, %v125_v27  ;;  %v353_v16 = vadd.f32 %v352_v19, %v121_v26  ;;  %v423_v11 = vpop.f32.mrb[3].mxu1 }
 0x12d   :  { %430 = vst [vmem:[#allocation2 + $0x20] sm:$0xff] %v351_v57  ;;  %v424_v28 = vadd.f32 %v423_v11, %v129_v32  ;;  %v5801_v33 = vsub.s32 %v722_v45, %v99_v23 }
 0x12e   :  { %432 = vst [vmem:[#allocation2 + $0x30] sm:$0xff] %v422_v15  ;;  %431 = vst [vmem:[#allocation2 + $0x28] sm:$0xff] %v353_v16 }
 0x12f   :  { %433 = vst [vmem:[#allocation2 + $0x38] sm:$0xff] %v424_v28 }
 0x132   :  { %v569_v12 = vld [vmem:[#allocation2] ss:$8 sm:$0xf] }
 0x14a   :  { %v638_v42 = vpop.f32.mrb[4].mxu0 }
 0x14b   :  { %v709_v49 = vpop.f32.mrb[4].mxu1  ;;  %v640_v60 = vpop.f32.mrb[5].mxu0 }
 0x14c   :  { %v718_v25 = vcombine.low %v638_v42, %v640_v60  ;;  %v711_v61 = vpop.f32.mrb[5].mxu1 }
 0x14d   :  { %v719_v5 = vcombine.low %v709_v49, %v711_v61 }
 0x14e   :  { %v726_v27 = vrot.slane %v718_v25, %v5801_v33 }
 0x14f   :  { %v733_v19 = vrot.slane %v719_v5, %v5801_v33 }
 0x151   :  { %v734_v26 = vcombine.low %v726_v27, %v733_v19  ;;  %v564_v27 = vld [vmem:[%s6414_s5] sm:$0x1] }
 0x153   :  { %v741_v15 = vrot.slane %v734_v26, %v5801_v33 }
 0x155   :  { %v743_v17 = vadd.f32 %v741_v15, %v569_v12 }
 0x157   :  { %v3924_v22 = vmul.f32 -1.442695, %v743_v17  ;;  %v923_v50 = vrot.slane %v743_v17, 1  ;;  %v934_v56 = vrot.slane %v743_v17, 3  ;;  %v931_v57 = vrot.slane %v743_v17, 2 }
 0x159   :  { %5027 = vpow2.f32 %v3924_v22  ;;  %v3925_v23 = vmul.f32 -1.442695, %v923_v50  ;;  %v3926_v32 = vmul.f32 -1.442695, %v934_v56 }
 0x15b   :  { %5029 = vpow2.f32 %v3925_v23  ;;  %v571_v23 = vld [vmem:[#allocation2 + $0x27] ss:$8 sm:$0xf] }
 0x15c   :  { %5031 = vpow2.f32 %v3926_v32 }
 0x163   :  { %v5028_v52 = vpop.eup %5027 }
 0x164   :  { %v919_v55 = vadd.f32 1.0, %v5028_v52 }
 0x165   :  { %v5030_v16 = vpop.eup %5029 }
 0x166   :  { %5033 = vrcp.f32 %v919_v55  ;;  %v928_v11 = vadd.f32 1.0, %v5030_v16  ;;  %v5032_v25 = vpop.eup %5031 }
 0x167   :  { %5035 = vtanh.f32 %v931_v57  ;;  %v939_v17 = vadd.f32 1.0, %v5032_v25 }
 0x168   :  { %5037 = vrcp.f32 %v928_v11 }
 0x169   :  { %5039 = vrcp.f32 %v939_v17 }
 0x16a   :  { %v810_v28 = vpop.f32.mrb[6].mxu0 }
 0x16b   :  { %v881_v43 = vpop.f32.mrb[6].mxu1  ;;  %v812_v59 = vpop.f32.mrb[7].mxu0 }
 0x16c   :  { %v890_v45 = vcombine.low %v810_v28, %v812_v59  ;;  %v883_v42 = vpop.f32.mrb[7].mxu1 }
 0x16d   :  { %v891_v49 = vcombine.low %v881_v43, %v883_v42 }
 0x16e   :  { %v898_v60 = vrot.slane %v890_v45, %v5801_v33 }
 0x16f   :  { %v905_v61 = vrot.slane %v891_v49, %v5801_v33 }
 0x170   :  { %v5034_v5 = vpop.eup %5033 }
 0x171   :  { %v5036_v19 = vpop.eup %5035  ;;  %v906_v26 = vcombine.low %v898_v60, %v905_v61  ;;  %v6523_v61 = vld [vmem:[#allocation44_spill] sm:$0xff] }
 0x172   :  { %v5038_v15 = vpop.eup %5037  ;;  %v943_v50 = vmul.f32 %v5036_v19, %v5034_v5  ;;  %v6525_v19 = vld [vmem:[#allocation46_spill] sm:$0xff] }
 0x173   :  { %v913_v12 = vrot.slane %v906_v26, %v5801_v33  ;;  %v942_v22 = vmul.f32 %v5038_v15, %v564_v27  ;;  %v5040_v11 = vpop.eup %5039  ;;  %v6524_v27 = vld [vmem:[#allocation45_spill] sm:$0xff]  ;;  %v3923_v15 = vld [vmem:[%s6414_s5 + $0x1] sm:$0x1]  ;;  %s5457_s5 = smov [#allocation12]  }
 0x174   :  { %s3885_s15 = sshll.u32 %s5457_s5, 4  ;;  %s3886_s15 = int_to_ptr.vmem [resolvable:$true] %s3885_s15 }
 0x175   :  { %v915_v56 = vadd.f32 %v913_v12, %v571_v23  ;;  %v5812_v32 = vadd.f32 %v943_v50, %v942_v22  ;;  %v6526_v22 = vld [vmem:[#allocation47_spill] sm:$0xff]  ;;  %v6527_v50 = vld [vmem:[#allocation48_spill] sm:$0xff]  ;;  %s5371_s19 = scalar_lea.vmem %s3886_s15, 32  ;;  %p5376_p5 = scmp.lt.s32.totalorder %s3886_s15, %s3886_s15 }
 0x176   :  { %p5372_p4 = scmp.ne.s32.totalorder %s3886_s15, %s5371_s19  ;;  %p5377_p6 = scmp.lt.s32.totalorder %s5371_s19, %s5371_s19 }
 0x177   :  { %v3927_v52 = vmul.f32 -1.442695, %v915_v56  ;;  %v954_v57 = vrot.slane %v915_v56, 1  ;;  %5041 = vtanh.f32 %v5812_v32  ;;  %v965_v16 = vrot.slane %v915_v56, 3 }
 0x178   :  { %v962_v45 = vrot.slane %v915_v56, 2  ;;  %v6528_v56 = vld [vmem:[#allocation49_spill] sm:$0xff]  ;;  %p5378_p7 = por %p5377_p6, %p5376_p5 }
 0x179   :  { %5043 = vpow2.f32 %v3927_v52  ;;  %v3928_v55 = vmul.f32 -1.442695, %v954_v57  ;;  %v3929_v28 = vmul.f32 -1.442695, %v965_v16  ;;  %v6529_v52 = vld [vmem:[#allocation50_spill] sm:$0xff] }
 0x17a   :  { %p5379_p8 = pnand %p5378_p7, %p5372_p4 }
 0x17b   :  { %5045 = vpow2.f32 %v3928_v55 }
 0x17c   :  { %5047 = vpow2.f32 %v3929_v28  ;;  %v6531_v28 = vld [vmem:[#allocation52_spill] sm:$0xff] }
 0x181   :  { %v5042_v43 = vpop.eup %5041 }
 0x182   :  { %v946_v42 = vmul.f32 %v5042_v43, %v5040_v11  ;;  %v6530_v11 = vld [vmem:[#allocation51_spill] sm:$0xff]  ;;  %v6532_v43 = vld [vmem:[#allocation53_spill] sm:$0xff] }
 0x183   :  { %v5044_v59 = vpop.eup %5043 }
 0x184   :  { %v950_v49 = vadd.f32 1.0, %v5044_v59  ;;  %978 = vst [vmem:[#allocation11] sm:$0x1] %v946_v42  ;;  %1049 = vmatmul.mubr.f32.vlgmr.msra.gmra.mrb[8].mxu0 %v946_v42  ;;  %1120 = vmatmul.mubr.f32.vlgmr.msra.gmra.mrb[8].mxu1 %v946_v42 }
 0x185   :  { %v5046_v60 = vpop.eup %5045  ;;  %4183 = vmatpush1.bf16.msra.mxu0 %v5667_v36  ;;  %4215 = vmatpush1.bf16.msra.mxu1 %v5671_v37 }
 0x186   :  { %5049 = vrcp.f32 %v950_v49  ;;  %v959_v25 = vadd.f32 1.0, %v5046_v60  ;;  %4185 = vmatprep.subr.bf16.mxu0 %v5673_v38  ;;  %4217 = vmatprep.subr.bf16.mxu1 %v5676_v48  ;;  %v5048_v5 = vpop.eup %5047  ;;  %v6533_v49 = vld [vmem:[#allocation26_spill] sm:$0xff]  ;;  %v6534_v60 = vld [vmem:[#allocation27_spill] sm:$0xff] }
 0x187   :  { %5051 = vtanh.f32 %v962_v45  ;;  %1220 = vmatprep.mubr.f32.mxu0 %v6522_v8  ;;  %1291 = vmatprep.mubr.f32.mxu1 %v6522_v8  ;;  %v970_v23 = vadd.f32 1.0, %v5048_v5  ;;  %v6536_v5 = vld [vmem:[#allocation29_spill] sm:$0xff] }
 0x188   :  { %5053 = vrcp.f32 %v959_v25  ;;  %v6535_v25 = vld [vmem:[#allocation28_spill] sm:$0xff] }
 0x189   :  { %4187 = vmatpush1.bf16.msra.mxu0 %v5679_v62  ;;  %4219 = vmatpush1.bf16.msra.mxu1 %v5683_v63  ;;  %5055 = vrcp.f32 %v970_v23  ;;  %v6541_v23 = vld [vmem:[#allocation34_spill] sm:$0xff] }
 0x18a   :  { %4189 = vmatprep.subr.bf16.mxu0 %v5685_v4  ;;  %4221 = vmatprep.subr.bf16.mxu1 %v5688_v10 }
 0x18d   :  { %4191 = vmatpush1.bf16.msra.mxu0 %v5693_v24  ;;  %4223 = vmatpush1.bf16.msra.mxu1 %v6523_v61 }
 0x18e   :  { %4193 = vmatprep.subr.bf16.mxu0 %v6524_v27  ;;  %4225 = vmatprep.subr.bf16.mxu1 %v6525_v19 }
 0x190   :  { %v5050_v26 = vpop.eup %5049 }
 0x191   :  { %v5052_v12 = vpop.eup %5051  ;;  %4195 = vmatpush1.bf16.msra.mxu0 %v6526_v22  ;;  %4227 = vmatpush1.bf16.msra.mxu1 %v6527_v50 }
 0x192   :  { %v5054_v17 = vpop.eup %5053  ;;  %4197 = vmatprep.subr.bf16.mxu0 %v6528_v56  ;;  %4229 = vmatprep.subr.bf16.mxu1 %v6529_v52  ;;  %v974_v55 = vmul.f32 %v5052_v12, %v5050_v26  ;;  %v6537_v26 = vld [vmem:[#allocation30_spill] sm:$0xff]  ;;  %v6539_v12 = vld [vmem:[#allocation32_spill] sm:$0xff] }
 0x193   :  { %v973_v57 = vmul.f32 %v5054_v17, %v3923_v15  ;;  %v5056_v59 = vpop.eup %5055  ;;  %v6538_v15 = vld [vmem:[#allocation31_spill] sm:$0xff]  ;;  %v6540_v17 = vld [vmem:[#allocation33_spill] sm:$0xff] }
 0x195   :  { %v5836_v16 = vadd.f32 %v974_v55, %v973_v57  ;;  %4199 = vmatpush1.bf16.msra.mxu0 %v6530_v11  ;;  %4231 = vmatpush1.bf16.msra.mxu1 %v6531_v28  ;;  %v6542_v57 = vld [vmem:[#allocation35_spill] sm:$0xff]  ;;  %v6543_v55 = vld [vmem:[#allocation36_spill] sm:$0xff] }
 0x196   :  { %4201 = vmatprep.subr.bf16.mxu0 %v5723_v47  ;;  %4233 = vmatprep.subr.bf16.mxu1 %v6532_v43 }
 0x197   :  { %5057 = vtanh.f32 %v5836_v16 }
 0x199   :  { %4203 = vmatpush1.bf16.msra.mxu0 %v5729_v6  ;;  %4235 = vmatpush1.bf16.msra.mxu1 %v5733_v0 }
 0x19a   :  { %4205 = vmatprep.subr.bf16.mxu0 %v5735_v18  ;;  %4237 = vmatprep.subr.bf16.mxu1 %v5738_v34 }
 0x19d   :  { %4207 = vmatpush1.bf16.msra.mxu0 %v5741_v41  ;;  %4239 = vmatpush1.bf16.msra.mxu1 %v5745_v29 }
 0x19e   :  { %4209 = vmatprep.subr.bf16.mxu0 %v5747_v46  ;;  %4241 = vmatprep.subr.bf16.mxu1 %v5750_v9 }
 0x1a1   :  { %v5058_v45 = vpop.eup %5057  ;;  %4211 = vmatpush1.bf16.msra.mxu0 %v5753_v21  ;;  %4243 = vmatpush1.bf16.msra.mxu1 %v5757_v20 }
 0x1a2   :  { %v977_v42 = vmul.f32 %v5058_v45, %v5056_v59  ;;  %4245 = vmatprep.subr.bf16.mxu0 %v5558_v30  ;;  %4277 = vmatprep.subr.bf16.mxu1 %v5560_v31  ;;  %v6544_v59 = vld [vmem:[#allocation37_spill] sm:$0xff]  ;;  %v6545_v45 = vld [vmem:[#allocation38_spill] sm:$0xff] }
 0x1a4   :  { %979 = vst [vmem:[#allocation11 + $0xf] sm:$0x1] %v977_v42  ;;  %1221 = vmatmul.mubr.f32.vlgmr.msra.gmra.mrb[10].mxu0 %v977_v42  ;;  %1292 = vmatmul.mubr.f32.vlgmr.msra.gmra.mrb[10].mxu1 %v977_v42  ;;  %v6546_v42 = vld [vmem:[#allocation39_spill] sm:$0xff] }
 0x1a5   :  { %4247 = vmatpush1.bf16.msra.mxu0 %v5563_v35  ;;  %4279 = vmatpush1.bf16.msra.mxu1 %v5566_v39 }
 0x1a6   :  { %4249 = vmatprep.subr.bf16.mxu0 %v5568_v40  ;;  %4281 = vmatprep.subr.bf16.mxu1 %v5572_v44 }
 0x1a7   :  { %1460 = vmatprep.mubr.f32.mxu0 %v6522_v8  ;;  %1531 = vmatprep.mubr.f32.mxu1 %v6522_v8 }
 0x1a9   :  { %4251 = vmatpush1.bf16.msra.mxu0 %v5578_v51  ;;  %4283 = vmatpush1.bf16.msra.mxu1 %v5582_v53 }
 0x1aa   :  { %4253 = vmatprep.subr.bf16.mxu0 %v5584_v54  ;;  %4285 = vmatprep.subr.bf16.mxu1 %v5587_v58 }
 0x1ad   :  { %4255 = vmatpush1.bf16.msra.mxu0 %v5592_v1  ;;  %4287 = vmatpush1.bf16.msra.mxu1 %v5596_v2 }
 0x1ae   :  { %4257 = vmatprep.subr.bf16.mxu0 %v5598_v3  ;;  %4289 = vmatprep.subr.bf16.mxu1 %v5601_v7 }
 0x1b1   :  { %4259 = vmatpush1.bf16.msra.mxu0 %v5604_v13  ;;  %4291 = vmatpush1.bf16.msra.mxu1 %v5608_v14 }
 0x1b2   :  { %4261 = vmatprep.subr.bf16.mxu0 %v6533_v49  ;;  %4293 = vmatprep.subr.bf16.mxu1 %v6534_v60 }
 0x1b5   :  { %4263 = vmatpush1.bf16.msra.mxu0 %v6535_v25  ;;  %4295 = vmatpush1.bf16.msra.mxu1 %v6536_v5  ;;  %v6547_v5 = vld [vmem:[#allocation40_spill] sm:$0xff] }
 0x1b6   :  { %4265 = vmatprep.subr.bf16.mxu0 %v6537_v26  ;;  %4297 = vmatprep.subr.bf16.mxu1 %v6538_v15  ;;  %v6548_v26 = vld [vmem:[#allocation41_spill] sm:$0xff]  ;;  %v6549_v15 = vld [vmem:[#allocation42_spill] sm:$0xff] }
 0x1b9   :  { %4267 = vmatpush1.bf16.msra.mxu0 %v6539_v12  ;;  %4299 = vmatpush1.bf16.msra.mxu1 %v6540_v17  ;;  %v6550_v12 = vld [vmem:[#allocation43_spill] sm:$0xff] }
 0x1ba   :  { %4269 = vmatprep.subr.bf16.mxu0 %v6541_v23  ;;  %4301 = vmatprep.subr.bf16.mxu1 %v6542_v57 }
 0x1bd   :  { %4271 = vmatpush1.bf16.msra.mxu0 %v6543_v55  ;;  %4303 = vmatpush1.bf16.msra.mxu1 %v6544_v59 }
 0x1be   :  { %4273 = vmatprep.subr.bf16.mxu0 %v6545_v45  ;;  %4305 = vmatprep.subr.bf16.mxu1 %v6546_v42 }
 0x1c1   :  { %4275 = vmatpush1.bf16.msra.mxu0 %v6547_v5  ;;  %4307 = vmatpush1.bf16.msra.mxu1 %v6548_v26  ;;  %v981_v5 = vld [vmem:[#allocation2 + $0x1] ss:$8 sm:$0xf] }
 0x1c2   :  { %4309 = vmatprep.subr.bf16.mxu0 %v6549_v15  ;;  %4341 = vmatprep.subr.bf16.mxu1 %v6550_v12 }
 0x257   :  { %v1050_v17 = vpop.f32.mrb[8].mxu0  ;;  %v1121_v23 = vpop.f32.mrb[8].mxu1 }
 0x258   :  { %v1052_v25 = vpop.f32.mrb[9].mxu0  ;;  %v1123_v57 = vpop.f32.mrb[9].mxu1 }
 0x259   :  { %v1130_v60 = vcombine.low %v1050_v17, %v1052_v25  ;;  %v1131_v55 = vcombine.low %v1121_v23, %v1123_v57 }
 0x25b   :  { %v1138_v59 = vrot.slane %v1130_v60, %v5801_v33  ;;  %v1145_v45 = vrot.slane %v1131_v55, %v5801_v33 }
 0x25d   :  { %v1146_v49 = vcombine.low %v1138_v59, %v1145_v45 }
 0x25f   :  { %v1153_v42 = vrot.slane %v1146_v49, %v5801_v33 }
 0x261   :  { %v1155_v14 = vadd.f32 %v1153_v42, %v981_v5 }
 0x263   :  { %v3930_v26 = vmul.f32 -1.442695, %v1155_v14  ;;  %v1335_v13 = vrot.slane %v1155_v14, 1  ;;  %v1346_v12 = vrot.slane %v1155_v14, 3  ;;  %v1343_v2 = vrot.slane %v1155_v14, 2 }
 0x265   :  { %5059 = vpow2.f32 %v3930_v26  ;;  %v3931_v15 = vmul.f32 -1.442695, %v1335_v13  ;;  %v3932_v7 = vmul.f32 -1.442695, %v1346_v12 }
 0x267   :  { %5061 = vpow2.f32 %v3931_v15 }
 0x268   :  { %5063 = vpow2.f32 %v3932_v7 }
 0x26f   :  { %v5060_v3 = vpop.eup %5059 }
 0x270   :  { %v1331_v25 = vadd.f32 1.0, %v5060_v3 }
 0x271   :  { %v5062_v17 = vpop.eup %5061 }
 0x272   :  { %5065 = vrcp.f32 %v1331_v25  ;;  %v1340_v60 = vadd.f32 1.0, %v5062_v17  ;;  %v5064_v26 = vpop.eup %5063  ;;  %v983_v17 = vld [vmem:[#allocation2 + $0x26] ss:$8 sm:$0xf] }
 0x273   :  { %5067 = vtanh.f32 %v1343_v2  ;;  %v1351_v42 = vadd.f32 1.0, %v5064_v26 }
 0x274   :  { %5069 = vrcp.f32 %v1340_v60 }
 0x275   :  { %5071 = vrcp.f32 %v1351_v42 }
 0x277   :  { %v1222_v23 = vpop.f32.mrb[10].mxu0  ;;  %v1293_v49 = vpop.f32.mrb[10].mxu1 }
 0x278   :  { %v1224_v57 = vpop.f32.mrb[11].mxu0  ;;  %v1295_v5 = vpop.f32.mrb[11].mxu1 }
 0x279   :  { %v1302_v55 = vcombine.low %v1222_v23, %v1224_v57  ;;  %v1303_v59 = vcombine.low %v1293_v49, %v1295_v5 }
 0x27b   :  { %v1310_v13 = vrot.slane %v1302_v55, %v5801_v33  ;;  %v1317_v15 = vrot.slane %v1303_v59, %v5801_v33 }
 0x27c   :  { %v5066_v12 = vpop.eup %5065 }
 0x27d   :  { %v5068_v14 = vpop.eup %5067  ;;  %v1318_v3 = vcombine.low %v1310_v13, %v1317_v15 }
 0x27e   :  { %v5070_v45 = vpop.eup %5069  ;;  %v1355_v25 = vmul.f32 %v5068_v14, %v5066_v12 }
 0x27f   :  { %v1325_v7 = vrot.slane %v1318_v3, %v5801_v33  ;;  %v1354_v2 = vmul.f32 %v5070_v45, %v5812_v32  ;;  %v5072_v55 = vpop.eup %5071 }
 0x281   :  { %v1327_v60 = vadd.f32 %v1325_v7, %v983_v17  ;;  %v5896_v1 = vadd.f32 %v1355_v25, %v1354_v2 }
 0x283   :  { %v3933_v23 = vmul.f32 -1.442695, %v1327_v60  ;;  %v1366_v49 = vrot.slane %v1327_v60, 1  ;;  %5073 = vtanh.f32 %v5896_v1  ;;  %v1377_v5 = vrot.slane %v1327_v60, 3 }
 0x284   :  { %v1374_v15 = vrot.slane %v1327_v60, 2 }
 0x285   :  { %5075 = vpow2.f32 %v3933_v23  ;;  %v3934_v57 = vmul.f32 -1.442695, %v1366_v49  ;;  %v3935_v59 = vmul.f32 -1.442695, %v1377_v5  ;;  %v6551_v5 = vld [vmem:[#allocation20_spill] sm:$0xff] }
 0x287   :  { %5077 = vpow2.f32 %v3934_v57 }
 0x288   :  { %5079 = vpow2.f32 %v3935_v59  ;;  %v6553_v59 = vld [vmem:[#allocation22_spill] sm:$0xff] }
 0x28d   :  { %v5074_v13 = vpop.eup %5073 }
 0x28e   :  { %v1358_v32 = vmul.f32 %v5074_v13, %v5072_v55  ;;  %v6552_v55 = vld [vmem:[#allocation21_spill] sm:$0xff]  ;;  %v6554_v13 = vld [vmem:[#allocation23_spill] sm:$0xff] }
 0x28f   :  { %v5076_v26 = vpop.eup %5075 }
 0x290   :  { %v1362_v12 = vadd.f32 1.0, %v5076_v26  ;;  %1390 = vst [vmem:[#allocation11 + $0x1] sm:$0x1] %v1358_v32  ;;  %1461 = vmatmul.mubr.f32.vlgmr.msra.gmra.mrb[12].mxu0 %v1358_v32  ;;  %1532 = vmatmul.mubr.f32.vlgmr.msra.gmra.mrb[12].mxu1 %v1358_v32  ;;  %v6555_v26 = vld [vmem:[#allocation24_spill] sm:$0xff]  ;;  %v6557_v32 = vld [vmem:[#allocation26_spill] sm:$0xff] }
 0x291   :  { %v5078_v14 = vpop.eup %5077  ;;  %4311 = vmatpush1.bf16.msra.mxu0 %v5667_v36  ;;  %4343 = vmatpush1.bf16.msra.mxu1 %v5671_v37 }
 0x292   :  { %5081 = vrcp.f32 %v1362_v12  ;;  %v1371_v3 = vadd.f32 1.0, %v5078_v14  ;;  %4313 = vmatprep.subr.bf16.mxu0 %v5673_v38  ;;  %4345 = vmatprep.subr.bf16.mxu1 %v5676_v48  ;;  %v5080_v45 = vpop.eup %5079  ;;  %v6558_v12 = vld [vmem:[#allocation27_spill] sm:$0xff]  ;;  %v6559_v14 = vld [vmem:[#allocation28_spill] sm:$0xff] }
 0x293   :  { %5083 = vtanh.f32 %v1374_v15  ;;  %1632 = vmatprep.mubr.f32.mxu0 %v6522_v8  ;;  %1703 = vmatprep.mubr.f32.mxu1 %v6522_v8  ;;  %v1382_v25 = vadd.f32 1.0, %v5080_v45  ;;  %v6556_v15 = vld [vmem:[#allocation25_spill] sm:$0xff]  ;;  %v6561_v45 = vld [vmem:[#allocation30_spill] sm:$0xff] }
 0x294   :  { %5085 = vrcp.f32 %v1371_v3  ;;  %v6560_v3 = vld [vmem:[#allocation29_spill] sm:$0xff] }
 0x295   :  { %4315 = vmatpush1.bf16.msra.mxu0 %v5679_v62  ;;  %4347 = vmatpush1.bf16.msra.mxu1 %v5683_v63  ;;  %5087 = vrcp.f32 %v1382_v25  ;;  %v6565_v25 = vld [vmem:[#allocation34_spill] sm:$0xff] }
 0x296   :  { %4317 = vmatprep.subr.bf16.mxu0 %v5685_v4  ;;  %4349 = vmatprep.subr.bf16.mxu1 %v5688_v10 }
 0x299   :  { %4319 = vmatpush1.bf16.msra.mxu0 %v5693_v24  ;;  %4351 = vmatpush1.bf16.msra.mxu1 %v6523_v61 }
 0x29a   :  { %4321 = vmatprep.subr.bf16.mxu0 %v6524_v27  ;;  %4353 = vmatprep.subr.bf16.mxu1 %v6525_v19 }
 0x29c   :  { %v5082_v7 = vpop.eup %5081 }
 0x29d   :  { %v5084_v42 = vpop.eup %5083  ;;  %4323 = vmatpush1.bf16.msra.mxu0 %v6526_v22  ;;  %4355 = vmatpush1.bf16.msra.mxu1 %v6527_v50 }
 0x29e   :  { %v5086_v2 = vpop.eup %5085  ;;  %4325 = vmatprep.subr.bf16.mxu0 %v6528_v56  ;;  %4357 = vmatprep.subr.bf16.mxu1 %v6529_v52  ;;  %v1386_v60 = vmul.f32 %v5084_v42, %v5082_v7  ;;  %v6562_v7 = vld [vmem:[#allocation31_spill] sm:$0xff]  ;;  %v6563_v42 = vld [vmem:[#allocation32_spill] sm:$0xff] }
 0x29f   :  { %v1385_v17 = vmul.f32 %v5086_v2, %v5836_v16  ;;  %v5088_v16 = vpop.eup %5087  ;;  %v6564_v2 = vld [vmem:[#allocation33_spill] sm:$0xff] }
 0x2a1   :  { %v5918_v23 = vadd.f32 %v1386_v60, %v1385_v17  ;;  %4327 = vmatpush1.bf16.msra.mxu0 %v6530_v11  ;;  %4359 = vmatpush1.bf16.msra.mxu1 %v6531_v28  ;;  %v6566_v17 = vld [vmem:[#allocation35_spill] sm:$0xff]  ;;  %v6567_v60 = vld [vmem:[#allocation36_spill] sm:$0xff] }
 0x2a2   :  { %4329 = vmatprep.subr.bf16.mxu0 %v5723_v47  ;;  %4361 = vmatprep.subr.bf16.mxu1 %v6532_v43 }
 0x2a3   :  { %5089 = vtanh.f32 %v5918_v23 }
 0x2a5   :  { %4331 = vmatpush1.bf16.msra.mxu0 %v5729_v6  ;;  %4363 = vmatpush1.bf16.msra.mxu1 %v5733_v0 }
 0x2a6   :  { %4333 = vmatprep.subr.bf16.mxu0 %v5735_v18  ;;  %4365 = vmatprep.subr.bf16.mxu1 %v5738_v34 }
 0x2a9   :  { %4335 = vmatpush1.bf16.msra.mxu0 %v5741_v41  ;;  %4367 = vmatpush1.bf16.msra.mxu1 %v5745_v29 }
 0x2aa   :  { %4337 = vmatprep.subr.bf16.mxu0 %v5747_v46  ;;  %4369 = vmatprep.subr.bf16.mxu1 %v5750_v9 }
 0x2ad   :  { %v5090_v49 = vpop.eup %5089  ;;  %4339 = vmatpush1.bf16.msra.mxu0 %v5753_v21  ;;  %4371 = vmatpush1.bf16.msra.mxu1 %v5757_v20 }
 0x2ae   :  { %v1389_v57 = vmul.f32 %v5090_v49, %v5088_v16  ;;  %4373 = vmatprep.subr.bf16.mxu0 %v5558_v30  ;;  %4405 = vmatprep.subr.bf16.mxu1 %v5560_v31  ;;  %v6568_v16 = vld [vmem:[#allocation37_spill] sm:$0xff]  ;;  %v6569_v49 = vld [vmem:[#allocation38_spill] sm:$0xff] }
 0x2b0   :  { %1391 = vst [vmem:[#allocation11 + $0xe] sm:$0x1] %v1389_v57  ;;  %1633 = vmatmul.mubr.f32.vlgmr.msra.gmra.mrb[14].mxu0 %v1389_v57  ;;  %1704 = vmatmul.mubr.f32.vlgmr.msra.gmra.mrb[14].mxu1 %v1389_v57  ;;  %v6570_v57 = vld [vmem:[#allocation39_spill] sm:$0xff] }
 0x2b1   :  { %4375 = vmatpush1.bf16.msra.mxu0 %v5563_v35  ;;  %4407 = vmatpush1.bf16.msra.mxu1 %v5566_v39 }
 0x2b2   :  { %4377 = vmatprep.subr.bf16.mxu0 %v5568_v40  ;;  %4409 = vmatprep.subr.bf16.mxu1 %v5572_v44 }
 0x2b3   :  { %1872 = vmatprep.mubr.f32.mxu0 %v6522_v8  ;;  %1943 = vmatprep.mubr.f32.mxu1 %v6522_v8 }
 0x2b5   :  { %4379 = vmatpush1.bf16.msra.mxu0 %v5578_v51  ;;  %4411 = vmatpush1.bf16.msra.mxu1 %v5582_v53 }
 0x2b6   :  { %4381 = vmatprep.subr.bf16.mxu0 %v5584_v54  ;;  %4413 = vmatprep.subr.bf16.mxu1 %v5587_v58 }
 0x2b9   :  { %4383 = vmatpush1.bf16.msra.mxu0 %v6551_v5  ;;  %4415 = vmatpush1.bf16.msra.mxu1 %v6552_v55 }
 0x2ba   :  { %4385 = vmatprep.subr.bf16.mxu0 %v6553_v59  ;;  %4417 = vmatprep.subr.bf16.mxu1 %v6554_v13 }
 0x2bd   :  { %4387 = vmatpush1.bf16.msra.mxu0 %v6555_v26  ;;  %4419 = vmatpush1.bf16.msra.mxu1 %v6556_v15 }
 0x2be   :  { %4389 = vmatprep.subr.bf16.mxu0 %v6557_v32  ;;  %4421 = vmatprep.subr.bf16.mxu1 %v6558_v12 }
 0x2c1   :  { %4391 = vmatpush1.bf16.msra.mxu0 %v6559_v14  ;;  %4423 = vmatpush1.bf16.msra.mxu1 %v6560_v3  ;;  %v6571_v3 = vld [vmem:[#allocation40_spill] sm:$0xff] }
 0x2c2   :  { %4393 = vmatprep.subr.bf16.mxu0 %v6561_v45  ;;  %4425 = vmatprep.subr.bf16.mxu1 %v6562_v7  ;;  %v6572_v45 = vld [vmem:[#allocation41_spill] sm:$0xff]  ;;  %v6573_v7 = vld [vmem:[#allocation42_spill] sm:$0xff] }
 0x2c5   :  { %4395 = vmatpush1.bf16.msra.mxu0 %v6563_v42  ;;  %4427 = vmatpush1.bf16.msra.mxu1 %v6564_v2  ;;  %v6574_v42 = vld [vmem:[#allocation43_spill] sm:$0xff] }
 0x2c6   :  { %4397 = vmatprep.subr.bf16.mxu0 %v6565_v25  ;;  %4429 = vmatprep.subr.bf16.mxu1 %v6566_v17 }
 0x2c9   :  { %4399 = vmatpush1.bf16.msra.mxu0 %v6567_v60  ;;  %4431 = vmatpush1.bf16.msra.mxu1 %v6568_v16 }
 0x2ca   :  { %4401 = vmatprep.subr.bf16.mxu0 %v6569_v49  ;;  %4433 = vmatprep.subr.bf16.mxu1 %v6570_v57 }
 0x2cd   :  { %4403 = vmatpush1.bf16.msra.mxu0 %v6571_v3  ;;  %4435 = vmatpush1.bf16.msra.mxu1 %v6572_v45  ;;  %v1393_v3 = vld [vmem:[#allocation2 + $0x2] ss:$8 sm:$0xf] }
 0x2ce   :  { %4437 = vmatprep.subr.bf16.mxu0 %v6573_v7  ;;  %4469 = vmatprep.subr.bf16.mxu1 %v6574_v42 }
 0x363   :  { %v1462_v2 = vpop.f32.mrb[12].mxu0  ;;  %v1533_v25 = vpop.f32.mrb[12].mxu1 }
 0x364   :  { %v1464_v14 = vpop.f32.mrb[13].mxu0  ;;  %v1535_v17 = vpop.f32.mrb[13].mxu1 }
 0x365   :  { %v1542_v12 = vcombine.low %v1462_v2, %v1464_v14  ;;  %v1543_v60 = vcombine.low %v1533_v25, %v1535_v17 }
 0x367   :  { %v1550_v16 = vrot.slane %v1542_v12, %v5801_v33  ;;  %v1557_v49 = vrot.slane %v1543_v60, %v5801_v33 }
 0x369   :  { %v1558_v32 = vcombine.low %v1550_v16, %v1557_v49 }
 0x36b   :  { %v1565_v57 = vrot.slane %v1558_v32, %v5801_v33 }
 0x36d   :  { %v1567_v15 = vadd.f32 %v1565_v57, %v1393_v3 }
 0x36f   :  { %v3936_v45 = vmul.f32 -1.442695, %v1567_v15  ;;  %v1747_v26 = vrot.slane %v1567_v15, 1  ;;  %v1758_v42 = vrot.slane %v1567_v15, 3  ;;  %v1755_v55 = vrot.slane %v1567_v15, 2 }
 0x371   :  { %5091 = vpow2.f32 %v3936_v45  ;;  %v3937_v7 = vmul.f32 -1.442695, %v1747_v26  ;;  %v3938_v13 = vmul.f32 -1.442695, %v1758_v42 }
 0x373   :  { %5093 = vpow2.f32 %v3937_v7 }
 0x374   :  { %5095 = vpow2.f32 %v3938_v13 }
 0x37b   :  { %v5092_v59 = vpop.eup %5091 }
 0x37c   :  { %v1743_v14 = vadd.f32 1.0, %v5092_v59 }
 0x37d   :  { %v5094_v2 = vpop.eup %5093 }
 0x37e   :  { %5097 = vrcp.f32 %v1743_v14  ;;  %v1752_v12 = vadd.f32 1.0, %v5094_v2  ;;  %v5096_v45 = vpop.eup %5095  ;;  %v1395_v2 = vld [vmem:[#allocation2 + $0x25] ss:$8 sm:$0xf] }
 0x37f   :  { %5099 = vtanh.f32 %v1755_v55  ;;  %v1763_v57 = vadd.f32 1.0, %v5096_v45 }
 0x380   :  { %5101 = vrcp.f32 %v1752_v12 }
 0x381   :  { %5103 = vrcp.f32 %v1763_v57 }
 0x383   :  { %v1634_v25 = vpop.f32.mrb[14].mxu0  ;;  %v1705_v32 = vpop.f32.mrb[14].mxu1 }
 0x384   :  { %v1636_v17 = vpop.f32.mrb[15].mxu0  ;;  %v1707_v3 = vpop.f32.mrb[15].mxu1 }
 0x385   :  { %v1714_v60 = vcombine.low %v1634_v25, %v1636_v17  ;;  %v1715_v16 = vcombine.low %v1705_v32, %v1707_v3 }
 0x387   :  { %v1722_v26 = vrot.slane %v1714_v60, %v5801_v33  ;;  %v1729_v7 = vrot.slane %v1715_v16, %v5801_v33 }
 0x388   :  { %v5098_v42 = vpop.eup %5097 }
 0x389   :  { %v5100_v15 = vpop.eup %5099  ;;  %v1730_v59 = vcombine.low %v1722_v26, %v1729_v7 }
 0x38a   :  { %v5102_v49 = vpop.eup %5101  ;;  %v1767_v14 = vmul.f32 %v5100_v15, %v5098_v42 }
 0x38b   :  { %v1737_v13 = vrot.slane %v1730_v59, %v5801_v33  ;;  %v1766_v55 = vmul.f32 %v5102_v49, %v5896_v1  ;;  %v5104_v60 = vpop.eup %5103 }
 0x38d   :  { %v1739_v12 = vadd.f32 %v1737_v13, %v1395_v2  ;;  %v5978_v5 = vadd.f32 %v1767_v14, %v1766_v55 }
 0x38f   :  { %v3939_v25 = vmul.f32 -1.442695, %v1739_v12  ;;  %v1778_v32 = vrot.slane %v1739_v12, 1  ;;  %5105 = vtanh.f32 %v5978_v5  ;;  %v1789_v3 = vrot.slane %v1739_v12, 3 }
 0x390   :  { %v1786_v7 = vrot.slane %v1739_v12, 2 }
 0x391   :  { %5107 = vpow2.f32 %v3939_v25  ;;  %v3940_v17 = vmul.f32 -1.442695, %v1778_v32  ;;  %v3941_v16 = vmul.f32 -1.442695, %v1789_v3  ;;  %v6575_v3 = vld [vmem:[#allocation20_spill] sm:$0xff] }
 0x393   :  { %5109 = vpow2.f32 %v3940_v17 }
 0x394   :  { %5111 = vpow2.f32 %v3941_v16  ;;  %v6577_v16 = vld [vmem:[#allocation22_spill] sm:$0xff] }
 0x399   :  { %v5106_v26 = vpop.eup %5105 }
 0x39a   :  { %v1770_v1 = vmul.f32 %v5106_v26, %v5104_v60  ;;  %v6576_v60 = vld [vmem:[#allocation21_spill] sm:$0xff]  ;;  %v6578_v26 = vld [vmem:[#allocation23_spill] sm:$0xff] }
 0x39b   :  { %v5108_v45 = vpop.eup %5107 }
 0x39c   :  { %v1774_v42 = vadd.f32 1.0, %v5108_v45  ;;  %1802 = vst [vmem:[#allocation11 + $0x2] sm:$0x1] %v1770_v1  ;;  %1873 = vmatmul.mubr.f32.vlgmr.msra.gmra.mrb[16].mxu0 %v1770_v1  ;;  %1944 = vmatmul.mubr.f32.vlgmr.msra.gmra.mrb[16].mxu1 %v1770_v1  ;;  %v6579_v45 = vld [vmem:[#allocation24_spill] sm:$0xff]  ;;  %v6581_v1 = vld [vmem:[#allocation26_spill] sm:$0xff] }
 0x39d   :  { %v5110_v15 = vpop.eup %5109  ;;  %4439 = vmatpush1.bf16.msra.mxu0 %v5667_v36  ;;  %4471 = vmatpush1.bf16.msra.mxu1 %v5671_v37 }
 0x39e   :  { %5113 = vrcp.f32 %v1774_v42  ;;  %v1783_v59 = vadd.f32 1.0, %v5110_v15  ;;  %4441 = vmatprep.subr.bf16.mxu0 %v5673_v38  ;;  %4473 = vmatprep.subr.bf16.mxu1 %v5676_v48  ;;  %v5112_v49 = vpop.eup %5111  ;;  %v6582_v42 = vld [vmem:[#allocation27_spill] sm:$0xff]  ;;  %v6583_v15 = vld [vmem:[#allocation28_spill] sm:$0xff] }
 0x39f   :  { %5115 = vtanh.f32 %v1786_v7  ;;  %2044 = vmatprep.mubr.f32.mxu0 %v6522_v8  ;;  %2115 = vmatprep.mubr.f32.mxu1 %v6522_v8  ;;  %v1794_v14 = vadd.f32 1.0, %v5112_v49  ;;  %v6580_v7 = vld [vmem:[#allocation25_spill] sm:$0xff]  ;;  %v6585_v49 = vld [vmem:[#allocation30_spill] sm:$0xff] }
 0x3a0   :  { %5117 = vrcp.f32 %v1783_v59  ;;  %v6584_v59 = vld [vmem:[#allocation29_spill] sm:$0xff] }
 0x3a1   :  { %4443 = vmatpush1.bf16.msra.mxu0 %v5679_v62  ;;  %4475 = vmatpush1.bf16.msra.mxu1 %v5683_v63  ;;  %5119 = vrcp.f32 %v1794_v14  ;;  %v6589_v14 = vld [vmem:[#allocation34_spill] sm:$0xff] }
 0x3a2   :  { %4445 = vmatprep.subr.bf16.mxu0 %v5685_v4  ;;  %4477 = vmatprep.subr.bf16.mxu1 %v5688_v10 }
 0x3a5   :  { %4447 = vmatpush1.bf16.msra.mxu0 %v5693_v24  ;;  %4479 = vmatpush1.bf16.msra.mxu1 %v6523_v61 }
 0x3a6   :  { %4449 = vmatprep.subr.bf16.mxu0 %v6524_v27  ;;  %4481 = vmatprep.subr.bf16.mxu1 %v6525_v19 }
 0x3a8   :  { %v5114_v13 = vpop.eup %5113 }
 0x3a9   :  { %v5116_v57 = vpop.eup %5115  ;;  %4451 = vmatpush1.bf16.msra.mxu0 %v6526_v22  ;;  %4483 = vmatpush1.bf16.msra.mxu1 %v6527_v50 }
 0x3aa   :  { %v5118_v55 = vpop.eup %5117  ;;  %4453 = vmatprep.subr.bf16.mxu0 %v6528_v56  ;;  %4485 = vmatprep.subr.bf16.mxu1 %v6529_v52  ;;  %v1798_v12 = vmul.f32 %v5116_v57, %v5114_v13  ;;  %v6586_v13 = vld [vmem:[#allocation31_spill] sm:$0xff]  ;;  %v6587_v57 = vld [vmem:[#allocation32_spill] sm:$0xff] }
 0x3ab   :  { %v1797_v2 = vmul.f32 %v5118_v55, %v5918_v23  ;;  %v5120_v23 = vpop.eup %5119  ;;  %v6588_v55 = vld [vmem:[#allocation33_spill] sm:$0xff] }
 0x3ad   :  { %v6000_v25 = vadd.f32 %v1798_v12, %v1797_v2  ;;  %4455 = vmatpush1.bf16.msra.mxu0 %v6530_v11  ;;  %4487 = vmatpush1.bf16.msra.mxu1 %v6531_v28  ;;  %v6590_v2 = vld [vmem:[#allocation35_spill] sm:$0xff]  ;;  %v6591_v12 = vld [vmem:[#allocation36_spill] sm:$0xff] }
 0x3ae   :  { %4457 = vmatprep.subr.bf16.mxu0 %v5723_v47  ;;  %4489 = vmatprep.subr.bf16.mxu1 %v6532_v43 }
 0x3af   :  { %5121 = vtanh.f32 %v6000_v25 }
 0x3b1   :  { %4459 = vmatpush1.bf16.msra.mxu0 %v5729_v6  ;;  %4491 = vmatpush1.bf16.msra.mxu1 %v5733_v0 }
 0x3b2   :  { %4461 = vmatprep.subr.bf16.mxu0 %v5735_v18  ;;  %4493 = vmatprep.subr.bf16.mxu1 %v5738_v34 }
 0x3b5   :  { %4463 = vmatpush1.bf16.msra.mxu0 %v5741_v41  ;;  %4495 = vmatpush1.bf16.msra.mxu1 %v5745_v29 }
 0x3b6   :  { %4465 = vmatprep.subr.bf16.mxu0 %v5747_v46  ;;  %4497 = vmatprep.subr.bf16.mxu1 %v5750_v9 }
 0x3b9   :  { %v5122_v32 = vpop.eup %5121  ;;  %4467 = vmatpush1.bf16.msra.mxu0 %v5753_v21  ;;  %4499 = vmatpush1.bf16.msra.mxu1 %v5757_v20 }
 0x3ba   :  { %v1801_v17 = vmul.f32 %v5122_v32, %v5120_v23  ;;  %4501 = vmatprep.subr.bf16.mxu0 %v5558_v30  ;;  %4533 = vmatprep.subr.bf16.mxu1 %v5560_v31  ;;  %v6592_v23 = vld [vmem:[#allocation37_spill] sm:$0xff]  ;;  %v6593_v32 = vld [vmem:[#allocation38_spill] sm:$0xff] }
 0x3bc   :  { %1803 = vst [vmem:[#allocation11 + $0xd] sm:$0x1] %v1801_v17  ;;  %2045 = vmatmul.mubr.f32.vlgmr.msra.gmra.mrb[18].mxu0 %v1801_v17  ;;  %2116 = vmatmul.mubr.f32.vlgmr.msra.gmra.mrb[18].mxu1 %v1801_v17  ;;  %v6594_v17 = vld [vmem:[#allocation39_spill] sm:$0xff] }
 0x3bd   :  { %4503 = vmatpush1.bf16.msra.mxu0 %v5563_v35  ;;  %4535 = vmatpush1.bf16.msra.mxu1 %v5566_v39 }
 0x3be   :  { %4505 = vmatprep.subr.bf16.mxu0 %v5568_v40  ;;  %4537 = vmatprep.subr.bf16.mxu1 %v5572_v44 }
 0x3bf   :  { %2284 = vmatprep.mubr.f32.mxu0 %v6522_v8  ;;  %2355 = vmatprep.mubr.f32.mxu1 %v6522_v8 }
 0x3c1   :  { %4507 = vmatpush1.bf16.msra.mxu0 %v5578_v51  ;;  %4539 = vmatpush1.bf16.msra.mxu1 %v5582_v53 }
 0x3c2   :  { %4509 = vmatprep.subr.bf16.mxu0 %v5584_v54  ;;  %4541 = vmatprep.subr.bf16.mxu1 %v5587_v58 }
 0x3c5   :  { %4511 = vmatpush1.bf16.msra.mxu0 %v6575_v3  ;;  %4543 = vmatpush1.bf16.msra.mxu1 %v6576_v60 }
 0x3c6   :  { %4513 = vmatprep.subr.bf16.mxu0 %v6577_v16  ;;  %4545 = vmatprep.subr.bf16.mxu1 %v6578_v26 }
 0x3c9   :  { %4515 = vmatpush1.bf16.msra.mxu0 %v6579_v45  ;;  %4547 = vmatpush1.bf16.msra.mxu1 %v6580_v7 }
 0x3ca   :  { %4517 = vmatprep.subr.bf16.mxu0 %v6581_v1  ;;  %4549 = vmatprep.subr.bf16.mxu1 %v6582_v42 }
 0x3cd   :  { %4519 = vmatpush1.bf16.msra.mxu0 %v6583_v15  ;;  %4551 = vmatpush1.bf16.msra.mxu1 %v6584_v59  ;;  %v6595_v59 = vld [vmem:[#allocation40_spill] sm:$0xff] }
 0x3ce   :  { %4521 = vmatprep.subr.bf16.mxu0 %v6585_v49  ;;  %4553 = vmatprep.subr.bf16.mxu1 %v6586_v13  ;;  %v6596_v49 = vld [vmem:[#allocation41_spill] sm:$0xff]  ;;  %v6597_v13 = vld [vmem:[#allocation42_spill] sm:$0xff] }
 0x3d1   :  { %4523 = vmatpush1.bf16.msra.mxu0 %v6587_v57  ;;  %4555 = vmatpush1.bf16.msra.mxu1 %v6588_v55  ;;  %v6598_v57 = vld [vmem:[#allocation43_spill] sm:$0xff] }
 0x3d2   :  { %4525 = vmatprep.subr.bf16.mxu0 %v6589_v14  ;;  %4557 = vmatprep.subr.bf16.mxu1 %v6590_v2 }
 0x3d5   :  { %4527 = vmatpush1.bf16.msra.mxu0 %v6591_v12  ;;  %4559 = vmatpush1.bf16.msra.mxu1 %v6592_v23 }
 0x3d6   :  { %4529 = vmatprep.subr.bf16.mxu0 %v6593_v32  ;;  %4561 = vmatprep.subr.bf16.mxu1 %v6594_v17 }
 0x3d9   :  { %4531 = vmatpush1.bf16.msra.mxu0 %v6595_v59  ;;  %4563 = vmatpush1.bf16.msra.mxu1 %v6596_v49  ;;  %v1805_v59 = vld [vmem:[#allocation2 + $0x3] ss:$8 sm:$0xf] }
 0x3da   :  { %4565 = vmatprep.subr.bf16.mxu0 %v6597_v13  ;;  %4597 = vmatprep.subr.bf16.mxu1 %v6598_v57 }
 0x46f   :  { %v1874_v55 = vpop.f32.mrb[16].mxu0  ;;  %v1945_v14 = vpop.f32.mrb[16].mxu1 }
 0x470   :  { %v1876_v15 = vpop.f32.mrb[17].mxu0  ;;  %v1947_v2 = vpop.f32.mrb[17].mxu1 }
 0x471   :  { %v1954_v42 = vcombine.low %v1874_v55, %v1876_v15  ;;  %v1955_v12 = vcombine.low %v1945_v14, %v1947_v2 }
 0x473   :  { %v1962_v23 = vrot.slane %v1954_v42, %v5801_v33  ;;  %v1969_v32 = vrot.slane %v1955_v12, %v5801_v33 }
 0x475   :  { %v1970_v1 = vcombine.low %v1962_v23, %v1969_v32 }
 0x477   :  { %v1977_v17 = vrot.slane %v1970_v1, %v5801_v33 }
 0x479   :  { %v1979_v7 = vadd.f32 %v1977_v17, %v1805_v59 }
 0x47b   :  { %v3942_v49 = vmul.f32 -1.442695, %v1979_v7  ;;  %v2159_v45 = vrot.slane %v1979_v7, 1  ;;  %v2170_v57 = vrot.slane %v1979_v7, 3  ;;  %v2167_v60 = vrot.slane %v1979_v7, 2 }
 0x47d   :  { %5123 = vpow2.f32 %v3942_v49  ;;  %v3943_v13 = vmul.f32 -1.442695, %v2159_v45  ;;  %v3944_v26 = vmul.f32 -1.442695, %v2170_v57 }
 0x47f   :  { %5125 = vpow2.f32 %v3943_v13 }
 0x480   :  { %5127 = vpow2.f32 %v3944_v26 }
 0x487   :  { %v5124_v16 = vpop.eup %5123 }
 0x488   :  { %v2155_v15 = vadd.f32 1.0, %v5124_v16 }
 0x489   :  { %v5126_v55 = vpop.eup %5125 }
 0x48a   :  { %5129 = vrcp.f32 %v2155_v15  ;;  %v2164_v42 = vadd.f32 1.0, %v5126_v55  ;;  %v5128_v49 = vpop.eup %5127  ;;  %v1807_v55 = vld [vmem:[#allocation2 + $0x24] ss:$8 sm:$0xf] }
 0x48b   :  { %5131 = vtanh.f32 %v2167_v60  ;;  %v2175_v17 = vadd.f32 1.0, %v5128_v49 }
 0x48c   :  { %5133 = vrcp.f32 %v2164_v42 }
 0x48d   :  { %5135 = vrcp.f32 %v2175_v17 }
 0x48f   :  { %v2046_v14 = vpop.f32.mrb[18].mxu0  ;;  %v2117_v1 = vpop.f32.mrb[18].mxu1 }
 0x490   :  { %v2048_v2 = vpop.f32.mrb[19].mxu0  ;;  %v2119_v59 = vpop.f32.mrb[19].mxu1 }
 0x491   :  { %v2126_v12 = vcombine.low %v2046_v14, %v2048_v2  ;;  %v2127_v23 = vcombine.low %v2117_v1, %v2119_v59 }
 0x493   :  { %v2134_v45 = vrot.slane %v2126_v12, %v5801_v33  ;;  %v2141_v13 = vrot.slane %v2127_v23, %v5801_v33 }
 0x494   :  { %v5130_v57 = vpop.eup %5129 }
 0x495   :  { %v5132_v7 = vpop.eup %5131  ;;  %v2142_v16 = vcombine.low %v2134_v45, %v2141_v13 }
 0x496   :  { %v5134_v32 = vpop.eup %5133  ;;  %v2179_v15 = vmul.f32 %v5132_v7, %v5130_v57 }
 0x497   :  { %v2149_v26 = vrot.slane %v2142_v16, %v5801_v33  ;;  %v2178_v60 = vmul.f32 %v5134_v32, %v5978_v5  ;;  %v5136_v12 = vpop.eup %5135 }
 0x499   :  { %v2151_v42 = vadd.f32 %v2149_v26, %v1807_v55  ;;  %v6060_v3 = vadd.f32 %v2179_v15, %v2178_v60 }
 0x49b   :  { %v3945_v14 = vmul.f32 -1.442695, %v2151_v42  ;;  %v2190_v1 = vrot.slane %v2151_v42, 1  ;;  %5137 = vtanh.f32 %v6060_v3  ;;  %v2201_v59 = vrot.slane %v2151_v42, 3 }
 0x49c   :  { %v2198_v13 = vrot.slane %v2151_v42, 2 }
 0x49d   :  { %5139 = vpow2.f32 %v3945_v14  ;;  %v3946_v2 = vmul.f32 -1.442695, %v2190_v1  ;;  %v3947_v23 = vmul.f32 -1.442695, %v2201_v59  ;;  %v6599_v59 = vld [vmem:[#allocation20_spill] sm:$0xff] }
 0x49f   :  { %5141 = vpow2.f32 %v3946_v2 }
 0x4a0   :  { %5143 = vpow2.f32 %v3947_v23  ;;  %v6601_v23 = vld [vmem:[#allocation22_spill] sm:$0xff] }
 0x4a5   :  { %v5138_v45 = vpop.eup %5137 }
 0x4a6   :  { %v2182_v5 = vmul.f32 %v5138_v45, %v5136_v12  ;;  %v6600_v12 = vld [vmem:[#allocation21_spill] sm:$0xff]  ;;  %v6602_v45 = vld [vmem:[#allocation23_spill] sm:$0xff] }
 0x4a7   :  { %v5140_v49 = vpop.eup %5139 }
 0x4a8   :  { %v2186_v57 = vadd.f32 1.0, %v5140_v49  ;;  %2214 = vst [vmem:[#allocation11 + $0x3] sm:$0x1] %v2182_v5  ;;  %2285 = vmatmul.mubr.f32.vlgmr.msra.gmra.mrb[20].mxu0 %v2182_v5  ;;  %2356 = vmatmul.mubr.f32.vlgmr.msra.gmra.mrb[20].mxu1 %v2182_v5  ;;  %v6603_v49 = vld [vmem:[#allocation24_spill] sm:$0xff]  ;;  %v6605_v5 = vld [vmem:[#allocation26_spill] sm:$0xff] }
 0x4a9   :  { %v5142_v7 = vpop.eup %5141  ;;  %4567 = vmatpush1.bf16.msra.mxu0 %v5667_v36  ;;  %4599 = vmatpush1.bf16.msra.mxu1 %v5671_v37 }
 0x4aa   :  { %5145 = vrcp.f32 %v2186_v57  ;;  %v2195_v16 = vadd.f32 1.0, %v5142_v7  ;;  %4569 = vmatprep.subr.bf16.mxu0 %v5673_v38  ;;  %4601 = vmatprep.subr.bf16.mxu1 %v5676_v48  ;;  %v5144_v32 = vpop.eup %5143  ;;  %v6606_v57 = vld [vmem:[#allocation27_spill] sm:$0xff]  ;;  %v6607_v7 = vld [vmem:[#allocation28_spill] sm:$0xff] }
 0x4ab   :  { %5147 = vtanh.f32 %v2198_v13  ;;  %2456 = vmatprep.mubr.f32.mxu0 %v6522_v8  ;;  %2527 = vmatprep.mubr.f32.mxu1 %v6522_v8  ;;  %v2206_v15 = vadd.f32 1.0, %v5144_v32  ;;  %v6604_v13 = vld [vmem:[#allocation25_spill] sm:$0xff]  ;;  %v6609_v32 = vld [vmem:[#allocation30_spill] sm:$0xff] }
 0x4ac   :  { %5149 = vrcp.f32 %v2195_v16  ;;  %v6608_v16 = vld [vmem:[#allocation29_spill] sm:$0xff] }
 0x4ad   :  { %4571 = vmatpush1.bf16.msra.mxu0 %v5679_v62  ;;  %4603 = vmatpush1.bf16.msra.mxu1 %v5683_v63  ;;  %5151 = vrcp.f32 %v2206_v15  ;;  %v6613_v15 = vld [vmem:[#allocation34_spill] sm:$0xff] }
 0x4ae   :  { %4573 = vmatprep.subr.bf16.mxu0 %v5685_v4  ;;  %4605 = vmatprep.subr.bf16.mxu1 %v5688_v10 }
 0x4b1   :  { %4575 = vmatpush1.bf16.msra.mxu0 %v5693_v24  ;;  %4607 = vmatpush1.bf16.msra.mxu1 %v6523_v61 }
 0x4b2   :  { %4577 = vmatprep.subr.bf16.mxu0 %v6524_v27  ;;  %4609 = vmatprep.subr.bf16.mxu1 %v6525_v19 }
 0x4b4   :  { %v5146_v26 = vpop.eup %5145 }
 0x4b5   :  { %v5148_v17 = vpop.eup %5147  ;;  %4579 = vmatpush1.bf16.msra.mxu0 %v6526_v22  ;;  %4611 = vmatpush1.bf16.msra.mxu1 %v6527_v50 }
 0x4b6   :  { %v5150_v60 = vpop.eup %5149  ;;  %4581 = vmatprep.subr.bf16.mxu0 %v6528_v56  ;;  %4613 = vmatprep.subr.bf16.mxu1 %v6529_v52  ;;  %v2210_v42 = vmul.f32 %v5148_v17, %v5146_v26  ;;  %v6610_v26 = vld [vmem:[#allocation31_spill] sm:$0xff]  ;;  %v6611_v17 = vld [vmem:[#allocation32_spill] sm:$0xff] }
 0x4b7   :  { %v2209_v55 = vmul.f32 %v5150_v60, %v6000_v25  ;;  %v5152_v25 = vpop.eup %5151  ;;  %v6612_v60 = vld [vmem:[#allocation33_spill] sm:$0xff] }
 0x4b9   :  { %v6082_v14 = vadd.f32 %v2210_v42, %v2209_v55  ;;  %4583 = vmatpush1.bf16.msra.mxu0 %v6530_v11  ;;  %4615 = vmatpush1.bf16.msra.mxu1 %v6531_v28  ;;  %v6614_v55 = vld [vmem:[#allocation35_spill] sm:$0xff]  ;;  %v6615_v42 = vld [vmem:[#allocation36_spill] sm:$0xff] }
 0x4ba   :  { %4585 = vmatprep.subr.bf16.mxu0 %v5723_v47  ;;  %4617 = vmatprep.subr.bf16.mxu1 %v6532_v43 }
 0x4bb   :  { %5153 = vtanh.f32 %v6082_v14 }
 0x4bd   :  { %4587 = vmatpush1.bf16.msra.mxu0 %v5729_v6  ;;  %4619 = vmatpush1.bf16.msra.mxu1 %v5733_v0 }
 0x4be   :  { %4589 = vmatprep.subr.bf16.mxu0 %v5735_v18  ;;  %4621 = vmatprep.subr.bf16.mxu1 %v5738_v34 }
 0x4c1   :  { %4591 = vmatpush1.bf16.msra.mxu0 %v5741_v41  ;;  %4623 = vmatpush1.bf16.msra.mxu1 %v5745_v29 }
 0x4c2   :  { %4593 = vmatprep.subr.bf16.mxu0 %v5747_v46  ;;  %4625 = vmatprep.subr.bf16.mxu1 %v5750_v9 }
 0x4c5   :  { %v5154_v1 = vpop.eup %5153  ;;  %4595 = vmatpush1.bf16.msra.mxu0 %v5753_v21  ;;  %4627 = vmatpush1.bf16.msra.mxu1 %v5757_v20 }
 0x4c6   :  { %v2213_v2 = vmul.f32 %v5154_v1, %v5152_v25  ;;  %4629 = vmatprep.subr.bf16.mxu0 %v5558_v30  ;;  %4661 = vmatprep.subr.bf16.mxu1 %v5560_v31  ;;  %v6616_v25 = vld [vmem:[#allocation37_spill] sm:$0xff]  ;;  %v6617_v1 = vld [vmem:[#allocation38_spill] sm:$0xff] }
 0x4c8   :  { %2215 = vst [vmem:[#allocation11 + $0xc] sm:$0x1] %v2213_v2  ;;  %2457 = vmatmul.mubr.f32.vlgmr.msra.gmra.mrb[22].mxu0 %v2213_v2  ;;  %2528 = vmatmul.mubr.f32.vlgmr.msra.gmra.mrb[22].mxu1 %v2213_v2  ;;  %v6618_v2 = vld [vmem:[#allocation39_spill] sm:$0xff] }
 0x4c9   :  { %4631 = vmatpush1.bf16.msra.mxu0 %v5563_v35  ;;  %4663 = vmatpush1.bf16.msra.mxu1 %v5566_v39 }
 0x4ca   :  { %4633 = vmatprep.subr.bf16.mxu0 %v5568_v40  ;;  %4665 = vmatprep.subr.bf16.mxu1 %v5572_v44 }
 0x4cb   :  { %2696 = vmatprep.mubr.f32.mxu0 %v6522_v8  ;;  %2767 = vmatprep.mubr.f32.mxu1 %v6522_v8 }
 0x4cd   :  { %4635 = vmatpush1.bf16.msra.mxu0 %v5578_v51  ;;  %4667 = vmatpush1.bf16.msra.mxu1 %v5582_v53 }
 0x4ce   :  { %4637 = vmatprep.subr.bf16.mxu0 %v5584_v54  ;;  %4669 = vmatprep.subr.bf16.mxu1 %v5587_v58 }
 0x4d1   :  { %4639 = vmatpush1.bf16.msra.mxu0 %v6599_v59  ;;  %4671 = vmatpush1.bf16.msra.mxu1 %v6600_v12 }
 0x4d2   :  { %4641 = vmatprep.subr.bf16.mxu0 %v6601_v23  ;;  %4673 = vmatprep.subr.bf16.mxu1 %v6602_v45 }
 0x4d5   :  { %4643 = vmatpush1.bf16.msra.mxu0 %v6603_v49  ;;  %4675 = vmatpush1.bf16.msra.mxu1 %v6604_v13 }
 0x4d6   :  { %4645 = vmatprep.subr.bf16.mxu0 %v6605_v5  ;;  %4677 = vmatprep.subr.bf16.mxu1 %v6606_v57 }
 0x4d9   :  { %4647 = vmatpush1.bf16.msra.mxu0 %v6607_v7  ;;  %4679 = vmatpush1.bf16.msra.mxu1 %v6608_v16  ;;  %v6619_v16 = vld [vmem:[#allocation40_spill] sm:$0xff] }
 0x4da   :  { %4649 = vmatprep.subr.bf16.mxu0 %v6609_v32  ;;  %4681 = vmatprep.subr.bf16.mxu1 %v6610_v26  ;;  %v6620_v32 = vld [vmem:[#allocation41_spill] sm:$0xff]  ;;  %v6621_v26 = vld [vmem:[#allocation42_spill] sm:$0xff] }
 0x4dd   :  { %4651 = vmatpush1.bf16.msra.mxu0 %v6611_v17  ;;  %4683 = vmatpush1.bf16.msra.mxu1 %v6612_v60  ;;  %v6622_v17 = vld [vmem:[#allocation43_spill] sm:$0xff] }
 0x4de   :  { %4653 = vmatprep.subr.bf16.mxu0 %v6613_v15  ;;  %4685 = vmatprep.subr.bf16.mxu1 %v6614_v55 }
 0x4e1   :  { %4655 = vmatpush1.bf16.msra.mxu0 %v6615_v42  ;;  %4687 = vmatpush1.bf16.msra.mxu1 %v6616_v25 }
 0x4e2   :  { %4657 = vmatprep.subr.bf16.mxu0 %v6617_v1  ;;  %4689 = vmatprep.subr.bf16.mxu1 %v6618_v2 }
 0x4e5   :  { %4659 = vmatpush1.bf16.msra.mxu0 %v6619_v16  ;;  %4691 = vmatpush1.bf16.msra.mxu1 %v6620_v32  ;;  %v2217_v16 = vld [vmem:[#allocation2 + $0x4] ss:$8 sm:$0xf] }
 0x4e6   :  { %4693 = vmatprep.subr.bf16.mxu0 %v6621_v26  ;;  %4725 = vmatprep.subr.bf16.mxu1 %v6622_v17 }
 0x57b   :  { %v2286_v60 = vpop.f32.mrb[20].mxu0  ;;  %v2357_v15 = vpop.f32.mrb[20].mxu1 }
 0x57c   :  { %v2288_v7 = vpop.f32.mrb[21].mxu0  ;;  %v2359_v55 = vpop.f32.mrb[21].mxu1 }
 0x57d   :  { %v2366_v57 = vcombine.low %v2286_v60, %v2288_v7  ;;  %v2367_v42 = vcombine.low %v2357_v15, %v2359_v55 }
 0x57f   :  { %v2374_v25 = vrot.slane %v2366_v57, %v5801_v33  ;;  %v2381_v1 = vrot.slane %v2367_v42, %v5801_v33 }
 0x581   :  { %v2382_v5 = vcombine.low %v2374_v25, %v2381_v1 }
 0x583   :  { %v2389_v2 = vrot.slane %v2382_v5, %v5801_v33 }
 0x585   :  { %v2391_v13 = vadd.f32 %v2389_v2, %v2217_v16 }
 0x587   :  { %v3948_v32 = vmul.f32 -1.442695, %v2391_v13  ;;  %v2571_v49 = vrot.slane %v2391_v13, 1  ;;  %v2582_v17 = vrot.slane %v2391_v13, 3  ;;  %v2579_v12 = vrot.slane %v2391_v13, 2 }
 0x589   :  { %5155 = vpow2.f32 %v3948_v32  ;;  %v3949_v26 = vmul.f32 -1.442695, %v2571_v49  ;;  %v3950_v45 = vmul.f32 -1.442695, %v2582_v17 }
 0x58b   :  { %5157 = vpow2.f32 %v3949_v26 }
 0x58c   :  { %5159 = vpow2.f32 %v3950_v45 }
 0x593   :  { %v5156_v23 = vpop.eup %5155 }
 0x594   :  { %v2567_v7 = vadd.f32 1.0, %v5156_v23 }
 0x595   :  { %v5158_v60 = vpop.eup %5157 }
 0x596   :  { %5161 = vrcp.f32 %v2567_v7  ;;  %v2576_v57 = vadd.f32 1.0, %v5158_v60  ;;  %v5160_v32 = vpop.eup %5159  ;;  %v2219_v60 = vld [vmem:[#allocation2 + $0x23] ss:$8 sm:$0xf] }
 0x597   :  { %5163 = vtanh.f32 %v2579_v12  ;;  %v2587_v2 = vadd.f32 1.0, %v5160_v32 }
 0x598   :  { %5165 = vrcp.f32 %v2576_v57 }
 0x599   :  { %5167 = vrcp.f32 %v2587_v2 }
 0x59b   :  { %v2458_v15 = vpop.f32.mrb[22].mxu0  ;;  %v2529_v5 = vpop.f32.mrb[22].mxu1 }
 0x59c   :  { %v2460_v55 = vpop.f32.mrb[23].mxu0  ;;  %v2531_v16 = vpop.f32.mrb[23].mxu1 }
 0x59d   :  { %v2538_v42 = vcombine.low %v2458_v15, %v2460_v55  ;;  %v2539_v25 = vcombine.low %v2529_v5, %v2531_v16 }
 0x59f   :  { %v2546_v49 = vrot.slane %v2538_v42, %v5801_v33  ;;  %v2553_v26 = vrot.slane %v2539_v25, %v5801_v33 }
 0x5a0   :  { %v5162_v17 = vpop.eup %5161 }
 0x5a1   :  { %v5164_v13 = vpop.eup %5163  ;;  %v2554_v23 = vcombine.low %v2546_v49, %v2553_v26 }
 0x5a2   :  { %v5166_v1 = vpop.eup %5165  ;;  %v2591_v7 = vmul.f32 %v5164_v13, %v5162_v17 }
 0x5a3   :  { %v2561_v45 = vrot.slane %v2554_v23, %v5801_v33  ;;  %v2590_v12 = vmul.f32 %v5166_v1, %v6060_v3  ;;  %v5168_v42 = vpop.eup %5167 }
 0x5a5   :  { %v2563_v57 = vadd.f32 %v2561_v45, %v2219_v60  ;;  %v6142_v59 = vadd.f32 %v2591_v7, %v2590_v12 }
 0x5a7   :  { %v3951_v15 = vmul.f32 -1.442695, %v2563_v57  ;;  %v2602_v5 = vrot.slane %v2563_v57, 1  ;;  %5169 = vtanh.f32 %v6142_v59  ;;  %v2613_v16 = vrot.slane %v2563_v57, 3 }
 0x5a8   :  { %v2610_v26 = vrot.slane %v2563_v57, 2 }
 0x5a9   :  { %5171 = vpow2.f32 %v3951_v15  ;;  %v3952_v55 = vmul.f32 -1.442695, %v2602_v5  ;;  %v3953_v25 = vmul.f32 -1.442695, %v2613_v16  ;;  %v6623_v16 = vld [vmem:[#allocation20_spill] sm:$0xff] }
 0x5ab   :  { %5173 = vpow2.f32 %v3952_v55 }
 0x5ac   :  { %5175 = vpow2.f32 %v3953_v25  ;;  %v6625_v25 = vld [vmem:[#allocation22_spill] sm:$0xff] }
 0x5b1   :  { %v5170_v49 = vpop.eup %5169 }
 0x5b2   :  { %v2594_v3 = vmul.f32 %v5170_v49, %v5168_v42  ;;  %v6624_v42 = vld [vmem:[#allocation21_spill] sm:$0xff]  ;;  %v6626_v49 = vld [vmem:[#allocation23_spill] sm:$0xff] }
 0x5b3   :  { %v5172_v32 = vpop.eup %5171 }
 0x5b4   :  { %v2598_v17 = vadd.f32 1.0, %v5172_v32  ;;  %2626 = vst [vmem:[#allocation11 + $0x4] sm:$0x1] %v2594_v3  ;;  %2697 = vmatmul.mubr.f32.vlgmr.msra.gmra.mrb[24].mxu0 %v2594_v3  ;;  %2768 = vmatmul.mubr.f32.vlgmr.msra.gmra.mrb[24].mxu1 %v2594_v3  ;;  %v6627_v32 = vld [vmem:[#allocation24_spill] sm:$0xff]  ;;  %v6629_v3 = vld [vmem:[#allocation26_spill] sm:$0xff] }
 0x5b5   :  { %v5174_v13 = vpop.eup %5173  ;;  %4695 = vmatpush1.bf16.msra.mxu0 %v5667_v36  ;;  %4727 = vmatpush1.bf16.msra.mxu1 %v5671_v37 }
 0x5b6   :  { %5177 = vrcp.f32 %v2598_v17  ;;  %v2607_v23 = vadd.f32 1.0, %v5174_v13  ;;  %4697 = vmatprep.subr.bf16.mxu0 %v5673_v38  ;;  %4729 = vmatprep.subr.bf16.mxu1 %v5676_v48  ;;  %v5176_v1 = vpop.eup %5175  ;;  %v6630_v17 = vld [vmem:[#allocation27_spill] sm:$0xff]  ;;  %v6631_v13 = vld [vmem:[#allocation28_spill] sm:$0xff] }
 0x5b7   :  { %5179 = vtanh.f32 %v2610_v26  ;;  %2868 = vmatprep.mubr.f32.mxu0 %v6522_v8  ;;  %2939 = vmatprep.mubr.f32.mxu1 %v6522_v8  ;;  %v2618_v7 = vadd.f32 1.0, %v5176_v1  ;;  %v6628_v26 = vld [vmem:[#allocation25_spill] sm:$0xff]  ;;  %v6633_v1 = vld [vmem:[#allocation30_spill] sm:$0xff] }
 0x5b8   :  { %5181 = vrcp.f32 %v2607_v23  ;;  %v6632_v23 = vld [vmem:[#allocation29_spill] sm:$0xff] }
 0x5b9   :  { %4699 = vmatpush1.bf16.msra.mxu0 %v5679_v62  ;;  %4731 = vmatpush1.bf16.msra.mxu1 %v5683_v63  ;;  %5183 = vrcp.f32 %v2618_v7  ;;  %v6637_v7 = vld [vmem:[#allocation34_spill] sm:$0xff] }
 0x5ba   :  { %4701 = vmatprep.subr.bf16.mxu0 %v5685_v4  ;;  %4733 = vmatprep.subr.bf16.mxu1 %v5688_v10 }
 0x5bd   :  { %4703 = vmatpush1.bf16.msra.mxu0 %v5693_v24  ;;  %4735 = vmatpush1.bf16.msra.mxu1 %v6523_v61 }
 0x5be   :  { %4705 = vmatprep.subr.bf16.mxu0 %v6524_v27  ;;  %4737 = vmatprep.subr.bf16.mxu1 %v6525_v19 }
 0x5c0   :  { %v5178_v45 = vpop.eup %5177 }
 0x5c1   :  { %v5180_v2 = vpop.eup %5179  ;;  %4707 = vmatpush1.bf16.msra.mxu0 %v6526_v22  ;;  %4739 = vmatpush1.bf16.msra.mxu1 %v6527_v50 }
 0x5c2   :  { %v5182_v12 = vpop.eup %5181  ;;  %4709 = vmatprep.subr.bf16.mxu0 %v6528_v56  ;;  %4741 = vmatprep.subr.bf16.mxu1 %v6529_v52  ;;  %v2622_v57 = vmul.f32 %v5180_v2, %v5178_v45  ;;  %v6634_v45 = vld [vmem:[#allocation31_spill] sm:$0xff]  ;;  %v6635_v2 = vld [vmem:[#allocation32_spill] sm:$0xff] }
 0x5c3   :  { %v2621_v60 = vmul.f32 %v5182_v12, %v6082_v14  ;;  %v5184_v14 = vpop.eup %5183  ;;  %v6636_v12 = vld [vmem:[#allocation33_spill] sm:$0xff] }
 0x5c5   :  { %v6164_v15 = vadd.f32 %v2622_v57, %v2621_v60  ;;  %4711 = vmatpush1.bf16.msra.mxu0 %v6530_v11  ;;  %4743 = vmatpush1.bf16.msra.mxu1 %v6531_v28  ;;  %v6638_v60 = vld [vmem:[#allocation35_spill] sm:$0xff]  ;;  %v6639_v57 = vld [vmem:[#allocation36_spill] sm:$0xff] }
 0x5c6   :  { %4713 = vmatprep.subr.bf16.mxu0 %v5723_v47  ;;  %4745 = vmatprep.subr.bf16.mxu1 %v6532_v43 }
 0x5c7   :  { %5185 = vtanh.f32 %v6164_v15 }
 0x5c9   :  { %4715 = vmatpush1.bf16.msra.mxu0 %v5729_v6  ;;  %4747 = vmatpush1.bf16.msra.mxu1 %v5733_v0 }
 0x5ca   :  { %4717 = vmatprep.subr.bf16.mxu0 %v5735_v18  ;;  %4749 = vmatprep.subr.bf16.mxu1 %v5738_v34 }
 0x5cd   :  { %4719 = vmatpush1.bf16.msra.mxu0 %v5741_v41  ;;  %4751 = vmatpush1.bf16.msra.mxu1 %v5745_v29 }
 0x5ce   :  { %4721 = vmatprep.subr.bf16.mxu0 %v5747_v46  ;;  %4753 = vmatprep.subr.bf16.mxu1 %v5750_v9 }
 0x5d1   :  { %v5186_v5 = vpop.eup %5185  ;;  %4723 = vmatpush1.bf16.msra.mxu0 %v5753_v21  ;;  %4755 = vmatpush1.bf16.msra.mxu1 %v5757_v20 }
 0x5d2   :  { %v2625_v55 = vmul.f32 %v5186_v5, %v5184_v14  ;;  %4757 = vmatprep.subr.bf16.mxu0 %v5558_v30  ;;  %4789 = vmatprep.subr.bf16.mxu1 %v5560_v31  ;;  %v6640_v14 = vld [vmem:[#allocation37_spill] sm:$0xff]  ;;  %v6641_v5 = vld [vmem:[#allocation38_spill] sm:$0xff] }
 0x5d4   :  { %2627 = vst [vmem:[#allocation11 + $0xb] sm:$0x1] %v2625_v55  ;;  %2869 = vmatmul.mubr.f32.vlgmr.msra.gmra.mrb[26].mxu0 %v2625_v55  ;;  %2940 = vmatmul.mubr.f32.vlgmr.msra.gmra.mrb[26].mxu1 %v2625_v55  ;;  %v6642_v55 = vld [vmem:[#allocation39_spill] sm:$0xff] }
 0x5d5   :  { %4759 = vmatpush1.bf16.msra.mxu0 %v5563_v35  ;;  %4791 = vmatpush1.bf16.msra.mxu1 %v5566_v39 }
 0x5d6   :  { %4761 = vmatprep.subr.bf16.mxu0 %v5568_v40  ;;  %4793 = vmatprep.subr.bf16.mxu1 %v5572_v44 }
 0x5d7   :  { %3108 = vmatprep.mubr.f32.mxu0 %v6522_v8  ;;  %3179 = vmatprep.mubr.f32.mxu1 %v6522_v8 }
 0x5d9   :  { %4763 = vmatpush1.bf16.msra.mxu0 %v5578_v51  ;;  %4795 = vmatpush1.bf16.msra.mxu1 %v5582_v53 }
 0x5da   :  { %4765 = vmatprep.subr.bf16.mxu0 %v5584_v54  ;;  %4797 = vmatprep.subr.bf16.mxu1 %v5587_v58 }
 0x5dd   :  { %4767 = vmatpush1.bf16.msra.mxu0 %v6623_v16  ;;  %4799 = vmatpush1.bf16.msra.mxu1 %v6624_v42 }
 0x5de   :  { %4769 = vmatprep.subr.bf16.mxu0 %v6625_v25  ;;  %4801 = vmatprep.subr.bf16.mxu1 %v6626_v49 }
 0x5e1   :  { %4771 = vmatpush1.bf16.msra.mxu0 %v6627_v32  ;;  %4803 = vmatpush1.bf16.msra.mxu1 %v6628_v26 }
 0x5e2   :  { %4773 = vmatprep.subr.bf16.mxu0 %v6629_v3  ;;  %4805 = vmatprep.subr.bf16.mxu1 %v6630_v17 }
 0x5e5   :  { %4775 = vmatpush1.bf16.msra.mxu0 %v6631_v13  ;;  %4807 = vmatpush1.bf16.msra.mxu1 %v6632_v23  ;;  %v6643_v23 = vld [vmem:[#allocation40_spill] sm:$0xff] }
 0x5e6   :  { %4777 = vmatprep.subr.bf16.mxu0 %v6633_v1  ;;  %4809 = vmatprep.subr.bf16.mxu1 %v6634_v45  ;;  %v6644_v1 = vld [vmem:[#allocation41_spill] sm:$0xff]  ;;  %v6645_v45 = vld [vmem:[#allocation42_spill] sm:$0xff] }
 0x5e9   :  { %4779 = vmatpush1.bf16.msra.mxu0 %v6635_v2  ;;  %4811 = vmatpush1.bf16.msra.mxu1 %v6636_v12  ;;  %v6646_v2 = vld [vmem:[#allocation43_spill] sm:$0xff] }
 0x5ea   :  { %4781 = vmatprep.subr.bf16.mxu0 %v6637_v7  ;;  %4813 = vmatprep.subr.bf16.mxu1 %v6638_v60 }
 0x5ed   :  { %4783 = vmatpush1.bf16.msra.mxu0 %v6639_v57  ;;  %4815 = vmatpush1.bf16.msra.mxu1 %v6640_v14 }
 0x5ee   :  { %4785 = vmatprep.subr.bf16.mxu0 %v6641_v5  ;;  %4817 = vmatprep.subr.bf16.mxu1 %v6642_v55 }
 0x5f1   :  { %4787 = vmatpush1.bf16.msra.mxu0 %v6643_v23  ;;  %4819 = vmatpush1.bf16.msra.mxu1 %v6644_v1  ;;  %v2629_v23 = vld [vmem:[#allocation2 + $0x5] ss:$8 sm:$0xf] }
 0x5f2   :  { %4821 = vmatprep.subr.bf16.mxu0 %v6645_v45  ;;  %4853 = vmatprep.subr.bf16.mxu1 %v6646_v2 }
 0x687   :  { %v2698_v12 = vpop.f32.mrb[24].mxu0  ;;  %v2769_v7 = vpop.f32.mrb[24].mxu1 }
 0x688   :  { %v2700_v13 = vpop.f32.mrb[25].mxu0  ;;  %v2771_v60 = vpop.f32.mrb[25].mxu1 }
 0x689   :  { %v2778_v17 = vcombine.low %v2698_v12, %v2700_v13  ;;  %v2779_v57 = vcombine.low %v2769_v7, %v2771_v60 }
 0x68b   :  { %v2786_v14 = vrot.slane %v2778_v17, %v5801_v33  ;;  %v2793_v5 = vrot.slane %v2779_v57, %v5801_v33 }
 0x68d   :  { %v2794_v3 = vcombine.low %v2786_v14, %v2793_v5 }
 0x68f   :  { %v2801_v55 = vrot.slane %v2794_v3, %v5801_v33 }
 0x691   :  { %v2803_v26 = vadd.f32 %v2801_v55, %v2629_v23 }
 0x693   :  { %v3954_v1 = vmul.f32 -1.442695, %v2803_v26  ;;  %v2983_v32 = vrot.slane %v2803_v26, 1  ;;  %v2994_v2 = vrot.slane %v2803_v26, 3  ;;  %v2991_v42 = vrot.slane %v2803_v26, 2 }
 0x695   :  { %5187 = vpow2.f32 %v3954_v1  ;;  %v3955_v45 = vmul.f32 -1.442695, %v2983_v32  ;;  %v3956_v49 = vmul.f32 -1.442695, %v2994_v2 }
 0x697   :  { %5189 = vpow2.f32 %v3955_v45 }
 0x698   :  { %5191 = vpow2.f32 %v3956_v49 }
 0x69f   :  { %v5188_v25 = vpop.eup %5187 }
 0x6a0   :  { %v2979_v13 = vadd.f32 1.0, %v5188_v25 }
 0x6a1   :  { %v5190_v12 = vpop.eup %5189 }
 0x6a2   :  { %5193 = vrcp.f32 %v2979_v13  ;;  %v2988_v17 = vadd.f32 1.0, %v5190_v12  ;;  %v5192_v1 = vpop.eup %5191  ;;  %v2631_v12 = vld [vmem:[#allocation2 + $0x22] ss:$8 sm:$0xf] }
 0x6a3   :  { %5195 = vtanh.f32 %v2991_v42  ;;  %v2999_v55 = vadd.f32 1.0, %v5192_v1 }
 0x6a4   :  { %5197 = vrcp.f32 %v2988_v17 }
 0x6a5   :  { %5199 = vrcp.f32 %v2999_v55 }
 0x6a7   :  { %v2870_v7 = vpop.f32.mrb[26].mxu0  ;;  %v2941_v3 = vpop.f32.mrb[26].mxu1 }
 0x6a8   :  { %v2872_v60 = vpop.f32.mrb[27].mxu0  ;;  %v2943_v23 = vpop.f32.mrb[27].mxu1 }
 0x6a9   :  { %v2950_v57 = vcombine.low %v2870_v7, %v2872_v60  ;;  %v2951_v14 = vcombine.low %v2941_v3, %v2943_v23 }
 0x6ab   :  { %v2958_v32 = vrot.slane %v2950_v57, %v5801_v33  ;;  %v2965_v45 = vrot.slane %v2951_v14, %v5801_v33 }
 0x6ac   :  { %v5194_v2 = vpop.eup %5193 }
 0x6ad   :  { %v5196_v26 = vpop.eup %5195  ;;  %v2966_v25 = vcombine.low %v2958_v32, %v2965_v45 }
 0x6ae   :  { %v5198_v5 = vpop.eup %5197  ;;  %v3003_v13 = vmul.f32 %v5196_v26, %v5194_v2 }
 0x6af   :  { %v2973_v49 = vrot.slane %v2966_v25, %v5801_v33  ;;  %v3002_v42 = vmul.f32 %v5198_v5, %v6142_v59  ;;  %v5200_v57 = vpop.eup %5199 }
 0x6b1   :  { %v2975_v17 = vadd.f32 %v2973_v49, %v2631_v12  ;;  %v6224_v16 = vadd.f32 %v3003_v13, %v3002_v42 }
 0x6b3   :  { %v3957_v7 = vmul.f32 -1.442695, %v2975_v17  ;;  %v3014_v3 = vrot.slane %v2975_v17, 1  ;;  %5201 = vtanh.f32 %v6224_v16  ;;  %v3025_v23 = vrot.slane %v2975_v17, 3 }
 0x6b4   :  { %v3022_v45 = vrot.slane %v2975_v17, 2 }
 0x6b5   :  { %5203 = vpow2.f32 %v3957_v7  ;;  %v3958_v60 = vmul.f32 -1.442695, %v3014_v3  ;;  %v3959_v14 = vmul.f32 -1.442695, %v3025_v23  ;;  %v6653_v23 = vld [vmem:[#allocation26_spill] sm:$0xff] }
 0x6b7   :  { %5205 = vpow2.f32 %v3958_v60 }
 0x6b8   :  { %5207 = vpow2.f32 %v3959_v14  ;;  %v6659_v14 = vld [vmem:[#allocation32_spill] sm:$0xff] }
 0x6bd   :  { %v5202_v32 = vpop.eup %5201 }
 0x6be   :  { %v3006_v59 = vmul.f32 %v5202_v32, %v5200_v57  ;;  %v6658_v57 = vld [vmem:[#allocation31_spill] sm:$0xff]  ;;  %v6660_v32 = vld [vmem:[#allocation33_spill] sm:$0xff] }
 0x6bf   :  { %v5204_v1 = vpop.eup %5203 }
 0x6c0   :  { %v3010_v2 = vadd.f32 1.0, %v5204_v1  ;;  %3038 = vst [vmem:[#allocation11 + $0x5] sm:$0x1] %v3006_v59  ;;  %3109 = vmatmul.mubr.f32.vlgmr.msra.gmra.mrb[28].mxu0 %v3006_v59  ;;  %3180 = vmatmul.mubr.f32.vlgmr.msra.gmra.mrb[28].mxu1 %v3006_v59  ;;  %v6661_v1 = vld [vmem:[#allocation34_spill] sm:$0xff]  ;;  %v6663_v59 = vld [vmem:[#allocation36_spill] sm:$0xff] }
 0x6c1   :  { %v5206_v26 = vpop.eup %5205  ;;  %4823 = vmatpush1.bf16.msra.mxu0 %v5667_v36  ;;  %4855 = vmatpush1.bf16.msra.mxu1 %v5671_v37 }
 0x6c2   :  { %5209 = vrcp.f32 %v3010_v2  ;;  %v3019_v25 = vadd.f32 1.0, %v5206_v26  ;;  %4825 = vmatprep.subr.bf16.mxu0 %v5673_v38  ;;  %4857 = vmatprep.subr.bf16.mxu1 %v5676_v48  ;;  %v5208_v5 = vpop.eup %5207  ;;  %v6664_v2 = vld [vmem:[#allocation37_spill] sm:$0xff]  ;;  %v6665_v26 = vld [vmem:[#allocation38_spill] sm:$0xff] }
 0x6c3   :  { %5211 = vtanh.f32 %v3022_v45  ;;  %3280 = vmatprep.mubr.f32.mxu0 %v6522_v8  ;;  %3351 = vmatprep.mubr.f32.mxu1 %v6522_v8  ;;  %v3030_v13 = vadd.f32 1.0, %v5208_v5  ;;  %v6662_v45 = vld [vmem:[#allocation35_spill] sm:$0xff]  ;;  %v6667_v5 = vld [vmem:[#allocation40_spill] sm:$0xff] }
 0x6c4   :  { %5213 = vrcp.f32 %v3019_v25  ;;  %v6666_v25 = vld [vmem:[#allocation39_spill] sm:$0xff] }
 0x6c5   :  { %4827 = vmatpush1.bf16.msra.mxu0 %v5679_v62  ;;  %4859 = vmatpush1.bf16.msra.mxu1 %v5683_v63  ;;  %5215 = vrcp.f32 %v3030_v13 }
 0x6c6   :  { %4829 = vmatprep.subr.bf16.mxu0 %v5685_v4  ;;  %4861 = vmatprep.subr.bf16.mxu1 %v5688_v10 }
 0x6c9   :  { %4831 = vmatpush1.bf16.msra.mxu0 %v5693_v24  ;;  %4863 = vmatpush1.bf16.msra.mxu1 %v6523_v61 }
 0x6ca   :  { %4833 = vmatprep.subr.bf16.mxu0 %v6524_v27  ;;  %4865 = vmatprep.subr.bf16.mxu1 %v6525_v19 }
 0x6cc   :  { %v5210_v49 = vpop.eup %5209 }
 0x6cd   :  { %v5212_v55 = vpop.eup %5211  ;;  %4835 = vmatpush1.bf16.msra.mxu0 %v6526_v22  ;;  %4867 = vmatpush1.bf16.msra.mxu1 %v6527_v50 }
 0x6ce   :  { %v5214_v42 = vpop.eup %5213  ;;  %4837 = vmatprep.subr.bf16.mxu0 %v6528_v56  ;;  %4869 = vmatprep.subr.bf16.mxu1 %v6529_v52  ;;  %v3034_v17 = vmul.f32 %v5212_v55, %v5210_v49  ;;  %v6668_v49 = vld [vmem:[#allocation41_spill] sm:$0xff]  ;;  %v6669_v55 = vld [vmem:[#allocation42_spill] sm:$0xff] }
 0x6cf   :  { %v3033_v12 = vmul.f32 %v5214_v42, %v6164_v15  ;;  %v5216_v15 = vpop.eup %5215  ;;  %v6670_v42 = vld [vmem:[#allocation43_spill] sm:$0xff] }
 0x6d1   :  { %v6246_v7 = vadd.f32 %v3034_v17, %v3033_v12  ;;  %4839 = vmatpush1.bf16.msra.mxu0 %v6530_v11  ;;  %4871 = vmatpush1.bf16.msra.mxu1 %v6531_v28 }
 0x6d2   :  { %4841 = vmatprep.subr.bf16.mxu0 %v5723_v47  ;;  %4873 = vmatprep.subr.bf16.mxu1 %v6532_v43 }
 0x6d3   :  { %5217 = vtanh.f32 %v6246_v7 }
 0x6d5   :  { %4843 = vmatpush1.bf16.msra.mxu0 %v5729_v6  ;;  %4875 = vmatpush1.bf16.msra.mxu1 %v5733_v0 }
 0x6d6   :  { %4845 = vmatprep.subr.bf16.mxu0 %v5735_v18  ;;  %4877 = vmatprep.subr.bf16.mxu1 %v5738_v34 }
 0x6d9   :  { %4847 = vmatpush1.bf16.msra.mxu0 %v5741_v41  ;;  %4879 = vmatpush1.bf16.msra.mxu1 %v5745_v29 }
 0x6da   :  { %4849 = vmatprep.subr.bf16.mxu0 %v5747_v46  ;;  %4881 = vmatprep.subr.bf16.mxu1 %v5750_v9 }
 0x6dd   :  { %v5218_v3 = vpop.eup %5217  ;;  %4851 = vmatpush1.bf16.msra.mxu0 %v5753_v21  ;;  %4883 = vmatpush1.bf16.msra.mxu1 %v5757_v20 }
 0x6de   :  { %v3037_v60 = vmul.f32 %v5218_v3, %v5216_v15  ;;  %4885 = vmatprep.subr.bf16.mxu0 %v5558_v30  ;;  %4917 = vmatprep.subr.bf16.mxu1 %v5560_v31  ;;  %v6647_v30 = vld [vmem:[#allocation20_spill] sm:$0xff]  ;;  %v6648_v31 = vld [vmem:[#allocation21_spill] sm:$0xff] }
 0x6e0   :  { %3039 = vst [vmem:[#allocation11 + $0xa] sm:$0x1] %v3037_v60  ;;  %3281 = vmatmul.mubr.f32.vlgmr.msra.gmra.mrb[30].mxu0 %v3037_v60  ;;  %3352 = vmatmul.mubr.f32.vlgmr.msra.gmra.mrb[30].mxu1 %v3037_v60 }
 0x6e1   :  { %4887 = vmatpush1.bf16.msra.mxu0 %v5563_v35  ;;  %4919 = vmatpush1.bf16.msra.mxu1 %v5566_v39  ;;  %v6649_v35 = vld [vmem:[#allocation22_spill] sm:$0xff]  ;;  %v6650_v39 = vld [vmem:[#allocation23_spill] sm:$0xff] }
 0x6e2   :  { %4889 = vmatprep.subr.bf16.mxu0 %v5568_v40  ;;  %4921 = vmatprep.subr.bf16.mxu1 %v5572_v44  ;;  %v6651_v40 = vld [vmem:[#allocation24_spill] sm:$0xff]  ;;  %v6652_v44 = vld [vmem:[#allocation25_spill] sm:$0xff] }
 0x6e3   :  { %3520 = vmatprep.mubr.f32.mxu0 %v6522_v8  ;;  %3591 = vmatprep.mubr.f32.mxu1 %v6522_v8 }
 0x6e5   :  { %4891 = vmatpush1.bf16.msra.mxu0 %v5578_v51  ;;  %4923 = vmatpush1.bf16.msra.mxu1 %v5582_v53  ;;  %v6654_v51 = vld [vmem:[#allocation27_spill] sm:$0xff]  ;;  %v6655_v53 = vld [vmem:[#allocation28_spill] sm:$0xff] }
 0x6e6   :  { %4893 = vmatprep.subr.bf16.mxu0 %v5584_v54  ;;  %4925 = vmatprep.subr.bf16.mxu1 %v5587_v58  ;;  %v6656_v54 = vld [vmem:[#allocation29_spill] sm:$0xff]  ;;  %v6657_v58 = vld [vmem:[#allocation30_spill] sm:$0xff] }
 0x6e9   :  { %4895 = vmatpush1.bf16.msra.mxu0 %v6647_v30  ;;  %4927 = vmatpush1.bf16.msra.mxu1 %v6648_v31 }
 0x6ea   :  { %4897 = vmatprep.subr.bf16.mxu0 %v6649_v35  ;;  %4929 = vmatprep.subr.bf16.mxu1 %v6650_v39 }
 0x6ed   :  { %4899 = vmatpush1.bf16.msra.mxu0 %v6651_v40  ;;  %4931 = vmatpush1.bf16.msra.mxu1 %v6652_v44  ;;  %v3041_v40 = vld [vmem:[#allocation2 + $0x6] ss:$8 sm:$0xf] }
 0x6ee   :  { %4901 = vmatprep.subr.bf16.mxu0 %v6653_v23  ;;  %4933 = vmatprep.subr.bf16.mxu1 %v6654_v51 }
 0x6f1   :  { %4903 = vmatpush1.bf16.msra.mxu0 %v6655_v53  ;;  %4935 = vmatpush1.bf16.msra.mxu1 %v6656_v54 }
 0x6f2   :  { %4905 = vmatprep.subr.bf16.mxu0 %v6657_v58  ;;  %4937 = vmatprep.subr.bf16.mxu1 %v6658_v57 }
 0x6f5   :  { %4907 = vmatpush1.bf16.msra.mxu0 %v6659_v14  ;;  %4939 = vmatpush1.bf16.msra.mxu1 %v6660_v32 }
 0x6f6   :  { %4909 = vmatprep.subr.bf16.mxu0 %v6661_v1  ;;  %4941 = vmatprep.subr.bf16.mxu1 %v6662_v45 }
 0x6f9   :  { %4911 = vmatpush1.bf16.msra.mxu0 %v6663_v59  ;;  %4943 = vmatpush1.bf16.msra.mxu1 %v6664_v2 }
 0x6fa   :  { %4913 = vmatprep.subr.bf16.mxu0 %v6665_v26  ;;  %4945 = vmatprep.subr.bf16.mxu1 %v6666_v25 }
 0x6fd   :  { %4915 = vmatpush1.bf16.msra.mxu0 %v6667_v5  ;;  %4947 = vmatpush1.bf16.msra.mxu1 %v6668_v49 }
 0x6fe   :  { %4949 = vmatprep.subr.bf16.mxu0 %v6669_v55  ;;  %4981 = vmatprep.subr.bf16.mxu1 %v6670_v42 }
 0x793   :  { %v3110_v13 = vpop.f32.mrb[28].mxu0  ;;  %v3181_v12 = vpop.f32.mrb[28].mxu1 }
 0x794   :  { %v3112_v17 = vpop.f32.mrb[29].mxu0  ;;  %v3183_v15 = vpop.f32.mrb[29].mxu1 }
 0x795   :  { %v3190_v3 = vcombine.low %v3110_v13, %v3112_v17  ;;  %v3191_v60 = vcombine.low %v3181_v12, %v3183_v15 }
 0x797   :  { %v3198_v30 = vrot.slane %v3190_v3, %v5801_v33  ;;  %v3205_v31 = vrot.slane %v3191_v60, %v5801_v33 }
 0x799   :  { %v3206_v35 = vcombine.low %v3198_v30, %v3205_v31 }
 0x79b   :  { %v3213_v39 = vrot.slane %v3206_v35, %v5801_v33 }
 0x79d   :  { %v3215_v44 = vadd.f32 %v3213_v39, %v3041_v40  ;;  %v3043_v39 = vld [vmem:[#allocation2 + $0x21] ss:$8 sm:$0xf] }
 0x79f   :  { %v3960_v23 = vmul.f32 -1.442695, %v3215_v44  ;;  %v3395_v51 = vrot.slane %v3215_v44, 1  ;;  %v3406_v54 = vrot.slane %v3215_v44, 3  ;;  %v3403_v14 = vrot.slane %v3215_v44, 2 }
 0x7a1   :  { %5219 = vpow2.f32 %v3960_v23  ;;  %v3961_v53 = vmul.f32 -1.442695, %v3395_v51  ;;  %v3962_v58 = vmul.f32 -1.442695, %v3406_v54 }
 0x7a3   :  { %5221 = vpow2.f32 %v3961_v53 }
 0x7a4   :  { %5223 = vpow2.f32 %v3962_v58 }
 0x7ab   :  { %v5220_v57 = vpop.eup %5219 }
 0x7ac   :  { %v3391_v32 = vadd.f32 1.0, %v5220_v57 }
 0x7ad   :  { %v5222_v1 = vpop.eup %5221 }
 0x7ae   :  { %5225 = vrcp.f32 %v3391_v32  ;;  %v3400_v45 = vadd.f32 1.0, %v5222_v1  ;;  %v5224_v55 = vpop.eup %5223 }
 0x7af   :  { %5227 = vtanh.f32 %v3403_v14  ;;  %v3411_v30 = vadd.f32 1.0, %v5224_v55 }
 0x7b0   :  { %5229 = vrcp.f32 %v3400_v45 }
 0x7b1   :  { %5231 = vrcp.f32 %v3411_v30 }
 0x7b3   :  { %v3282_v59 = vpop.f32.mrb[30].mxu0  ;;  %v3353_v2 = vpop.f32.mrb[30].mxu1 }
 0x7b4   :  { %v3284_v26 = vpop.f32.mrb[31].mxu0  ;;  %v3355_v25 = vpop.f32.mrb[31].mxu1 }
 0x7b5   :  { %v3362_v5 = vcombine.low %v3282_v59, %v3284_v26  ;;  %v3363_v49 = vcombine.low %v3353_v2, %v3355_v25 }
 0x7b7   :  { %v3370_v42 = vrot.slane %v3362_v5, %v5801_v33  ;;  %v3377_v13 = vrot.slane %v3363_v49, %v5801_v33 }
 0x7b8   :  { %v5226_v12 = vpop.eup %5225 }
 0x7b9   :  { %v5228_v17 = vpop.eup %5227  ;;  %v3378_v15 = vcombine.low %v3370_v42, %v3377_v13 }
 0x7ba   :  { %v5230_v3 = vpop.eup %5229  ;;  %v3415_v35 = vmul.f32 %v5228_v17, %v5226_v12 }
 0x7bb   :  { %v3385_v60 = vrot.slane %v3378_v15, %v5801_v33  ;;  %v3414_v31 = vmul.f32 %v5230_v3, %v6224_v16  ;;  %v5232_v58 = vpop.eup %5231 }
 0x7bd   :  { %v3387_v40 = vadd.f32 %v3385_v60, %v3043_v39  ;;  %v6306_v44 = vadd.f32 %v3415_v35, %v3414_v31 }
 0x7bf   :  { %v3963_v23 = vmul.f32 -1.442695, %v3387_v40  ;;  %v3426_v51 = vrot.slane %v3387_v40, 1  ;;  %5233 = vtanh.f32 %v6306_v44  ;;  %v3437_v54 = vrot.slane %v3387_v40, 3 }
 0x7c0   :  { %v3434_v1 = vrot.slane %v3387_v40, 2 }
 0x7c1   :  { %5235 = vpow2.f32 %v3963_v23  ;;  %v3964_v53 = vmul.f32 -1.442695, %v3426_v51  ;;  %v3965_v57 = vmul.f32 -1.442695, %v3437_v54 }
 0x7c2   :  { %v3455_v51 = vld [vmem:[#allocation2 + $0x20] ss:$8 sm:$0xf] }
 0x7c3   :  { %5237 = vpow2.f32 %v3964_v53 }
 0x7c4   :  { %5239 = vpow2.f32 %v3965_v57 }
 0x7c9   :  { %v5234_v14 = vpop.eup %5233 }
 0x7ca   :  { %v3418_v16 = vmul.f32 %v5234_v14, %v5232_v58 }
 0x7cb   :  { %v5236_v32 = vpop.eup %5235 }
 0x7cc   :  { %v3422_v45 = vadd.f32 1.0, %v5236_v32  ;;  %3450 = vst [vmem:[#allocation11 + $0x6] sm:$0x1] %v3418_v16  ;;  %3521 = vmatmul.mubr.f32.vlgmr.msra.gmra.mrb[32].mxu0 %v3418_v16  ;;  %3592 = vmatmul.mubr.f32.vlgmr.msra.gmra.mrb[32].mxu1 %v3418_v16 }
 0x7cd   :  { %v5238_v59 = vpop.eup %5237  ;;  %4951 = vmatpush1.bf16.msra.mxu0 %v5667_v36  ;;  %4983 = vmatpush1.bf16.msra.mxu1 %v5671_v37 }
 0x7ce   :  { %5241 = vrcp.f32 %v3422_v45  ;;  %v3431_v2 = vadd.f32 1.0, %v5238_v59  ;;  %4953 = vmatprep.subr.bf16.mxu0 %v5673_v38  ;;  %4985 = vmatprep.subr.bf16.mxu1 %v5676_v48  ;;  %v5240_v36 = vpop.eup %5239 }
 0x7cf   :  { %5243 = vtanh.f32 %v3434_v1  ;;  %3692 = vmatprep.mubr.f32.mxu0 %v6522_v8  ;;  %3763 = vmatprep.mubr.f32.mxu1 %v6522_v8 }
 0x7d0   :  { %5245 = vrcp.f32 %v3431_v2 }
 0x7d1   :  { %4955 = vmatpush1.bf16.msra.mxu0 %v5679_v62  ;;  %4987 = vmatpush1.bf16.msra.mxu1 %v5683_v63  ;;  %v3442_v62 = vadd.f32 1.0, %v5240_v36 }
 0x7d2   :  { %4957 = vmatprep.subr.bf16.mxu0 %v5685_v4  ;;  %4989 = vmatprep.subr.bf16.mxu1 %v5688_v10 }
 0x7d3   :  { %5247 = vrcp.f32 %v3442_v62 }
 0x7d5   :  { %4959 = vmatpush1.bf16.msra.mxu0 %v5693_v24  ;;  %4991 = vmatpush1.bf16.msra.mxu1 %v6523_v61 }
 0x7d6   :  { %4961 = vmatprep.subr.bf16.mxu0 %v6524_v27  ;;  %4993 = vmatprep.subr.bf16.mxu1 %v6525_v19 }
 0x7d8   :  { %v5242_v37 = vpop.eup %5241 }
 0x7d9   :  { %v5244_v38 = vpop.eup %5243  ;;  %4963 = vmatpush1.bf16.msra.mxu0 %v6526_v22  ;;  %4995 = vmatpush1.bf16.msra.mxu1 %v6527_v50 }
 0x7da   :  { %v5246_v48 = vpop.eup %5245  ;;  %4965 = vmatprep.subr.bf16.mxu0 %v6528_v56  ;;  %4997 = vmatprep.subr.bf16.mxu1 %v6529_v52  ;;  %v3446_v4 = vmul.f32 %v5244_v38, %v5242_v37 }
 0x7db   :  { %v3445_v63 = vmul.f32 %v5246_v48, %v6246_v7 }
 0x7dd   :  { %v6328_v10 = vadd.f32 %v3446_v4, %v3445_v63  ;;  %4967 = vmatpush1.bf16.msra.mxu0 %v6530_v11  ;;  %4999 = vmatpush1.bf16.msra.mxu1 %v6531_v28  ;;  %v5248_v24 = vpop.eup %5247 }
 0x7de   :  { %4969 = vmatprep.subr.bf16.mxu0 %v5723_v47  ;;  %5001 = vmatprep.subr.bf16.mxu1 %v6532_v43 }
 0x7df   :  { %5249 = vtanh.f32 %v6328_v10 }
 0x7e1   :  { %4971 = vmatpush1.bf16.msra.mxu0 %v5729_v6  ;;  %5003 = vmatpush1.bf16.msra.mxu1 %v5733_v0 }
 0x7e2   :  { %4973 = vmatprep.subr.bf16.mxu0 %v5735_v18  ;;  %5005 = vmatprep.subr.bf16.mxu1 %v5738_v34 }
 0x7e5   :  { %4975 = vmatpush1.bf16.msra.mxu0 %v5741_v41  ;;  %5007 = vmatpush1.bf16.msra.mxu1 %v5745_v29 }
 0x7e6   :  { %4977 = vmatprep.subr.bf16.mxu0 %v5747_v46  ;;  %5009 = vmatprep.subr.bf16.mxu1 %v5750_v9 }
 0x7e9   :  { %v5250_v47 = vpop.eup %5249  ;;  %4979 = vmatpush1.bf16.msra.mxu0 %v5753_v21  ;;  %5011 = vmatpush1.bf16.msra.mxu1 %v5757_v20  ;;  %v3453_v21 = vld [vmem:[#allocation2 + $0x7] ss:$8 sm:$0xf] }
 0x7ea   :  { %v3449_v6 = vmul.f32 %v5250_v47, %v5248_v24 }
 0x7ec   :  { %3451 = vst [vmem:[#allocation11 + $0x9] sm:$0x1] %v3449_v6  ;;  %3693 = vmatmul.mubr.f32.vlgmr.msra.gmra.mrb[34].mxu0 %v3449_v6  ;;  %3764 = vmatmul.mubr.f32.vlgmr.msra.gmra.mrb[34].mxu1 %v3449_v6 }
 0x89f   :  { %v3522_v0 = vpop.f32.mrb[32].mxu0  ;;  %v3593_v18 = vpop.f32.mrb[32].mxu1 }
 0x8a0   :  { %v3524_v34 = vpop.f32.mrb[33].mxu0  ;;  %v3595_v41 = vpop.f32.mrb[33].mxu1 }
 0x8a1   :  { %v3602_v8 = vcombine.low %v3522_v0, %v3524_v34  ;;  %v3603_v29 = vcombine.low %v3593_v18, %v3595_v41 }
 0x8a3   :  { %v3610_v46 = vrot.slane %v3602_v8, %v5801_v33  ;;  %v3617_v9 = vrot.slane %v3603_v29, %v5801_v33 }
 0x8a5   :  { %v3618_v61 = vcombine.low %v3610_v46, %v3617_v9 }
 0x8a7   :  { %v3625_v27 = vrot.slane %v3618_v61, %v5801_v33 }
 0x8a9   :  { %v3627_v19 = vadd.f32 %v3625_v27, %v3453_v21 }
 0x8ab   :  { %v3966_v20 = vmul.f32 -1.442695, %v3627_v19  ;;  %v3807_v22 = vrot.slane %v3627_v19, 1  ;;  %v3818_v56 = vrot.slane %v3627_v19, 3  ;;  %v3815_v28 = vrot.slane %v3627_v19, 2 }
 0x8ad   :  { %5251 = vpow2.f32 %v3966_v20  ;;  %v3967_v50 = vmul.f32 -1.442695, %v3807_v22  ;;  %v3968_v52 = vmul.f32 -1.442695, %v3818_v56 }
 0x8af   :  { %5253 = vpow2.f32 %v3967_v50 }
 0x8b0   :  { %5255 = vpow2.f32 %v3968_v52 }
 0x8b7   :  { %v5252_v11 = vpop.eup %5251 }
 0x8b8   :  { %v3803_v43 = vadd.f32 1.0, %v5252_v11 }
 0x8b9   :  { %v5254_v7 = vpop.eup %5253 }
 0x8ba   :  { %5257 = vrcp.f32 %v3803_v43  ;;  %v3812_v26 = vadd.f32 1.0, %v5254_v7  ;;  %v5256_v12 = vpop.eup %5255 }
 0x8bb   :  { %5259 = vtanh.f32 %v3815_v28  ;;  %v3823_v35 = vadd.f32 1.0, %v5256_v12 }
 0x8bc   :  { %5261 = vrcp.f32 %v3812_v26 }
 0x8bd   :  { %5263 = vrcp.f32 %v3823_v35 }
 0x8bf   :  { %v3694_v25 = vpop.f32.mrb[34].mxu0  ;;  %v3765_v5 = vpop.f32.mrb[34].mxu1 }
 0x8c0   :  { %v3696_v49 = vpop.f32.mrb[35].mxu0  ;;  %v3767_v55 = vpop.f32.mrb[35].mxu1 }
 0x8c1   :  { %v3774_v42 = vcombine.low %v3694_v25, %v3696_v49  ;;  %v3775_v13 = vcombine.low %v3765_v5, %v3767_v55 }
 0x8c3   :  { %v3782_v17 = vrot.slane %v3774_v42, %v5801_v33  ;;  %v3789_v15 = vrot.slane %v3775_v13, %v5801_v33 }
 0x8c4   :  { %v5258_v3 = vpop.eup %5257 }
 0x8c5   :  { %v5260_v60 = vpop.eup %5259  ;;  %v3790_v30 = vcombine.low %v3782_v17, %v3789_v15 }
 0x8c6   :  { %v5262_v31 = vpop.eup %5261  ;;  %v3827_v23 = vmul.f32 %v5260_v60, %v5258_v3 }
 0x8c7   :  { %v3797_v39 = vrot.slane %v3790_v30, %v5801_v33  ;;  %v3826_v40 = vmul.f32 %v5262_v31, %v6306_v44  ;;  %v5264_v1 = vpop.eup %5263 }
 0x8c9   :  { %v3799_v53 = vadd.f32 %v3797_v39, %v3455_v51  ;;  %v3828_v54 = vadd.f32 %v3827_v23, %v3826_v40 }
 0x8cb   :  { %v3969_v58 = vmul.f32 -1.442695, %v3799_v53  ;;  %v3838_v57 = vrot.slane %v3799_v53, 1  ;;  %3865 = vst [vmem:[#allocation14] sm:$0x1] %v3828_v54  ;;  %5265 = vtanh.f32 %v3828_v54  ;;  %v3849_v32 = vrot.slane %v3799_v53, 3 }
 0x8cc   :  { %v3846_v33 = vrot.slane %v3799_v53, 2 }
 0x8cd   :  { %5267 = vpow2.f32 %v3969_v58  ;;  %v3970_v14 = vmul.f32 -1.442695, %v3838_v57  ;;  %v3971_v16 = vmul.f32 -1.442695, %v3849_v32 }
 0x8cf   :  { %5269 = vpow2.f32 %v3970_v14 }
 0x8d0   :  { %5271 = vpow2.f32 %v3971_v16 }
 0x8d5   :  { %v5266_v45 = vpop.eup %5265 }
 0x8d6   :  { %v3830_v2 = vmul.f32 %v5266_v45, %v5264_v1 }
 0x8d7   :  { %v5268_v59 = vpop.eup %5267 }
 0x8d8   :  { %v3834_v44 = vadd.f32 1.0, %v5268_v59  ;;  %3862 = vst [vmem:[#allocation11 + $0x7] sm:$0x1] %v3830_v2  ;;  %3864 = vst [vmem:[#allocation12] sm:$0x1] %v3830_v2 }
 0x8d9   :  { %v5270_v36 = vpop.eup %5269 }
 0x8da   :  { %5273 = vrcp.f32 %v3834_v44  ;;  %v3843_v37 = vadd.f32 1.0, %v5270_v36  ;;  %v5272_v38 = vpop.eup %5271 }
 0x8db   :  { %5275 = vtanh.f32 %v3846_v33  ;;  %v3854_v4 = vadd.f32 1.0, %v5272_v38 }
 0x8dc   :  { %5277 = vrcp.f32 %v3843_v37 }
 0x8dd   :  { %5279 = vrcp.f32 %v3854_v4 }
 0x8e4   :  { %v5274_v48 = vpop.eup %5273 }
 0x8e5   :  { %v5276_v62 = vpop.eup %5275 }
 0x8e6   :  { %v5278_v63 = vpop.eup %5277  ;;  %v3858_v47 = vmul.f32 %v5276_v62, %v5274_v48 }
 0x8e7   :  { %v3857_v24 = vmul.f32 %v5278_v63, %v6328_v10  ;;  %v5280_v0 = vpop.eup %5279 }
 0x8e9   :  { %v3859_v6 = vadd.f32 %v3858_v47, %v3857_v24 }
 0x8eb   :  { %5281 = vtanh.f32 %v3859_v6  ;;  %3869 = vst [vmem:[#allocation14 + $0x1] sm:$0x1] %v3859_v6 }
 0x8f5   :  { %v5282_v18 = vpop.eup %5281 }
 0x8f6   :  { %v3861_v34 = vmul.f32 %v5282_v18, %v5280_v0 }
 0x8f8   :  { %3863 = vst [vmem:[#allocation11 + $0x8] sm:$0x1] %v3861_v34  ;;  %3867 = vst [vmem:[#allocation12 + $0x1] sm:$0x1] %v3861_v34 }
 0x8f9   :  { %5382 = shalt.err (!%p5379_p8)
}
 0x8fa   :  { %s5383_s23 = scalar_lea.hbm %s6416_s7, 32 }
 0x8fb   :  { %p5384_p9 = scmp.ne.s32.totalorder %s6416_s7, %s5383_s23  ;;  %p5387_p10 = scmp.lt.u32.totalorder %s5383_s23, %s6416_s7 }
 0x8fd   :  { %p5389_p11 = pnand %p5387_p10, %p5384_p9 }
 0x8ff   :  { %5392 = shalt.err (!%p5389_p11)
}
 0x900   :  { %s5460_s29 = smov 16   ;;  %s5461_s30 = smov 1  }
 0x901   :  { %3891 = dma.vmem_to_hbm [thread:$0]  %s3886_s15, 32, %s6416_s7, [#allocation13], %s5460_s29, %s5460_s29, %s5461_s30  }
 0x902   :  { %s5393_s1 = scalar_lea.vmem %s6353_s17, 256  ;;  %p5398_p13 = scmp.lt.s32.totalorder %s6353_s17, %s6353_s17 }
 0x903   :  { %p5394_p12 = scmp.ne.s32.totalorder %s6353_s17, %s5393_s1  ;;  %p5399_p0 = scmp.lt.s32.totalorder %s5393_s1, %s5393_s1 }
 0x905   :  { %p5400_p1 = por %p5399_p0, %p5398_p13 }
 0x907   :  { %p5401_p2 = pnand %p5400_p1, %p5394_p12 }
 0x909   :  { %5404 = shalt.err (!%p5401_p2)
}
 0x90a   :  { %s5405_s9 = scalar_lea.hbm %s6415_s6, 256 }
 0x90b   :  { %p5406_p3 = scmp.ne.s32.totalorder %s6415_s6, %s5405_s9  ;;  %p5409_p4 = scmp.lt.u32.totalorder %s5405_s9, %s6415_s6 }
 0x90d   :  { %p5411_p5 = pnand %p5409_p4, %p5406_p3 }
 0x90f   :  { %5414 = shalt.err (!%p5411_p5)
}
 0x910   :  { %3879 = dma.vmem_to_hbm [thread:$0]  %s6353_s17, 256, %s6415_s6, [#allocation5]  }
 0x911   :  { %s5415_s14 = scalar_lea.vmem %s6355_s18, 32  ;;  %p5420_p7 = scmp.lt.s32.totalorder %s6355_s18, %s6355_s18 }
 0x912   :  { %p5416_p6 = scmp.ne.s32.totalorder %s6355_s18, %s5415_s14  ;;  %p5421_p8 = scmp.lt.s32.totalorder %s5415_s14, %s5415_s14 }
 0x914   :  { %p5422_p9 = por %p5421_p8, %p5420_p7 }
 0x916   :  { %p5423_p10 = pnand %p5422_p9, %p5416_p6 }
 0x918   :  { %5426 = shalt.err (!%p5423_p10)
}
 0x919   :  { %s5427_s16 = scalar_lea.hbm %s6417_s8, 32 }
 0x91a   :  { %p5428_p11 = scmp.ne.s32.totalorder %s6417_s8, %s5427_s16  ;;  %p5431_p12 = scmp.lt.u32.totalorder %s5427_s16, %s6417_s8 }
 0x91c   :  { %p5433_p13 = pnand %p5431_p12, %p5428_p11 }
 0x91e   :  { %5436 = shalt.err (!%p5433_p13)
}
 0x91f   :  { %3903 = dma.vmem_to_hbm [thread:$0]  %s6355_s18, 32, %s6417_s8, [#allocation13], %s5460_s29, %s5460_s29, %s5461_s30  }
 0x920   :  { %5443 = dma.done.wait [#allocation5], 256  }
 0x921   :  { %5444 = vsyncadd [#allocation5], 4294967040 }
 0x922   :  { %5445 = dma.done.wait [#allocation13], 64  }
 0x923   :  { %5446 = vsyncadd [#allocation13], 4294967232 }
 0x924   :  { %3913 = vsyncpa [#allocation4], 1 }
 0x925   :  { %3914 = vsyncpa [#allocation7], 1 }
 0x926   :  { %3915 = vsyncpa [#allocation10], 1 }
 0x927   :  { %3916 = vsyncpa [#allocation5], 1 }
 0x928   :  { %3917 = vsyncpa [#allocation13], 1 }

</bundles_post_ra>
